<compile_context>
chip_gen: v6e
topology: v6e:2x2x1
jax: 0.10.0
libtpu: 0.0.40
codegen_flags: <defaults>
</compile_context>

<pallas_src>
import math
import functools

import jax
import jax.numpy as jnp
from jax import lax
from jax.experimental import pallas as pl
from jax.experimental.pallas import tpu as pltpu

LN_EPS = 1e-5            # torch.nn.LayerNorm default
PERFORMER_EPS = 1e-4     # softmax_kernel eps
DIM_HEAD = 64            # SelfAttention default dim_head (NOT dim // heads)
CONV_KSIZE = 31          # ConformerConvModule kernel_size
CONV_EXPANSION = 2
NB_FEATURES = int(DIM_HEAD * math.log(DIM_HEAD))          # 266
M_PAD = ((NB_FEATURES + 127) // 128) * 128                # 384 (lane aligned)
NEG_INF = -1e30


# ----------------------------------------------------------------------------
# In-kernel helpers
# ----------------------------------------------------------------------------

def _layernorm(x, g, b):
    mu = jnp.mean(x, axis=-1, keepdims=True)
    var = jnp.mean((x - mu) ** 2, axis=-1, keepdims=True)
    return (x - mu) * lax.rsqrt(var + LN_EPS) * g + b


# ----------------------------------------------------------------------------
# Fused encoder layer kernel:
#   x1  = x  + to_out(FastAttention(norm(x)))
#   out = x1 + ConformerConvModule(x1)
# ----------------------------------------------------------------------------

def _layer_kernel(x_ref, vecd_ref, wqkv_ref, bqkv_ref, projt_ref, wo_ref,
                  wa_ref, wg_ref, veci_ref, wdw_ref, w2_ref,
                  o_ref, attn_o_ref, upad_ref,
                  *, num_heads, dim_head, nb_features, n_rows,
                  inner, inner_conv, ksize, pad):
    f32 = jnp.float32
    bf16 = jnp.bfloat16
    x = x_ref[0]                                               # (N, D) f32

    # ---------------- attention branch ----------------
    xn = _layernorm(x, vecd_ref[0:1, :], vecd_ref[1:2, :])
    # fused Q/K/V projection, lane-dense (N, 3*inner)
    qkv = jnp.dot(xn.astype(bf16), wqkv_ref[...],
                  preferred_element_type=f32) + bqkv_ref[...]

    projt = projt_ref[...]                                     # (Dh, Mpad) bf16, pad cols 0
    mpad = projt.shape[1]
    dn = dim_head ** (-0.25)
    ratio = nb_features ** (-0.5)                              # ratio uses REAL feature count
    real_row = lax.broadcasted_iota(jnp.int32, (1, mpad), 1) < nb_features

    # TODO(synk): odd heads slice at a 64-lane offset (dim_head=64); acceptable for small
    # head counts, revisit column packing if num_heads grows.
    for h in range(num_heads):                                 # static unrolled head loop
        q = qkv[:, h * dim_head:(h + 1) * dim_head] * dn                     # (N, Dh)
        k = qkv[:, inner + h * dim_head:inner + (h + 1) * dim_head] * dn
        v = qkv[:, 2 * inner + h * dim_head:2 * inner + (h + 1) * dim_head]

        qd = jnp.dot(q.astype(bf16), projt, preferred_element_type=f32)      # (N, Mpad)
        kd = jnp.dot(k.astype(bf16), projt, preferred_element_type=f32)      # (N, Mpad)
        q_diag = jnp.sum(q * q, axis=-1, keepdims=True) * 0.5
        k_diag = jnp.sum(k * k, axis=-1, keepdims=True) * 0.5

        # softmax_kernel (matches the reference exactly on the real features):
        #   query: ratio * (exp(qd - diag - rowmax(qd)) + eps)
        #   key  : ratio *  exp(kd - diag + eps)
        row_max = jnp.max(jnp.where(real_row, qd, NEG_INF), axis=-1, keepdims=True)
        e_q = jnp.exp(jnp.where(real_row, qd - q_diag - row_max, NEG_INF))
        qp = jnp.where(real_row, ratio * (e_q + PERFORMER_EPS), 0.0)          # (N, Mpad)
        kp = jnp.where(real_row, ratio * jnp.exp(kd - k_diag + PERFORMER_EPS), 0.0)

        # linear_attention (exact denominator for parity with the reference)
        k_cum = jnp.sum(kp, axis=0, keepdims=True)                            # (1, Mpad)
        denom = jnp.sum(qp * k_cum, axis=-1, keepdims=True) + 1e-8            # (N, 1)

        # context^T = v^T @ kp  -> only the small v / fixed-size ctx_t get transposed,
        # never the (N, Mpad) kp.
        ctx_t = lax.dot_general(v.astype(bf16), kp.astype(bf16),
                                (((0,), (0,)), ((), ())),
                                preferred_element_type=f32)                   # (Dh, Mpad)
        out_un = lax.dot_general(qp.astype(bf16), ctx_t.astype(bf16),
                                 (((1,), (1,)), ((), ())),
                                 preferred_element_type=f32)                  # (N, Dh)
        attn_o_ref[:, h * dim_head:(h + 1) * dim_head] = out_un / denom

    # single full-contraction output projection + fused residual
    o_attn = jnp.dot(attn_o_ref[...].astype(bf16), wo_ref[...],
                     preferred_element_type=f32) + vecd_ref[2:3, :]
    x1 = x + o_attn

    # ---------------- conformer conv branch ----------------
    xn2 = _layernorm(x1, vecd_ref[3:4, :], vecd_ref[4:5, :])
    xn2b = xn2.astype(bf16)
    a = jnp.dot(xn2b, wa_ref[...], preferred_element_type=f32) + veci_ref[0:1, :]
    g = jnp.dot(xn2b, wg_ref[...], preferred_element_type=f32) + veci_ref[1:2, :]
    u = a * jax.nn.sigmoid(g)                                  # GLU, (N, I)

    # depthwise conv along time, kernel 31, symmetric zero pad:
    # stage u in a zero-padded VMEM scratch, then 31 unmasked FMAs (no rolls, no masks).
    upad_ref[0:pad, :] = jnp.zeros((pad, inner_conv), f32)
    upad_ref[pad + n_rows:pad + n_rows + pad, :] = jnp.zeros((pad, inner_conv), f32)
    upad_ref[pad:pad + n_rows, :] = u

    wdw = wdw_ref[...]                                         # (K, I) f32
    acc = jnp.zeros((n_rows, inner_conv), f32)
    for t in range(ksize):                                     # static unrolled taps
        acc = acc + upad_ref[t:t + n_rows, :] * wdw[t:t + 1, :]
    acc = acc + veci_ref[2:3, :]

    y = acc * jax.nn.sigmoid(acc)                              # SiLU
    out2 = jnp.dot(y.astype(bf16), w2_ref[...],
                   preferred_element_type=f32) + vecd_ref[5:6, :]
    o_ref[0] = x1 + out2                                       # fused residual add


def encoder_layer(x, p, num_heads):
    B, N, D = x.shape
    inner = num_heads * DIM_HEAD
    ksize, inner_conv = p["w_dw"].shape
    pad = ksize // 2
    kern = functools.partial(
        _layer_kernel, num_heads=num_heads, dim_head=DIM_HEAD,
        nb_features=NB_FEATURES, n_rows=N, inner=inner,
        inner_conv=inner_conv, ksize=ksize, pad=pad)
    return pl.pallas_call(
        kern,
        out_shape=jax.ShapeDtypeStruct((B, N, D), jnp.float32),
        grid=(B,),
        in_specs=[
            pl.BlockSpec((1, N, D), lambda b: (b, 0, 0)),          # x
            pl.BlockSpec((6, D), lambda b: (0, 0)),                # packed D-width vectors
            pl.BlockSpec((D, 3 * inner), lambda b: (0, 0)),        # wqkv_t  (bf16)
            pl.BlockSpec((1, 3 * inner), lambda b: (0, 0)),        # bqkv
            pl.BlockSpec((DIM_HEAD, M_PAD), lambda b: (0, 0)),     # proj_t  (bf16)
            pl.BlockSpec((inner, D), lambda b: (0, 0)),            # wo_t    (bf16)
            pl.BlockSpec((D, inner_conv), lambda b: (0, 0)),       # wa_t    (bf16)
            pl.BlockSpec((D, inner_conv), lambda b: (0, 0)),       # wg_t    (bf16)
            pl.BlockSpec((3, inner_conv), lambda b: (0, 0)),       # packed I-width vectors
            pl.BlockSpec((ksize, inner_conv), lambda b: (0, 0)),   # w_dw    (f32, VPU)
            pl.BlockSpec((inner_conv, D), lambda b: (0, 0)),       # w2_t    (bf16)
        ],
        out_specs=pl.BlockSpec((1, N, D), lambda b: (b, 0, 0)),
        scratch_shapes=[
            pltpu.VMEM((N, inner), jnp.float32),                   # per-head attn outputs
            pltpu.VMEM((N + 2 * pad, inner_conv), jnp.float32),    # zero-padded conv stage
        ],
        compiler_params=pltpu.CompilerParams(dimension_semantics=("parallel",)),
    )(x, p["vecD"], p["wqkv_t"], p["bqkv"], p["proj_t"], p["wo_t"],
      p["wa_t"], p["wg_t"], p["vecI"], p["w_dw"], p["w2_t"])


# ----------------------------------------------------------------------------
# Deterministic parameter setup (matches __init__ shapes; synthetic values)
# ----------------------------------------------------------------------------

def _orthogonal_matrix_chunk(key, cols):
    block = jax.random.normal(key, (cols, cols), jnp.float32)
    q, _ = jnp.linalg.qr(block)
    return q.T


def gaussian_orthogonal_random_matrix(key, nb_rows, nb_cols):
    nb_full = nb_rows // nb_cols
    keys = jax.random.split(key, nb_full + 2)
    blocks = [_orthogonal_matrix_chunk(keys[i], nb_cols) for i in range(nb_full)]
    remaining = nb_rows - nb_full * nb_cols
    if remaining > 0:
        blocks.append(_orthogonal_matrix_chunk(keys[nb_full], nb_cols)[:remaining])
    final = jnp.concatenate(blocks, axis=0)
    multiplier = jnp.linalg.norm(
        jax.random.normal(keys[-1], (nb_rows, nb_cols), jnp.float32), axis=1)
    return multiplier[:, None] * final


def _init_linear(key, out_f, in_f):
    bound = 1.0 / math.sqrt(in_f)
    kw, kb = jax.random.split(key)
    w = jax.random.uniform(kw, (out_f, in_f), jnp.float32, -bound, bound)
    b = jax.random.uniform(kb, (out_f,), jnp.float32, -bound, bound)
    return w, b


def init_layer_params(key, dim_model, num_heads):
    inner = DIM_HEAD * num_heads
    inner_conv = dim_model * CONV_EXPANSION
    keys = jax.random.split(key, 9)

    wq, bq = _init_linear(keys[0], inner, dim_model)
    wk, bk = _init_linear(keys[1], inner, dim_model)
    wv, bv = _init_linear(keys[2], inner, dim_model)
    wo, bo = _init_linear(keys[3], dim_model, inner)
    proj = gaussian_orthogonal_random_matrix(keys[4], NB_FEATURES, DIM_HEAD)
    proj_pad = jnp.zeros((M_PAD, DIM_HEAD), jnp.float32).at[:NB_FEATURES].set(proj)

    # ConformerConvModule params
    wa, ba = _init_linear(keys[5], inner_conv, dim_model)    # first half of Conv1d(D, 2I, 1)
    wg, bg = _init_linear(keys[6], inner_conv, dim_model)    # gate half
    bound = 1.0 / math.sqrt(CONV_KSIZE)                      # depthwise fan_in = 1*K
    kdw1, kdw2 = jax.random.split(keys[7])
    w_dw = jax.random.uniform(kdw1, (CONV_KSIZE, inner_conv), jnp.float32, -bound, bound)
    b_dw = jax.random.uniform(kdw2, (inner_conv,), jnp.float32, -bound, bound)
    w2, b2 = _init_linear(keys[8], dim_model, inner_conv)    # Conv1d(I, D, 1)

    ones_d = jnp.ones((dim_model,), jnp.float32)
    zeros_d = jnp.zeros((dim_model,), jnp.float32)
    # packed vectors: rows = [attn ln_g, attn ln_b, b_out, conv ln_g, conv ln_b, b2]
    vecD = jnp.stack([ones_d, zeros_d, bo, ones_d, zeros_d, b2], axis=0)
    # rows = [b_a, b_g, b_dw]
    vecI = jnp.stack([ba, bg, b_dw], axis=0)

    return {
        "vecD": vecD,                                                       # (6, D) f32
        "vecI": vecI,                                                       # (3, I) f32
        "wqkv_t": jnp.concatenate([wq, wk, wv], axis=0).T.astype(jnp.bfloat16),  # (D, 3*inner)
        "bqkv": jnp.concatenate([bq, bk, bv]).reshape(1, 3 * inner),        # f32
        "proj_t": proj_pad.T.astype(jnp.bfloat16),                          # (Dh, Mpad)
        "wo_t": wo.T.astype(jnp.bfloat16),                                  # (inner, D)
        "wa_t": wa.T.astype(jnp.bfloat16),                                  # (D, I)
        "wg_t": wg.T.astype(jnp.bfloat16),                                  # (D, I)
        "w_dw": w_dw,                                                       # (K, I) f32
        "w2_t": w2.T.astype(jnp.bfloat16),                                  # (I, D)
    }


# ----------------------------------------------------------------------------
# Forward pass: ONE fused pallas_call per layer, both residuals fused inside.
# ----------------------------------------------------------------------------

def encoder_forward(x, layers, num_heads):
    for p in layers:
        x = encoder_layer(x, p, num_heads)   # x = x + attn(norm(x)); x = x + conformer(x)
    return x


if __name__ == "__main__":
    key = jax.random.PRNGKey(0)
    B, N, D = 2, 16, 32           # (#batch, length, dim_model)
    num_layers, num_heads = 2, 2

    k_in, k_params = jax.random.split(key)
    x = jax.random.normal(k_in, (B, N, D), jnp.float32)
    layer_keys = jax.random.split(k_params, num_layers)
    layers = [init_layer_params(layer_keys[i], D, num_heads)
              for i in range(num_layers)]

    fwd = jax.jit(encoder_forward, static_argnums=(2,))
    out = jax.block_until_ready(fwd(x, layers, num_heads))
    assert out.shape == (B, N, D)
    assert bool(jnp.all(jnp.isfinite(out)))
    print("KERNEL_OK")
</pallas_src>

<mosaic_0001>
module attributes {stable_mosaic.version = 11 : i64} {
  func.func @_layer_kernel(%arg0: i32, %arg1: memref<1x16x32xf32, #tpu.memory_space<vmem>>, %arg2: memref<6x32xf32, #tpu.memory_space<vmem>>, %arg3: memref<32x384xbf16, #tpu.memory_space<vmem>>, %arg4: memref<1x384xf32, #tpu.memory_space<vmem>>, %arg5: memref<64x384xbf16, #tpu.memory_space<vmem>>, %arg6: memref<128x32xbf16, #tpu.memory_space<vmem>>, %arg7: memref<32x64xbf16, #tpu.memory_space<vmem>>, %arg8: memref<32x64xbf16, #tpu.memory_space<vmem>>, %arg9: memref<3x64xf32, #tpu.memory_space<vmem>>, %arg10: memref<31x64xf32, #tpu.memory_space<vmem>>, %arg11: memref<64x32xbf16, #tpu.memory_space<vmem>>, %arg12: memref<1x16x32xf32, #tpu.memory_space<vmem>>, %arg13: memref<16x128xf32, #tpu.memory_space<vmem>>, %arg14: memref<46x64xf32, #tpu.memory_space<vmem>>) attributes {dimension_semantics = [#tpu.dimension_semantics<parallel>], iteration_bounds = array<i64: 2>, scalar_prefetch = 0 : i64, scratch_operands = 2 : i64, tpu.core_type = #tpu.core_type<tc>, window_params = [{transform_indices = @transform_0, window_bounds = array<i64: 1, 16, 32>}, {pipeline_mode = #tpu.pipeline_mode<synchronous>, transform_indices = @transform_1, window_bounds = array<i64: 6, 32>}, {pipeline_mode = #tpu.pipeline_mode<synchronous>, transform_indices = @transform_2, window_bounds = array<i64: 32, 384>}, {pipeline_mode = #tpu.pipeline_mode<synchronous>, transform_indices = @transform_3, window_bounds = array<i64: 1, 384>}, {pipeline_mode = #tpu.pipeline_mode<synchronous>, transform_indices = @transform_4, window_bounds = array<i64: 64, 384>}, {pipeline_mode = #tpu.pipeline_mode<synchronous>, transform_indices = @transform_5, window_bounds = array<i64: 128, 32>}, {pipeline_mode = #tpu.pipeline_mode<synchronous>, transform_indices = @transform_6, window_bounds = array<i64: 32, 64>}, {pipeline_mode = #tpu.pipeline_mode<synchronous>, transform_indices = @transform_7, window_bounds = array<i64: 32, 64>}, {pipeline_mode = #tpu.pipeline_mode<synchronous>, transform_indices = @transform_8, window_bounds = array<i64: 3, 64>}, {pipeline_mode = #tpu.pipeline_mode<synchronous>, transform_indices = @transform_9, window_bounds = array<i64: 31, 64>}, {pipeline_mode = #tpu.pipeline_mode<synchronous>, transform_indices = @transform_10, window_bounds = array<i64: 64, 32>}, {transform_indices = @transform_11, window_bounds = array<i64: 1, 16, 32>}]} {
    %c0 = arith.constant 0 : index
    %c0_0 = arith.constant 0 : index
    %c0_1 = arith.constant 0 : index
    %0 = vector.load %arg1[%c0, %c0_0, %c0_1] : memref<1x16x32xf32, #tpu.memory_space<vmem>>, vector<1x16x32xf32>
    %1 = vector.shape_cast %0 : vector<1x16x32xf32> to vector<16x32xf32>
    %c0_2 = arith.constant 0 : index
    %c0_3 = arith.constant 0 : index
    %2 = vector.load %arg2[%c0_2, %c0_3] : memref<6x32xf32, #tpu.memory_space<vmem>>, vector<1x32xf32>
    %c1 = arith.constant 1 : index
    %c0_4 = arith.constant 0 : index
    %3 = vector.load %arg2[%c1, %c0_4] : memref<6x32xf32, #tpu.memory_space<vmem>>, vector<1x32xf32>
    %cst = arith.constant dense<0.000000e+00> : vector<16xf32>
    %4 = vector.multi_reduction <add>, %1, %cst [1] : vector<16x32xf32> to vector<16xf32>
    %5 = vector.shape_cast %4 : vector<16xf32> to vector<16x1xf32>
    %cst_5 = arith.constant 3.200000e+01 : f32
    %6 = vector.broadcast %cst_5 : f32 to vector<16x1xf32>
    %7 = arith.divf %5, %6 : vector<16x1xf32>
    %8 = vector.broadcast %7 : vector<16x1xf32> to vector<16x32xf32>
    %9 = arith.subf %1, %8 : vector<16x32xf32>
    %10 = arith.mulf %9, %9 : vector<16x32xf32>
    %cst_6 = arith.constant dense<0.000000e+00> : vector<16xf32>
    %11 = vector.multi_reduction <add>, %10, %cst_6 [1] : vector<16x32xf32> to vector<16xf32>
    %12 = vector.shape_cast %11 : vector<16xf32> to vector<16x1xf32>
    %cst_7 = arith.constant 3.200000e+01 : f32
    %13 = vector.broadcast %cst_7 : f32 to vector<16x1xf32>
    %14 = arith.divf %12, %13 : vector<16x1xf32>
    %15 = vector.broadcast %7 : vector<16x1xf32> to vector<16x32xf32>
    %16 = arith.subf %1, %15 : vector<16x32xf32>
    %cst_8 = arith.constant 9.99999974E-6 : f32
    %17 = vector.broadcast %cst_8 : f32 to vector<16x1xf32>
    %18 = arith.addf %14, %17 : vector<16x1xf32>
    %19 = math.rsqrt %18 : vector<16x1xf32>
    %20 = vector.broadcast %19 : vector<16x1xf32> to vector<16x32xf32>
    %21 = arith.mulf %16, %20 : vector<16x32xf32>
    %22 = vector.broadcast %2 : vector<1x32xf32> to vector<16x32xf32>
    %23 = arith.mulf %21, %22 : vector<16x32xf32>
    %24 = vector.broadcast %3 : vector<1x32xf32> to vector<16x32xf32>
    %25 = arith.addf %23, %24 : vector<16x32xf32>
    %26 = arith.truncf %25 : vector<16x32xf32> to vector<16x32xbf16>
    %c0_9 = arith.constant 0 : index
    %c0_10 = arith.constant 0 : index
    %27 = vector.load %arg3[%c0_9, %c0_10] : memref<32x384xbf16, #tpu.memory_space<vmem>>, vector<32x384xbf16>
    %cst_11 = arith.constant dense<0.000000e+00> : vector<16x384xf32>
    %28 = tpu.matmul %26, %27, %cst_11 {dimension_numbers = #tpu.dot_dimension_numbers<[1], [0], [0], [1], [0, 0, 1, 1], [], []>} : vector<16x32xbf16>, vector<32x384xbf16>, vector<16x384xf32> -> vector<16x384xf32>
    %c0_12 = arith.constant 0 : index
    %c0_13 = arith.constant 0 : index
    %29 = vector.load %arg4[%c0_12, %c0_13] : memref<1x384xf32, #tpu.memory_space<vmem>>, vector<1x384xf32>
    %30 = vector.broadcast %29 : vector<1x384xf32> to vector<16x384xf32>
    %31 = arith.addf %28, %30 : vector<16x384xf32>
    %c0_14 = arith.constant 0 : index
    %c0_15 = arith.constant 0 : index
    %32 = vector.load %arg5[%c0_14, %c0_15] : memref<64x384xbf16, #tpu.memory_space<vmem>>, vector<64x384xbf16>
    %33 = tpu.iota {dimensions = array<i32: 1>} : vector<1x384xi32>
    %c266_i32 = arith.constant 266 : i32
    %34 = vector.broadcast %c266_i32 : i32 to vector<1x384xi32>
    %35 = arith.cmpi slt, %33, %34 : vector<1x384xi32>
    %36 = vector.extract_strided_slice %31 {offsets = [0, 0], sizes = [16, 64], strides = [1, 1]} : vector<16x384xf32> to vector<16x64xf32>
    %cst_16 = arith.constant 0.353553385 : f32
    %37 = vector.broadcast %cst_16 : f32 to vector<16x64xf32>
    %38 = arith.mulf %36, %37 : vector<16x64xf32>
    %39 = vector.extract_strided_slice %31 {offsets = [0, 128], sizes = [16, 64], strides = [1, 1]} : vector<16x384xf32> to vector<16x64xf32>
    %cst_17 = arith.constant 0.353553385 : f32
    %40 = vector.broadcast %cst_17 : f32 to vector<16x64xf32>
    %41 = arith.mulf %39, %40 : vector<16x64xf32>
    %42 = vector.extract_strided_slice %31 {offsets = [0, 256], sizes = [16, 64], strides = [1, 1]} : vector<16x384xf32> to vector<16x64xf32>
    %43 = arith.truncf %38 : vector<16x64xf32> to vector<16x64xbf16>
    %cst_18 = arith.constant dense<0.000000e+00> : vector<16x384xf32>
    %44 = tpu.matmul %43, %32, %cst_18 {dimension_numbers = #tpu.dot_dimension_numbers<[1], [0], [0], [1], [0, 0, 1, 1], [], []>} : vector<16x64xbf16>, vector<64x384xbf16>, vector<16x384xf32> -> vector<16x384xf32>
    %45 = arith.truncf %41 : vector<16x64xf32> to vector<16x64xbf16>
    %cst_19 = arith.constant dense<0.000000e+00> : vector<16x384xf32>
    %46 = tpu.matmul %45, %32, %cst_19 {dimension_numbers = #tpu.dot_dimension_numbers<[1], [0], [0], [1], [0, 0, 1, 1], [], []>} : vector<16x64xbf16>, vector<64x384xbf16>, vector<16x384xf32> -> vector<16x384xf32>
    %47 = arith.mulf %38, %38 : vector<16x64xf32>
    %cst_20 = arith.constant dense<0.000000e+00> : vector<16xf32>
    %48 = vector.multi_reduction <add>, %47, %cst_20 [1] : vector<16x64xf32> to vector<16xf32>
    %49 = vector.shape_cast %48 : vector<16xf32> to vector<16x1xf32>
    %cst_21 = arith.constant 5.000000e-01 : f32
    %50 = vector.broadcast %cst_21 : f32 to vector<16x1xf32>
    %51 = arith.mulf %49, %50 : vector<16x1xf32>
    %52 = arith.mulf %41, %41 : vector<16x64xf32>
    %cst_22 = arith.constant dense<0.000000e+00> : vector<16xf32>
    %53 = vector.multi_reduction <add>, %52, %cst_22 [1] : vector<16x64xf32> to vector<16xf32>
    %54 = vector.shape_cast %53 : vector<16xf32> to vector<16x1xf32>
    %cst_23 = arith.constant 5.000000e-01 : f32
    %55 = vector.broadcast %cst_23 : f32 to vector<16x1xf32>
    %56 = arith.mulf %54, %55 : vector<16x1xf32>
    %cst_24 = arith.constant -1.000000e+30 : f32
    %57 = vector.shape_cast %35 : vector<1x384xi1> to vector<1x384xi1>
    %58 = vector.broadcast %57 : vector<1x384xi1> to vector<16x384xi1>
    %59 = vector.broadcast %cst_24 : f32 to vector<16x384xf32>
    %60 = arith.select %58, %44, %59 : vector<16x384xi1>, vector<16x384xf32>
    %cst_25 = arith.constant dense<0xFF800000> : vector<16xf32>
    %61 = vector.multi_reduction <maximumf>, %60, %cst_25 [1] : vector<16x384xf32> to vector<16xf32>
    %62 = vector.shape_cast %61 : vector<16xf32> to vector<16x1xf32>
    %63 = vector.broadcast %51 : vector<16x1xf32> to vector<16x384xf32>
    %64 = arith.subf %44, %63 : vector<16x384xf32>
    %65 = vector.broadcast %62 : vector<16x1xf32> to vector<16x384xf32>
    %66 = arith.subf %64, %65 : vector<16x384xf32>
    %cst_26 = arith.constant -1.000000e+30 : f32
    %67 = vector.shape_cast %35 : vector<1x384xi1> to vector<1x384xi1>
    %68 = vector.broadcast %67 : vector<1x384xi1> to vector<16x384xi1>
    %69 = vector.broadcast %cst_26 : f32 to vector<16x384xf32>
    %70 = arith.select %68, %66, %69 : vector<16x384xi1>, vector<16x384xf32>
    %71 = math.exp %70 : vector<16x384xf32>
    %cst_27 = arith.constant 9.99999974E-5 : f32
    %72 = vector.broadcast %cst_27 : f32 to vector<16x384xf32>
    %73 = arith.addf %71, %72 : vector<16x384xf32>
    %cst_28 = arith.constant 0.0613139346 : f32
    %74 = vector.broadcast %cst_28 : f32 to vector<16x384xf32>
    %75 = arith.mulf %74, %73 : vector<16x384xf32>
    %cst_29 = arith.constant 0.000000e+00 : f32
    %76 = vector.shape_cast %35 : vector<1x384xi1> to vector<1x384xi1>
    %77 = vector.broadcast %76 : vector<1x384xi1> to vector<16x384xi1>
    %78 = vector.broadcast %cst_29 : f32 to vector<16x384xf32>
    %79 = arith.select %77, %75, %78 : vector<16x384xi1>, vector<16x384xf32>
    %80 = vector.broadcast %56 : vector<16x1xf32> to vector<16x384xf32>
    %81 = arith.subf %46, %80 : vector<16x384xf32>
    %cst_30 = arith.constant 9.99999974E-5 : f32
    %82 = vector.broadcast %cst_30 : f32 to vector<16x384xf32>
    %83 = arith.addf %81, %82 : vector<16x384xf32>
    %84 = math.exp %83 : vector<16x384xf32>
    %cst_31 = arith.constant 0.0613139346 : f32
    %85 = vector.broadcast %cst_31 : f32 to vector<16x384xf32>
    %86 = arith.mulf %85, %84 : vector<16x384xf32>
    %cst_32 = arith.constant 0.000000e+00 : f32
    %87 = vector.shape_cast %35 : vector<1x384xi1> to vector<1x384xi1>
    %88 = vector.broadcast %87 : vector<1x384xi1> to vector<16x384xi1>
    %89 = vector.broadcast %cst_32 : f32 to vector<16x384xf32>
    %90 = arith.select %88, %86, %89 : vector<16x384xi1>, vector<16x384xf32>
    %cst_33 = arith.constant dense<0.000000e+00> : vector<384xf32>
    %91 = vector.multi_reduction <add>, %90, %cst_33 [0] : vector<16x384xf32> to vector<384xf32>
    %92 = vector.shape_cast %91 : vector<384xf32> to vector<1x384xf32>
    %93 = vector.broadcast %92 : vector<1x384xf32> to vector<16x384xf32>
    %94 = arith.mulf %79, %93 : vector<16x384xf32>
    %cst_34 = arith.constant dense<0.000000e+00> : vector<16xf32>
    %95 = vector.multi_reduction <add>, %94, %cst_34 [1] : vector<16x384xf32> to vector<16xf32>
    %96 = vector.shape_cast %95 : vector<16xf32> to vector<16x1xf32>
    %cst_35 = arith.constant 9.99999993E-9 : f32
    %97 = vector.broadcast %cst_35 : f32 to vector<16x1xf32>
    %98 = arith.addf %96, %97 : vector<16x1xf32>
    %99 = arith.truncf %42 : vector<16x64xf32> to vector<16x64xbf16>
    %100 = arith.truncf %90 : vector<16x384xf32> to vector<16x384xbf16>
    %cst_36 = arith.constant dense<0.000000e+00> : vector<64x384xf32>
    %101 = tpu.matmul %99, %100, %cst_36 {dimension_numbers = #tpu.dot_dimension_numbers<[0], [0], [1], [1], [0, 1, 1, 1], [], []>} : vector<16x64xbf16>, vector<16x384xbf16>, vector<64x384xf32> -> vector<64x384xf32>
    %102 = arith.truncf %79 : vector<16x384xf32> to vector<16x384xbf16>
    %103 = arith.truncf %101 : vector<64x384xf32> to vector<64x384xbf16>
    %cst_37 = arith.constant dense<0.000000e+00> : vector<16x64xf32>
    %104 = tpu.matmul %102, %103, %cst_37 {dimension_numbers = #tpu.dot_dimension_numbers<[1], [1], [0], [0], [0, 0, 1, 0], [], []>} : vector<16x384xbf16>, vector<64x384xbf16>, vector<16x64xf32> -> vector<16x64xf32>
    %105 = vector.broadcast %98 : vector<16x1xf32> to vector<16x64xf32>
    %106 = arith.divf %104, %105 : vector<16x64xf32>
    %c0_38 = arith.constant 0 : index
    %c0_39 = arith.constant 0 : index
    %107 = vector.load %arg13[%c0_38, %c0_39] : memref<16x128xf32, #tpu.memory_space<vmem>>, vector<16x64xf32>
    tpu.vector_store %arg13[%c0_38, %c0_39], %106 {strides = array<i32>} : memref<16x128xf32, #tpu.memory_space<vmem>>, vector<16x64xf32>,
    %108 = vector.extract_strided_slice %31 {offsets = [0, 64], sizes = [16, 64], strides = [1, 1]} : vector<16x384xf32> to vector<16x64xf32>
    %cst_40 = arith.constant 0.353553385 : f32
    %109 = vector.broadcast %cst_40 : f32 to vector<16x64xf32>
    %110 = arith.mulf %108, %109 : vector<16x64xf32>
    %111 = vector.extract_strided_slice %31 {offsets = [0, 192], sizes = [16, 64], strides = [1, 1]} : vector<16x384xf32> to vector<16x64xf32>
    %cst_41 = arith.constant 0.353553385 : f32
    %112 = vector.broadcast %cst_41 : f32 to vector<16x64xf32>
    %113 = arith.mulf %111, %112 : vector<16x64xf32>
    %114 = vector.extract_strided_slice %31 {offsets = [0, 320], sizes = [16, 64], strides = [1, 1]} : vector<16x384xf32> to vector<16x64xf32>
    %115 = arith.truncf %110 : vector<16x64xf32> to vector<16x64xbf16>
    %cst_42 = arith.constant dense<0.000000e+00> : vector<16x384xf32>
    %116 = tpu.matmul %115, %32, %cst_42 {dimension_numbers = #tpu.dot_dimension_numbers<[1], [0], [0], [1], [0, 0, 1, 1], [], []>} : vector<16x64xbf16>, vector<64x384xbf16>, vector<16x384xf32> -> vector<16x384xf32>
    %117 = arith.truncf %113 : vector<16x64xf32> to vector<16x64xbf16>
    %cst_43 = arith.constant dense<0.000000e+00> : vector<16x384xf32>
    %118 = tpu.matmul %117, %32, %cst_43 {dimension_numbers = #tpu.dot_dimension_numbers<[1], [0], [0], [1], [0, 0, 1, 1], [], []>} : vector<16x64xbf16>, vector<64x384xbf16>, vector<16x384xf32> -> vector<16x384xf32>
    %119 = arith.mulf %110, %110 : vector<16x64xf32>
    %cst_44 = arith.constant dense<0.000000e+00> : vector<16xf32>
    %120 = vector.multi_reduction <add>, %119, %cst_44 [1] : vector<16x64xf32> to vector<16xf32>
    %121 = vector.shape_cast %120 : vector<16xf32> to vector<16x1xf32>
    %cst_45 = arith.constant 5.000000e-01 : f32
    %122 = vector.broadcast %cst_45 : f32 to vector<16x1xf32>
    %123 = arith.mulf %121, %122 : vector<16x1xf32>
    %124 = arith.mulf %113, %113 : vector<16x64xf32>
    %cst_46 = arith.constant dense<0.000000e+00> : vector<16xf32>
    %125 = vector.multi_reduction <add>, %124, %cst_46 [1] : vector<16x64xf32> to vector<16xf32>
    %126 = vector.shape_cast %125 : vector<16xf32> to vector<16x1xf32>
    %cst_47 = arith.constant 5.000000e-01 : f32
    %127 = vector.broadcast %cst_47 : f32 to vector<16x1xf32>
    %128 = arith.mulf %126, %127 : vector<16x1xf32>
    %cst_48 = arith.constant -1.000000e+30 : f32
    %129 = vector.shape_cast %35 : vector<1x384xi1> to vector<1x384xi1>
    %130 = vector.broadcast %129 : vector<1x384xi1> to vector<16x384xi1>
    %131 = vector.broadcast %cst_48 : f32 to vector<16x384xf32>
    %132 = arith.select %130, %116, %131 : vector<16x384xi1>, vector<16x384xf32>
    %cst_49 = arith.constant dense<0xFF800000> : vector<16xf32>
    %133 = vector.multi_reduction <maximumf>, %132, %cst_49 [1] : vector<16x384xf32> to vector<16xf32>
    %134 = vector.shape_cast %133 : vector<16xf32> to vector<16x1xf32>
    %135 = vector.broadcast %123 : vector<16x1xf32> to vector<16x384xf32>
    %136 = arith.subf %116, %135 : vector<16x384xf32>
    %137 = vector.broadcast %134 : vector<16x1xf32> to vector<16x384xf32>
    %138 = arith.subf %136, %137 : vector<16x384xf32>
    %cst_50 = arith.constant -1.000000e+30 : f32
    %139 = vector.shape_cast %35 : vector<1x384xi1> to vector<1x384xi1>
    %140 = vector.broadcast %139 : vector<1x384xi1> to vector<16x384xi1>
    %141 = vector.broadcast %cst_50 : f32 to vector<16x384xf32>
    %142 = arith.select %140, %138, %141 : vector<16x384xi1>, vector<16x384xf32>
    %143 = math.exp %142 : vector<16x384xf32>
    %cst_51 = arith.constant 9.99999974E-5 : f32
    %144 = vector.broadcast %cst_51 : f32 to vector<16x384xf32>
    %145 = arith.addf %143, %144 : vector<16x384xf32>
    %cst_52 = arith.constant 0.0613139346 : f32
    %146 = vector.broadcast %cst_52 : f32 to vector<16x384xf32>
    %147 = arith.mulf %146, %145 : vector<16x384xf32>
    %cst_53 = arith.constant 0.000000e+00 : f32
    %148 = vector.shape_cast %35 : vector<1x384xi1> to vector<1x384xi1>
    %149 = vector.broadcast %148 : vector<1x384xi1> to vector<16x384xi1>
    %150 = vector.broadcast %cst_53 : f32 to vector<16x384xf32>
    %151 = arith.select %149, %147, %150 : vector<16x384xi1>, vector<16x384xf32>
    %152 = vector.broadcast %128 : vector<16x1xf32> to vector<16x384xf32>
    %153 = arith.subf %118, %152 : vector<16x384xf32>
    %cst_54 = arith.constant 9.99999974E-5 : f32
    %154 = vector.broadcast %cst_54 : f32 to vector<16x384xf32>
    %155 = arith.addf %153, %154 : vector<16x384xf32>
    %156 = math.exp %155 : vector<16x384xf32>
    %cst_55 = arith.constant 0.0613139346 : f32
    %157 = vector.broadcast %cst_55 : f32 to vector<16x384xf32>
    %158 = arith.mulf %157, %156 : vector<16x384xf32>
    %cst_56 = arith.constant 0.000000e+00 : f32
    %159 = vector.shape_cast %35 : vector<1x384xi1> to vector<1x384xi1>
    %160 = vector.broadcast %159 : vector<1x384xi1> to vector<16x384xi1>
    %161 = vector.broadcast %cst_56 : f32 to vector<16x384xf32>
    %162 = arith.select %160, %158, %161 : vector<16x384xi1>, vector<16x384xf32>
    %cst_57 = arith.constant dense<0.000000e+00> : vector<384xf32>
    %163 = vector.multi_reduction <add>, %162, %cst_57 [0] : vector<16x384xf32> to vector<384xf32>
    %164 = vector.shape_cast %163 : vector<384xf32> to vector<1x384xf32>
    %165 = vector.broadcast %164 : vector<1x384xf32> to vector<16x384xf32>
    %166 = arith.mulf %151, %165 : vector<16x384xf32>
    %cst_58 = arith.constant dense<0.000000e+00> : vector<16xf32>
    %167 = vector.multi_reduction <add>, %166, %cst_58 [1] : vector<16x384xf32> to vector<16xf32>
    %168 = vector.shape_cast %167 : vector<16xf32> to vector<16x1xf32>
    %cst_59 = arith.constant 9.99999993E-9 : f32
    %169 = vector.broadcast %cst_59 : f32 to vector<16x1xf32>
    %170 = arith.addf %168, %169 : vector<16x1xf32>
    %171 = arith.truncf %114 : vector<16x64xf32> to vector<16x64xbf16>
    %172 = arith.truncf %162 : vector<16x384xf32> to vector<16x384xbf16>
    %cst_60 = arith.constant dense<0.000000e+00> : vector<64x384xf32>
    %173 = tpu.matmul %171, %172, %cst_60 {dimension_numbers = #tpu.dot_dimension_numbers<[0], [0], [1], [1], [0, 1, 1, 1], [], []>} : vector<16x64xbf16>, vector<16x384xbf16>, vector<64x384xf32> -> vector<64x384xf32>
    %174 = arith.truncf %151 : vector<16x384xf32> to vector<16x384xbf16>
    %175 = arith.truncf %173 : vector<64x384xf32> to vector<64x384xbf16>
    %cst_61 = arith.constant dense<0.000000e+00> : vector<16x64xf32>
    %176 = tpu.matmul %174, %175, %cst_61 {dimension_numbers = #tpu.dot_dimension_numbers<[1], [1], [0], [0], [0, 0, 1, 0], [], []>} : vector<16x384xbf16>, vector<64x384xbf16>, vector<16x64xf32> -> vector<16x64xf32>
    %177 = vector.broadcast %170 : vector<16x1xf32> to vector<16x64xf32>
    %178 = arith.divf %176, %177 : vector<16x64xf32>
    %c0_62 = arith.constant 0 : index
    %c64 = arith.constant 64 : index
    %179 = vector.load %arg13[%c0_62, %c64] : memref<16x128xf32, #tpu.memory_space<vmem>>, vector<16x64xf32>
    tpu.vector_store %arg13[%c0_62, %c64], %178 {strides = array<i32>} : memref<16x128xf32, #tpu.memory_space<vmem>>, vector<16x64xf32>,
    %c0_63 = arith.constant 0 : index
    %c0_64 = arith.constant 0 : index
    %180 = vector.load %arg13[%c0_63, %c0_64] : memref<16x128xf32, #tpu.memory_space<vmem>>, vector<16x128xf32>
    %181 = arith.truncf %180 : vector<16x128xf32> to vector<16x128xbf16>
    %c0_65 = arith.constant 0 : index
    %c0_66 = arith.constant 0 : index
    %182 = vector.load %arg6[%c0_65, %c0_66] : memref<128x32xbf16, #tpu.memory_space<vmem>>, vector<128x32xbf16>
    %cst_67 = arith.constant dense<0.000000e+00> : vector<16x32xf32>
    %183 = tpu.matmul %181, %182, %cst_67 {dimension_numbers = #tpu.dot_dimension_numbers<[1], [0], [0], [1], [0, 0, 1, 1], [], []>} : vector<16x128xbf16>, vector<128x32xbf16>, vector<16x32xf32> -> vector<16x32xf32>
    %c2 = arith.constant 2 : index
    %c0_68 = arith.constant 0 : index
    %184 = vector.load %arg2[%c2, %c0_68] : memref<6x32xf32, #tpu.memory_space<vmem>>, vector<1x32xf32>
    %185 = vector.broadcast %184 : vector<1x32xf32> to vector<16x32xf32>
    %186 = arith.addf %183, %185 : vector<16x32xf32>
    %187 = arith.addf %1, %186 : vector<16x32xf32>
    %c3 = arith.constant 3 : index
    %c0_69 = arith.constant 0 : index
    %188 = vector.load %arg2[%c3, %c0_69] : memref<6x32xf32, #tpu.memory_space<vmem>>, vector<1x32xf32>
    %c4 = arith.constant 4 : index
    %c0_70 = arith.constant 0 : index
    %189 = vector.load %arg2[%c4, %c0_70] : memref<6x32xf32, #tpu.memory_space<vmem>>, vector<1x32xf32>
    %cst_71 = arith.constant dense<0.000000e+00> : vector<16xf32>
    %190 = vector.multi_reduction <add>, %187, %cst_71 [1] : vector<16x32xf32> to vector<16xf32>
    %191 = vector.shape_cast %190 : vector<16xf32> to vector<16x1xf32>
    %cst_72 = arith.constant 3.200000e+01 : f32
    %192 = vector.broadcast %cst_72 : f32 to vector<16x1xf32>
    %193 = arith.divf %191, %192 : vector<16x1xf32>
    %194 = vector.broadcast %193 : vector<16x1xf32> to vector<16x32xf32>
    %195 = arith.subf %187, %194 : vector<16x32xf32>
    %196 = arith.mulf %195, %195 : vector<16x32xf32>
    %cst_73 = arith.constant dense<0.000000e+00> : vector<16xf32>
    %197 = vector.multi_reduction <add>, %196, %cst_73 [1] : vector<16x32xf32> to vector<16xf32>
    %198 = vector.shape_cast %197 : vector<16xf32> to vector<16x1xf32>
    %cst_74 = arith.constant 3.200000e+01 : f32
    %199 = vector.broadcast %cst_74 : f32 to vector<16x1xf32>
    %200 = arith.divf %198, %199 : vector<16x1xf32>
    %201 = vector.broadcast %193 : vector<16x1xf32> to vector<16x32xf32>
    %202 = arith.subf %187, %201 : vector<16x32xf32>
    %cst_75 = arith.constant 9.99999974E-6 : f32
    %203 = vector.broadcast %cst_75 : f32 to vector<16x1xf32>
    %204 = arith.addf %200, %203 : vector<16x1xf32>
    %205 = math.rsqrt %204 : vector<16x1xf32>
    %206 = vector.broadcast %205 : vector<16x1xf32> to vector<16x32xf32>
    %207 = arith.mulf %202, %206 : vector<16x32xf32>
    %208 = vector.broadcast %188 : vector<1x32xf32> to vector<16x32xf32>
    %209 = arith.mulf %207, %208 : vector<16x32xf32>
    %210 = vector.broadcast %189 : vector<1x32xf32> to vector<16x32xf32>
    %211 = arith.addf %209, %210 : vector<16x32xf32>
    %212 = arith.truncf %211 : vector<16x32xf32> to vector<16x32xbf16>
    %c0_76 = arith.constant 0 : index
    %c0_77 = arith.constant 0 : index
    %213 = vector.load %arg7[%c0_76, %c0_77] : memref<32x64xbf16, #tpu.memory_space<vmem>>, vector<32x64xbf16>
    %cst_78 = arith.constant dense<0.000000e+00> : vector<16x64xf32>
    %214 = tpu.matmul %212, %213, %cst_78 {dimension_numbers = #tpu.dot_dimension_numbers<[1], [0], [0], [1], [0, 0, 1, 1], [], []>} : vector<16x32xbf16>, vector<32x64xbf16>, vector<16x64xf32> -> vector<16x64xf32>
    %c0_79 = arith.constant 0 : index
    %c0_80 = arith.constant 0 : index
    %215 = vector.load %arg9[%c0_79, %c0_80] : memref<3x64xf32, #tpu.memory_space<vmem>>, vector<1x64xf32>
    %216 = vector.broadcast %215 : vector<1x64xf32> to vector<16x64xf32>
    %217 = arith.addf %214, %216 : vector<16x64xf32>
    %c0_81 = arith.constant 0 : index
    %c0_82 = arith.constant 0 : index
    %218 = vector.load %arg8[%c0_81, %c0_82] : memref<32x64xbf16, #tpu.memory_space<vmem>>, vector<32x64xbf16>
    %cst_83 = arith.constant dense<0.000000e+00> : vector<16x64xf32>
    %219 = tpu.matmul %212, %218, %cst_83 {dimension_numbers = #tpu.dot_dimension_numbers<[1], [0], [0], [1], [0, 0, 1, 1], [], []>} : vector<16x32xbf16>, vector<32x64xbf16>, vector<16x64xf32> -> vector<16x64xf32>
    %c1_84 = arith.constant 1 : index
    %c0_85 = arith.constant 0 : index
    %220 = vector.load %arg9[%c1_84, %c0_85] : memref<3x64xf32, #tpu.memory_space<vmem>>, vector<1x64xf32>
    %221 = vector.broadcast %220 : vector<1x64xf32> to vector<16x64xf32>
    %222 = arith.addf %219, %221 : vector<16x64xf32>
    %223 = arith.negf %222 : vector<16x64xf32>
    %224 = math.exp %223 : vector<16x64xf32>
    %cst_86 = arith.constant 1.000000e+00 : f32
    %225 = vector.broadcast %cst_86 : f32 to vector<16x64xf32>
    %226 = arith.addf %225, %224 : vector<16x64xf32>
    %227 = arith.divf %225, %226 : vector<16x64xf32>
    %228 = arith.mulf %217, %227 : vector<16x64xf32>
    %cst_87 = arith.constant 0.000000e+00 : f32
    %229 = vector.broadcast %cst_87 : f32 to vector<15x64xf32>
    %c0_88 = arith.constant 0 : index
    %c0_89 = arith.constant 0 : index
    %230 = vector.load %arg14[%c0_88, %c0_89] : memref<46x64xf32, #tpu.memory_space<vmem>>, vector<15x64xf32>
    tpu.vector_store %arg14[%c0_88, %c0_89], %229 {strides = array<i32>} : memref<46x64xf32, #tpu.memory_space<vmem>>, vector<15x64xf32>,
    %cst_90 = arith.constant 0.000000e+00 : f32
    %231 = vector.broadcast %cst_90 : f32 to vector<15x64xf32>
    %c31 = arith.constant 31 : index
    %c0_91 = arith.constant 0 : index
    %232 = vector.load %arg14[%c31, %c0_91] : memref<46x64xf32, #tpu.memory_space<vmem>>, vector<15x64xf32>
    tpu.vector_store %arg14[%c31, %c0_91], %231 {strides = array<i32>} : memref<46x64xf32, #tpu.memory_space<vmem>>, vector<15x64xf32>,
    %c15 = arith.constant 15 : index
    %c0_92 = arith.constant 0 : index
    %233 = vector.load %arg14[%c15, %c0_92] : memref<46x64xf32, #tpu.memory_space<vmem>>, vector<16x64xf32>
    tpu.vector_store %arg14[%c15, %c0_92], %228 {strides = array<i32>} : memref<46x64xf32, #tpu.memory_space<vmem>>, vector<16x64xf32>,
    %c0_93 = arith.constant 0 : index
    %c0_94 = arith.constant 0 : index
    %234 = vector.load %arg10[%c0_93, %c0_94] : memref<31x64xf32, #tpu.memory_space<vmem>>, vector<31x64xf32>
    %cst_95 = arith.constant 0.000000e+00 : f32
    %235 = vector.broadcast %cst_95 : f32 to vector<16x64xf32>
    %c0_96 = arith.constant 0 : index
    %c0_97 = arith.constant 0 : index
    %236 = vector.load %arg14[%c0_96, %c0_97] : memref<46x64xf32, #tpu.memory_space<vmem>>, vector<16x64xf32>
    %237 = vector.extract_strided_slice %234 {offsets = [0, 0], sizes = [1, 64], strides = [1, 1]} : vector<31x64xf32> to vector<1x64xf32>
    %238 = vector.broadcast %237 : vector<1x64xf32> to vector<16x64xf32>
    %239 = arith.mulf %236, %238 : vector<16x64xf32>
    %240 = arith.addf %235, %239 : vector<16x64xf32>
    %c1_98 = arith.constant 1 : index
    %c0_99 = arith.constant 0 : index
    %241 = vector.load %arg14[%c1_98, %c0_99] : memref<46x64xf32, #tpu.memory_space<vmem>>, vector<16x64xf32>
    %242 = vector.extract_strided_slice %234 {offsets = [1, 0], sizes = [1, 64], strides = [1, 1]} : vector<31x64xf32> to vector<1x64xf32>
    %243 = vector.broadcast %242 : vector<1x64xf32> to vector<16x64xf32>
    %244 = arith.mulf %241, %243 : vector<16x64xf32>
    %245 = arith.addf %240, %244 : vector<16x64xf32>
    %c2_100 = arith.constant 2 : index
    %c0_101 = arith.constant 0 : index
    %246 = vector.load %arg14[%c2_100, %c0_101] : memref<46x64xf32, #tpu.memory_space<vmem>>, vector<16x64xf32>
    %247 = vector.extract_strided_slice %234 {offsets = [2, 0], sizes = [1, 64], strides = [1, 1]} : vector<31x64xf32> to vector<1x64xf32>
    %248 = vector.broadcast %247 : vector<1x64xf32> to vector<16x64xf32>
    %249 = arith.mulf %246, %248 : vector<16x64xf32>
    %250 = arith.addf %245, %249 : vector<16x64xf32>
    %c3_102 = arith.constant 3 : index
    %c0_103 = arith.constant 0 : index
    %251 = vector.load %arg14[%c3_102, %c0_103] : memref<46x64xf32, #tpu.memory_space<vmem>>, vector<16x64xf32>
    %252 = vector.extract_strided_slice %234 {offsets = [3, 0], sizes = [1, 64], strides = [1, 1]} : vector<31x64xf32> to vector<1x64xf32>
    %253 = vector.broadcast %252 : vector<1x64xf32> to vector<16x64xf32>
    %254 = arith.mulf %251, %253 : vector<16x64xf32>
    %255 = arith.addf %250, %254 : vector<16x64xf32>
    %c4_104 = arith.constant 4 : index
    %c0_105 = arith.constant 0 : index
    %256 = vector.load %arg14[%c4_104, %c0_105] : memref<46x64xf32, #tpu.memory_space<vmem>>, vector<16x64xf32>
    %257 = vector.extract_strided_slice %234 {offsets = [4, 0], sizes = [1, 64], strides = [1, 1]} : vector<31x64xf32> to vector<1x64xf32>
    %258 = vector.broadcast %257 : vector<1x64xf32> to vector<16x64xf32>
    %259 = arith.mulf %256, %258 : vector<16x64xf32>
    %260 = arith.addf %255, %259 : vector<16x64xf32>
    %c5 = arith.constant 5 : index
    %c0_106 = arith.constant 0 : index
    %261 = vector.load %arg14[%c5, %c0_106] : memref<46x64xf32, #tpu.memory_space<vmem>>, vector<16x64xf32>
    %262 = vector.extract_strided_slice %234 {offsets = [5, 0], sizes = [1, 64], strides = [1, 1]} : vector<31x64xf32> to vector<1x64xf32>
    %263 = vector.broadcast %262 : vector<1x64xf32> to vector<16x64xf32>
    %264 = arith.mulf %261, %263 : vector<16x64xf32>
    %265 = arith.addf %260, %264 : vector<16x64xf32>
    %c6 = arith.constant 6 : index
    %c0_107 = arith.constant 0 : index
    %266 = vector.load %arg14[%c6, %c0_107] : memref<46x64xf32, #tpu.memory_space<vmem>>, vector<16x64xf32>
    %267 = vector.extract_strided_slice %234 {offsets = [6, 0], sizes = [1, 64], strides = [1, 1]} : vector<31x64xf32> to vector<1x64xf32>
    %268 = vector.broadcast %267 : vector<1x64xf32> to vector<16x64xf32>
    %269 = arith.mulf %266, %268 : vector<16x64xf32>
    %270 = arith.addf %265, %269 : vector<16x64xf32>
    %c7 = arith.constant 7 : index
    %c0_108 = arith.constant 0 : index
    %271 = vector.load %arg14[%c7, %c0_108] : memref<46x64xf32, #tpu.memory_space<vmem>>, vector<16x64xf32>
    %272 = vector.extract_strided_slice %234 {offsets = [7, 0], sizes = [1, 64], strides = [1, 1]} : vector<31x64xf32> to vector<1x64xf32>
    %273 = vector.broadcast %272 : vector<1x64xf32> to vector<16x64xf32>
    %274 = arith.mulf %271, %273 : vector<16x64xf32>
    %275 = arith.addf %270, %274 : vector<16x64xf32>
    %c8 = arith.constant 8 : index
    %c0_109 = arith.constant 0 : index
    %276 = vector.load %arg14[%c8, %c0_109] : memref<46x64xf32, #tpu.memory_space<vmem>>, vector<16x64xf32>
    %277 = vector.extract_strided_slice %234 {offsets = [8, 0], sizes = [1, 64], strides = [1, 1]} : vector<31x64xf32> to vector<1x64xf32>
    %278 = vector.broadcast %277 : vector<1x64xf32> to vector<16x64xf32>
    %279 = arith.mulf %276, %278 : vector<16x64xf32>
    %280 = arith.addf %275, %279 : vector<16x64xf32>
    %c9 = arith.constant 9 : index
    %c0_110 = arith.constant 0 : index
    %281 = vector.load %arg14[%c9, %c0_110] : memref<46x64xf32, #tpu.memory_space<vmem>>, vector<16x64xf32>
    %282 = vector.extract_strided_slice %234 {offsets = [9, 0], sizes = [1, 64], strides = [1, 1]} : vector<31x64xf32> to vector<1x64xf32>
    %283 = vector.broadcast %282 : vector<1x64xf32> to vector<16x64xf32>
    %284 = arith.mulf %281, %283 : vector<16x64xf32>
    %285 = arith.addf %280, %284 : vector<16x64xf32>
    %c10 = arith.constant 10 : index
    %c0_111 = arith.constant 0 : index
    %286 = vector.load %arg14[%c10, %c0_111] : memref<46x64xf32, #tpu.memory_space<vmem>>, vector<16x64xf32>
    %287 = vector.extract_strided_slice %234 {offsets = [10, 0], sizes = [1, 64], strides = [1, 1]} : vector<31x64xf32> to vector<1x64xf32>
    %288 = vector.broadcast %287 : vector<1x64xf32> to vector<16x64xf32>
    %289 = arith.mulf %286, %288 : vector<16x64xf32>
    %290 = arith.addf %285, %289 : vector<16x64xf32>
    %c11 = arith.constant 11 : index
    %c0_112 = arith.constant 0 : index
    %291 = vector.load %arg14[%c11, %c0_112] : memref<46x64xf32, #tpu.memory_space<vmem>>, vector<16x64xf32>
    %292 = vector.extract_strided_slice %234 {offsets = [11, 0], sizes = [1, 64], strides = [1, 1]} : vector<31x64xf32> to vector<1x64xf32>
    %293 = vector.broadcast %292 : vector<1x64xf32> to vector<16x64xf32>
    %294 = arith.mulf %291, %293 : vector<16x64xf32>
    %295 = arith.addf %290, %294 : vector<16x64xf32>
    %c12 = arith.constant 12 : index
    %c0_113 = arith.constant 0 : index
    %296 = vector.load %arg14[%c12, %c0_113] : memref<46x64xf32, #tpu.memory_space<vmem>>, vector<16x64xf32>
    %297 = vector.extract_strided_slice %234 {offsets = [12, 0], sizes = [1, 64], strides = [1, 1]} : vector<31x64xf32> to vector<1x64xf32>
    %298 = vector.broadcast %297 : vector<1x64xf32> to vector<16x64xf32>
    %299 = arith.mulf %296, %298 : vector<16x64xf32>
    %300 = arith.addf %295, %299 : vector<16x64xf32>
    %c13 = arith.constant 13 : index
    %c0_114 = arith.constant 0 : index
    %301 = vector.load %arg14[%c13, %c0_114] : memref<46x64xf32, #tpu.memory_space<vmem>>, vector<16x64xf32>
    %302 = vector.extract_strided_slice %234 {offsets = [13, 0], sizes = [1, 64], strides = [1, 1]} : vector<31x64xf32> to vector<1x64xf32>
    %303 = vector.broadcast %302 : vector<1x64xf32> to vector<16x64xf32>
    %304 = arith.mulf %301, %303 : vector<16x64xf32>
    %305 = arith.addf %300, %304 : vector<16x64xf32>
    %c14 = arith.constant 14 : index
    %c0_115 = arith.constant 0 : index
    %306 = vector.load %arg14[%c14, %c0_115] : memref<46x64xf32, #tpu.memory_space<vmem>>, vector<16x64xf32>
    %307 = vector.extract_strided_slice %234 {offsets = [14, 0], sizes = [1, 64], strides = [1, 1]} : vector<31x64xf32> to vector<1x64xf32>
    %308 = vector.broadcast %307 : vector<1x64xf32> to vector<16x64xf32>
    %309 = arith.mulf %306, %308 : vector<16x64xf32>
    %310 = arith.addf %305, %309 : vector<16x64xf32>
    %c15_116 = arith.constant 15 : index
    %c0_117 = arith.constant 0 : index
    %311 = vector.load %arg14[%c15_116, %c0_117] : memref<46x64xf32, #tpu.memory_space<vmem>>, vector<16x64xf32>
    %312 = vector.extract_strided_slice %234 {offsets = [15, 0], sizes = [1, 64], strides = [1, 1]} : vector<31x64xf32> to vector<1x64xf32>
    %313 = vector.broadcast %312 : vector<1x64xf32> to vector<16x64xf32>
    %314 = arith.mulf %311, %313 : vector<16x64xf32>
    %315 = arith.addf %310, %314 : vector<16x64xf32>
    %c16 = arith.constant 16 : index
    %c0_118 = arith.constant 0 : index
    %316 = vector.load %arg14[%c16, %c0_118] : memref<46x64xf32, #tpu.memory_space<vmem>>, vector<16x64xf32>
    %317 = vector.extract_strided_slice %234 {offsets = [16, 0], sizes = [1, 64], strides = [1, 1]} : vector<31x64xf32> to vector<1x64xf32>
    %318 = vector.broadcast %317 : vector<1x64xf32> to vector<16x64xf32>
    %319 = arith.mulf %316, %318 : vector<16x64xf32>
    %320 = arith.addf %315, %319 : vector<16x64xf32>
    %c17 = arith.constant 17 : index
    %c0_119 = arith.constant 0 : index
    %321 = vector.load %arg14[%c17, %c0_119] : memref<46x64xf32, #tpu.memory_space<vmem>>, vector<16x64xf32>
    %322 = vector.extract_strided_slice %234 {offsets = [17, 0], sizes = [1, 64], strides = [1, 1]} : vector<31x64xf32> to vector<1x64xf32>
    %323 = vector.broadcast %322 : vector<1x64xf32> to vector<16x64xf32>
    %324 = arith.mulf %321, %323 : vector<16x64xf32>
    %325 = arith.addf %320, %324 : vector<16x64xf32>
    %c18 = arith.constant 18 : index
    %c0_120 = arith.constant 0 : index
    %326 = vector.load %arg14[%c18, %c0_120] : memref<46x64xf32, #tpu.memory_space<vmem>>, vector<16x64xf32>
    %327 = vector.extract_strided_slice %234 {offsets = [18, 0], sizes = [1, 64], strides = [1, 1]} : vector<31x64xf32> to vector<1x64xf32>
    %328 = vector.broadcast %327 : vector<1x64xf32> to vector<16x64xf32>
    %329 = arith.mulf %326, %328 : vector<16x64xf32>
    %330 = arith.addf %325, %329 : vector<16x64xf32>
    %c19 = arith.constant 19 : index
    %c0_121 = arith.constant 0 : index
    %331 = vector.load %arg14[%c19, %c0_121] : memref<46x64xf32, #tpu.memory_space<vmem>>, vector<16x64xf32>
    %332 = vector.extract_strided_slice %234 {offsets = [19, 0], sizes = [1, 64], strides = [1, 1]} : vector<31x64xf32> to vector<1x64xf32>
    %333 = vector.broadcast %332 : vector<1x64xf32> to vector<16x64xf32>
    %334 = arith.mulf %331, %333 : vector<16x64xf32>
    %335 = arith.addf %330, %334 : vector<16x64xf32>
    %c20 = arith.constant 20 : index
    %c0_122 = arith.constant 0 : index
    %336 = vector.load %arg14[%c20, %c0_122] : memref<46x64xf32, #tpu.memory_space<vmem>>, vector<16x64xf32>
    %337 = vector.extract_strided_slice %234 {offsets = [20, 0], sizes = [1, 64], strides = [1, 1]} : vector<31x64xf32> to vector<1x64xf32>
    %338 = vector.broadcast %337 : vector<1x64xf32> to vector<16x64xf32>
    %339 = arith.mulf %336, %338 : vector<16x64xf32>
    %340 = arith.addf %335, %339 : vector<16x64xf32>
    %c21 = arith.constant 21 : index
    %c0_123 = arith.constant 0 : index
    %341 = vector.load %arg14[%c21, %c0_123] : memref<46x64xf32, #tpu.memory_space<vmem>>, vector<16x64xf32>
    %342 = vector.extract_strided_slice %234 {offsets = [21, 0], sizes = [1, 64], strides = [1, 1]} : vector<31x64xf32> to vector<1x64xf32>
    %343 = vector.broadcast %342 : vector<1x64xf32> to vector<16x64xf32>
    %344 = arith.mulf %341, %343 : vector<16x64xf32>
    %345 = arith.addf %340, %344 : vector<16x64xf32>
    %c22 = arith.constant 22 : index
    %c0_124 = arith.constant 0 : index
    %346 = vector.load %arg14[%c22, %c0_124] : memref<46x64xf32, #tpu.memory_space<vmem>>, vector<16x64xf32>
    %347 = vector.extract_strided_slice %234 {offsets = [22, 0], sizes = [1, 64], strides = [1, 1]} : vector<31x64xf32> to vector<1x64xf32>
    %348 = vector.broadcast %347 : vector<1x64xf32> to vector<16x64xf32>
    %349 = arith.mulf %346, %348 : vector<16x64xf32>
    %350 = arith.addf %345, %349 : vector<16x64xf32>
    %c23 = arith.constant 23 : index
    %c0_125 = arith.constant 0 : index
    %351 = vector.load %arg14[%c23, %c0_125] : memref<46x64xf32, #tpu.memory_space<vmem>>, vector<16x64xf32>
    %352 = vector.extract_strided_slice %234 {offsets = [23, 0], sizes = [1, 64], strides = [1, 1]} : vector<31x64xf32> to vector<1x64xf32>
    %353 = vector.broadcast %352 : vector<1x64xf32> to vector<16x64xf32>
    %354 = arith.mulf %351, %353 : vector<16x64xf32>
    %355 = arith.addf %350, %354 : vector<16x64xf32>
    %c24 = arith.constant 24 : index
    %c0_126 = arith.constant 0 : index
    %356 = vector.load %arg14[%c24, %c0_126] : memref<46x64xf32, #tpu.memory_space<vmem>>, vector<16x64xf32>
    %357 = vector.extract_strided_slice %234 {offsets = [24, 0], sizes = [1, 64], strides = [1, 1]} : vector<31x64xf32> to vector<1x64xf32>
    %358 = vector.broadcast %357 : vector<1x64xf32> to vector<16x64xf32>
    %359 = arith.mulf %356, %358 : vector<16x64xf32>
    %360 = arith.addf %355, %359 : vector<16x64xf32>
    %c25 = arith.constant 25 : index
    %c0_127 = arith.constant 0 : index
    %361 = vector.load %arg14[%c25, %c0_127] : memref<46x64xf32, #tpu.memory_space<vmem>>, vector<16x64xf32>
    %362 = vector.extract_strided_slice %234 {offsets = [25, 0], sizes = [1, 64], strides = [1, 1]} : vector<31x64xf32> to vector<1x64xf32>
    %363 = vector.broadcast %362 : vector<1x64xf32> to vector<16x64xf32>
    %364 = arith.mulf %361, %363 : vector<16x64xf32>
    %365 = arith.addf %360, %364 : vector<16x64xf32>
    %c26 = arith.constant 26 : index
    %c0_128 = arith.constant 0 : index
    %366 = vector.load %arg14[%c26, %c0_128] : memref<46x64xf32, #tpu.memory_space<vmem>>, vector<16x64xf32>
    %367 = vector.extract_strided_slice %234 {offsets = [26, 0], sizes = [1, 64], strides = [1, 1]} : vector<31x64xf32> to vector<1x64xf32>
    %368 = vector.broadcast %367 : vector<1x64xf32> to vector<16x64xf32>
    %369 = arith.mulf %366, %368 : vector<16x64xf32>
    %370 = arith.addf %365, %369 : vector<16x64xf32>
    %c27 = arith.constant 27 : index
    %c0_129 = arith.constant 0 : index
    %371 = vector.load %arg14[%c27, %c0_129] : memref<46x64xf32, #tpu.memory_space<vmem>>, vector<16x64xf32>
    %372 = vector.extract_strided_slice %234 {offsets = [27, 0], sizes = [1, 64], strides = [1, 1]} : vector<31x64xf32> to vector<1x64xf32>
    %373 = vector.broadcast %372 : vector<1x64xf32> to vector<16x64xf32>
    %374 = arith.mulf %371, %373 : vector<16x64xf32>
    %375 = arith.addf %370, %374 : vector<16x64xf32>
    %c28 = arith.constant 28 : index
    %c0_130 = arith.constant 0 : index
    %376 = vector.load %arg14[%c28, %c0_130] : memref<46x64xf32, #tpu.memory_space<vmem>>, vector<16x64xf32>
    %377 = vector.extract_strided_slice %234 {offsets = [28, 0], sizes = [1, 64], strides = [1, 1]} : vector<31x64xf32> to vector<1x64xf32>
    %378 = vector.broadcast %377 : vector<1x64xf32> to vector<16x64xf32>
    %379 = arith.mulf %376, %378 : vector<16x64xf32>
    %380 = arith.addf %375, %379 : vector<16x64xf32>
    %c29 = arith.constant 29 : index
    %c0_131 = arith.constant 0 : index
    %381 = vector.load %arg14[%c29, %c0_131] : memref<46x64xf32, #tpu.memory_space<vmem>>, vector<16x64xf32>
    %382 = vector.extract_strided_slice %234 {offsets = [29, 0], sizes = [1, 64], strides = [1, 1]} : vector<31x64xf32> to vector<1x64xf32>
    %383 = vector.broadcast %382 : vector<1x64xf32> to vector<16x64xf32>
    %384 = arith.mulf %381, %383 : vector<16x64xf32>
    %385 = arith.addf %380, %384 : vector<16x64xf32>
    %c30 = arith.constant 30 : index
    %c0_132 = arith.constant 0 : index
    %386 = vector.load %arg14[%c30, %c0_132] : memref<46x64xf32, #tpu.memory_space<vmem>>, vector<16x64xf32>
    %387 = vector.extract_strided_slice %234 {offsets = [30, 0], sizes = [1, 64], strides = [1, 1]} : vector<31x64xf32> to vector<1x64xf32>
    %388 = vector.broadcast %387 : vector<1x64xf32> to vector<16x64xf32>
    %389 = arith.mulf %386, %388 : vector<16x64xf32>
    %390 = arith.addf %385, %389 : vector<16x64xf32>
    %c2_133 = arith.constant 2 : index
    %c0_134 = arith.constant 0 : index
    %391 = vector.load %arg9[%c2_133, %c0_134] : memref<3x64xf32, #tpu.memory_space<vmem>>, vector<1x64xf32>
    %392 = vector.broadcast %391 : vector<1x64xf32> to vector<16x64xf32>
    %393 = arith.addf %390, %392 : vector<16x64xf32>
    %394 = arith.negf %393 : vector<16x64xf32>
    %395 = math.exp %394 : vector<16x64xf32>
    %cst_135 = arith.constant 1.000000e+00 : f32
    %396 = vector.broadcast %cst_135 : f32 to vector<16x64xf32>
    %397 = arith.addf %396, %395 : vector<16x64xf32>
    %398 = arith.divf %396, %397 : vector<16x64xf32>
    %399 = arith.mulf %393, %398 : vector<16x64xf32>
    %400 = arith.truncf %399 : vector<16x64xf32> to vector<16x64xbf16>
    %c0_136 = arith.constant 0 : index
    %c0_137 = arith.constant 0 : index
    %401 = vector.load %arg11[%c0_136, %c0_137] : memref<64x32xbf16, #tpu.memory_space<vmem>>, vector<64x32xbf16>
    %cst_138 = arith.constant dense<0.000000e+00> : vector<16x32xf32>
    %402 = tpu.matmul %400, %401, %cst_138 {dimension_numbers = #tpu.dot_dimension_numbers<[1], [0], [0], [1], [0, 0, 1, 1], [], []>} : vector<16x64xbf16>, vector<64x32xbf16>, vector<16x32xf32> -> vector<16x32xf32>
    %c5_139 = arith.constant 5 : index
    %c0_140 = arith.constant 0 : index
    %403 = vector.load %arg2[%c5_139, %c0_140] : memref<6x32xf32, #tpu.memory_space<vmem>>, vector<1x32xf32>
    %404 = vector.broadcast %403 : vector<1x32xf32> to vector<16x32xf32>
    %405 = arith.addf %402, %404 : vector<16x32xf32>
    %406 = arith.addf %187, %405 : vector<16x32xf32>
    %c0_141 = arith.constant 0 : index
    %c0_142 = arith.constant 0 : index
    %c0_143 = arith.constant 0 : index
    %407 = vector.load %arg12[%c0_141, %c0_142, %c0_143] : memref<1x16x32xf32, #tpu.memory_space<vmem>>, vector<1x16x32xf32>
    %408 = vector.shape_cast %407 : vector<1x16x32xf32> to vector<16x32xf32>
    %409 = vector.shape_cast %406 : vector<16x32xf32> to vector<1x16x32xf32>
    tpu.vector_store %arg12[%c0_141, %c0_142, %c0_143], %409 {strides = array<i32>} : memref<1x16x32xf32, #tpu.memory_space<vmem>>, vector<1x16x32xf32>,
    return
  }
  func.func @transform_0(%arg0: i32) -> (i32, i32, i32) {
    %c0_i32 = arith.constant 0 : i32
    %c0_i32_0 = arith.constant 0 : i32
    %c0_i32_1 = arith.constant 0 : i32
    return %arg0, %c0_i32, %c0_i32_0 : i32, i32, i32
  }
  func.func @transform_1(%arg0: i32) -> (i32, i32) {
    %c0_i32 = arith.constant 0 : i32
    %c0_i32_0 = arith.constant 0 : i32
    %c0_i32_1 = arith.constant 0 : i32
    return %c0_i32, %c0_i32_0 : i32, i32
  }
  func.func @transform_2(%arg0: i32) -> (i32, i32) {
    %c0_i32 = arith.constant 0 : i32
    %c0_i32_0 = arith.constant 0 : i32
    %c0_i32_1 = arith.constant 0 : i32
    return %c0_i32, %c0_i32_0 : i32, i32
  }
  func.func @transform_3(%arg0: i32) -> (i32, i32) {
    %c0_i32 = arith.constant 0 : i32
    %c0_i32_0 = arith.constant 0 : i32
    %c0_i32_1 = arith.constant 0 : i32
    return %c0_i32, %c0_i32_0 : i32, i32
  }
  func.func @transform_4(%arg0: i32) -> (i32, i32) {
    %c0_i32 = arith.constant 0 : i32
    %c0_i32_0 = arith.constant 0 : i32
    %c0_i32_1 = arith.constant 0 : i32
    return %c0_i32, %c0_i32_0 : i32, i32
  }
  func.func @transform_5(%arg0: i32) -> (i32, i32) {
    %c0_i32 = arith.constant 0 : i32
    %c0_i32_0 = arith.constant 0 : i32
    %c0_i32_1 = arith.constant 0 : i32
    return %c0_i32, %c0_i32_0 : i32, i32
  }
  func.func @transform_6(%arg0: i32) -> (i32, i32) {
    %c0_i32 = arith.constant 0 : i32
    %c0_i32_0 = arith.constant 0 : i32
    %c0_i32_1 = arith.constant 0 : i32
    return %c0_i32, %c0_i32_0 : i32, i32
  }
  func.func @transform_7(%arg0: i32) -> (i32, i32) {
    %c0_i32 = arith.constant 0 : i32
    %c0_i32_0 = arith.constant 0 : i32
    %c0_i32_1 = arith.constant 0 : i32
    return %c0_i32, %c0_i32_0 : i32, i32
  }
  func.func @transform_8(%arg0: i32) -> (i32, i32) {
    %c0_i32 = arith.constant 0 : i32
    %c0_i32_0 = arith.constant 0 : i32
    %c0_i32_1 = arith.constant 0 : i32
    return %c0_i32, %c0_i32_0 : i32, i32
  }
  func.func @transform_9(%arg0: i32) -> (i32, i32) {
    %c0_i32 = arith.constant 0 : i32
    %c0_i32_0 = arith.constant 0 : i32
    %c0_i32_1 = arith.constant 0 : i32
    return %c0_i32, %c0_i32_0 : i32, i32
  }
  func.func @transform_10(%arg0: i32) -> (i32, i32) {
    %c0_i32 = arith.constant 0 : i32
    %c0_i32_0 = arith.constant 0 : i32
    %c0_i32_1 = arith.constant 0 : i32
    return %c0_i32, %c0_i32_0 : i32, i32
  }
  func.func @transform_11(%arg0: i32) -> (i32, i32, i32) {
    %c0_i32 = arith.constant 0 : i32
    %c0_i32_0 = arith.constant 0 : i32
    %c0_i32_1 = arith.constant 0 : i32
    return %arg0, %c0_i32, %c0_i32_0 : i32, i32, i32
  }
}

module attributes {stable_mosaic.version = 11 : i64} {
  func.func @_layer_kernel(%arg0: i32, %arg1: memref<1x16x32xf32, #tpu.memory_space<vmem>>, %arg2: memref<6x32xf32, #tpu.memory_space<vmem>>, %arg3: memref<32x384xbf16, #tpu.memory_space<vmem>>, %arg4: memref<1x384xf32, #tpu.memory_space<vmem>>, %arg5: memref<64x384xbf16, #tpu.memory_space<vmem>>, %arg6: memref<128x32xbf16, #tpu.memory_space<vmem>>, %arg7: memref<32x64xbf16, #tpu.memory_space<vmem>>, %arg8: memref<32x64xbf16, #tpu.memory_space<vmem>>, %arg9: memref<3x64xf32, #tpu.memory_space<vmem>>, %arg10: memref<31x64xf32, #tpu.memory_space<vmem>>, %arg11: memref<64x32xbf16, #tpu.memory_space<vmem>>, %arg12: memref<1x16x32xf32, #tpu.memory_space<vmem>>, %arg13: memref<16x128xf32, #tpu.memory_space<vmem>>, %arg14: memref<46x64xf32, #tpu.memory_space<vmem>>) attributes {dimension_semantics = [#tpu.dimension_semantics<parallel>], iteration_bounds = array<i64: 2>, scalar_prefetch = 0 : i64, scratch_operands = 2 : i64, tpu.core_type = #tpu.core_type<tc>, window_params = [{transform_indices = @transform_0, window_bounds = array<i64: 1, 16, 32>}, {pipeline_mode = #tpu.pipeline_mode<synchronous>, transform_indices = @transform_1, window_bounds = array<i64: 6, 32>}, {pipeline_mode = #tpu.pipeline_mode<synchronous>, transform_indices = @transform_2, window_bounds = array<i64: 32, 384>}, {pipeline_mode = #tpu.pipeline_mode<synchronous>, transform_indices = @transform_3, window_bounds = array<i64: 1, 384>}, {pipeline_mode = #tpu.pipeline_mode<synchronous>, transform_indices = @transform_4, window_bounds = array<i64: 64, 384>}, {pipeline_mode = #tpu.pipeline_mode<synchronous>, transform_indices = @transform_5, window_bounds = array<i64: 128, 32>}, {pipeline_mode = #tpu.pipeline_mode<synchronous>, transform_indices = @transform_6, window_bounds = array<i64: 32, 64>}, {pipeline_mode = #tpu.pipeline_mode<synchronous>, transform_indices = @transform_7, window_bounds = array<i64: 32, 64>}, {pipeline_mode = #tpu.pipeline_mode<synchronous>, transform_indices = @transform_8, window_bounds = array<i64: 3, 64>}, {pipeline_mode = #tpu.pipeline_mode<synchronous>, transform_indices = @transform_9, window_bounds = array<i64: 31, 64>}, {pipeline_mode = #tpu.pipeline_mode<synchronous>, transform_indices = @transform_10, window_bounds = array<i64: 64, 32>}, {transform_indices = @transform_11, window_bounds = array<i64: 1, 16, 32>}]} {
    %c0 = arith.constant 0 : index
    %c0_0 = arith.constant 0 : index
    %c0_1 = arith.constant 0 : index
    %0 = vector.load %arg1[%c0, %c0_0, %c0_1] : memref<1x16x32xf32, #tpu.memory_space<vmem>>, vector<1x16x32xf32>
    %1 = vector.shape_cast %0 : vector<1x16x32xf32> to vector<16x32xf32>
    %c0_2 = arith.constant 0 : index
    %c0_3 = arith.constant 0 : index
    %2 = vector.load %arg2[%c0_2, %c0_3] : memref<6x32xf32, #tpu.memory_space<vmem>>, vector<1x32xf32>
    %c1 = arith.constant 1 : index
    %c0_4 = arith.constant 0 : index
    %3 = vector.load %arg2[%c1, %c0_4] : memref<6x32xf32, #tpu.memory_space<vmem>>, vector<1x32xf32>
    %cst = arith.constant dense<0.000000e+00> : vector<16xf32>
    %4 = vector.multi_reduction <add>, %1, %cst [1] : vector<16x32xf32> to vector<16xf32>
    %5 = vector.shape_cast %4 : vector<16xf32> to vector<16x1xf32>
    %cst_5 = arith.constant 3.200000e+01 : f32
    %6 = vector.broadcast %cst_5 : f32 to vector<16x1xf32>
    %7 = arith.divf %5, %6 : vector<16x1xf32>
    %8 = vector.broadcast %7 : vector<16x1xf32> to vector<16x32xf32>
    %9 = arith.subf %1, %8 : vector<16x32xf32>
    %10 = arith.mulf %9, %9 : vector<16x32xf32>
    %cst_6 = arith.constant dense<0.000000e+00> : vector<16xf32>
    %11 = vector.multi_reduction <add>, %10, %cst_6 [1] : vector<16x32xf32> to vector<16xf32>
    %12 = vector.shape_cast %11 : vector<16xf32> to vector<16x1xf32>
    %cst_7 = arith.constant 3.200000e+01 : f32
    %13 = vector.broadcast %cst_7 : f32 to vector<16x1xf32>
    %14 = arith.divf %12, %13 : vector<16x1xf32>
    %15 = vector.broadcast %7 : vector<16x1xf32> to vector<16x32xf32>
    %16 = arith.subf %1, %15 : vector<16x32xf32>
    %cst_8 = arith.constant 9.99999974E-6 : f32
    %17 = vector.broadcast %cst_8 : f32 to vector<16x1xf32>
    %18 = arith.addf %14, %17 : vector<16x1xf32>
    %19 = math.rsqrt %18 : vector<16x1xf32>
    %20 = vector.broadcast %19 : vector<16x1xf32> to vector<16x32xf32>
    %21 = arith.mulf %16, %20 : vector<16x32xf32>
    %22 = vector.broadcast %2 : vector<1x32xf32> to vector<16x32xf32>
    %23 = arith.mulf %21, %22 : vector<16x32xf32>
    %24 = vector.broadcast %3 : vector<1x32xf32> to vector<16x32xf32>
    %25 = arith.addf %23, %24 : vector<16x32xf32>
    %26 = arith.truncf %25 : vector<16x32xf32> to vector<16x32xbf16>
    %c0_9 = arith.constant 0 : index
    %c0_10 = arith.constant 0 : index
    %27 = vector.load %arg3[%c0_9, %c0_10] : memref<32x384xbf16, #tpu.memory_space<vmem>>, vector<32x384xbf16>
    %cst_11 = arith.constant dense<0.000000e+00> : vector<16x384xf32>
    %28 = tpu.matmul %26, %27, %cst_11 {dimension_numbers = #tpu.dot_dimension_numbers<[1], [0], [0], [1], [0, 0, 1, 1], [], []>} : vector<16x32xbf16>, vector<32x384xbf16>, vector<16x384xf32> -> vector<16x384xf32>
    %c0_12 = arith.constant 0 : index
    %c0_13 = arith.constant 0 : index
    %29 = vector.load %arg4[%c0_12, %c0_13] : memref<1x384xf32, #tpu.memory_space<vmem>>, vector<1x384xf32>
    %30 = vector.broadcast %29 : vector<1x384xf32> to vector<16x384xf32>
    %31 = arith.addf %28, %30 : vector<16x384xf32>
    %c0_14 = arith.constant 0 : index
    %c0_15 = arith.constant 0 : index
    %32 = vector.load %arg5[%c0_14, %c0_15] : memref<64x384xbf16, #tpu.memory_space<vmem>>, vector<64x384xbf16>
    %33 = tpu.iota {dimensions = array<i32: 1>} : vector<1x384xi32>
    %c266_i32 = arith.constant 266 : i32
    %34 = vector.broadcast %c266_i32 : i32 to vector<1x384xi32>
    %35 = arith.cmpi slt, %33, %34 : vector<1x384xi32>
    %36 = vector.extract_strided_slice %31 {offsets = [0, 0], sizes = [16, 64], strides = [1, 1]} : vector<16x384xf32> to vector<16x64xf32>
    %cst_16 = arith.constant 0.353553385 : f32
    %37 = vector.broadcast %cst_16 : f32 to vector<16x64xf32>
    %38 = arith.mulf %36, %37 : vector<16x64xf32>
    %39 = vector.extract_strided_slice %31 {offsets = [0, 128], sizes = [16, 64], strides = [1, 1]} : vector<16x384xf32> to vector<16x64xf32>
    %cst_17 = arith.constant 0.353553385 : f32
    %40 = vector.broadcast %cst_17 : f32 to vector<16x64xf32>
    %41 = arith.mulf %39, %40 : vector<16x64xf32>
    %42 = vector.extract_strided_slice %31 {offsets = [0, 256], sizes = [16, 64], strides = [1, 1]} : vector<16x384xf32> to vector<16x64xf32>
    %43 = arith.truncf %38 : vector<16x64xf32> to vector<16x64xbf16>
    %cst_18 = arith.constant dense<0.000000e+00> : vector<16x384xf32>
    %44 = tpu.matmul %43, %32, %cst_18 {dimension_numbers = #tpu.dot_dimension_numbers<[1], [0], [0], [1], [0, 0, 1, 1], [], []>} : vector<16x64xbf16>, vector<64x384xbf16>, vector<16x384xf32> -> vector<16x384xf32>
    %45 = arith.truncf %41 : vector<16x64xf32> to vector<16x64xbf16>
    %cst_19 = arith.constant dense<0.000000e+00> : vector<16x384xf32>
    %46 = tpu.matmul %45, %32, %cst_19 {dimension_numbers = #tpu.dot_dimension_numbers<[1], [0], [0], [1], [0, 0, 1, 1], [], []>} : vector<16x64xbf16>, vector<64x384xbf16>, vector<16x384xf32> -> vector<16x384xf32>
    %47 = arith.mulf %38, %38 : vector<16x64xf32>
    %cst_20 = arith.constant dense<0.000000e+00> : vector<16xf32>
    %48 = vector.multi_reduction <add>, %47, %cst_20 [1] : vector<16x64xf32> to vector<16xf32>
    %49 = vector.shape_cast %48 : vector<16xf32> to vector<16x1xf32>
    %cst_21 = arith.constant 5.000000e-01 : f32
    %50 = vector.broadcast %cst_21 : f32 to vector<16x1xf32>
    %51 = arith.mulf %49, %50 : vector<16x1xf32>
    %52 = arith.mulf %41, %41 : vector<16x64xf32>
    %cst_22 = arith.constant dense<0.000000e+00> : vector<16xf32>
    %53 = vector.multi_reduction <add>, %52, %cst_22 [1] : vector<16x64xf32> to vector<16xf32>
    %54 = vector.shape_cast %53 : vector<16xf32> to vector<16x1xf32>
    %cst_23 = arith.constant 5.000000e-01 : f32
    %55 = vector.broadcast %cst_23 : f32 to vector<16x1xf32>
    %56 = arith.mulf %54, %55 : vector<16x1xf32>
    %cst_24 = arith.constant -1.000000e+30 : f32
    %57 = vector.shape_cast %35 : vector<1x384xi1> to vector<1x384xi1>
    %58 = vector.broadcast %57 : vector<1x384xi1> to vector<16x384xi1>
    %59 = vector.broadcast %cst_24 : f32 to vector<16x384xf32>
    %60 = arith.select %58, %44, %59 : vector<16x384xi1>, vector<16x384xf32>
    %cst_25 = arith.constant dense<0xFF800000> : vector<16xf32>
    %61 = vector.multi_reduction <maximumf>, %60, %cst_25 [1] : vector<16x384xf32> to vector<16xf32>
    %62 = vector.shape_cast %61 : vector<16xf32> to vector<16x1xf32>
    %63 = vector.broadcast %51 : vector<16x1xf32> to vector<16x384xf32>
    %64 = arith.subf %44, %63 : vector<16x384xf32>
    %65 = vector.broadcast %62 : vector<16x1xf32> to vector<16x384xf32>
    %66 = arith.subf %64, %65 : vector<16x384xf32>
    %cst_26 = arith.constant -1.000000e+30 : f32
    %67 = vector.shape_cast %35 : vector<1x384xi1> to vector<1x384xi1>
    %68 = vector.broadcast %67 : vector<1x384xi1> to vector<16x384xi1>
    %69 = vector.broadcast %cst_26 : f32 to vector<16x384xf32>
    %70 = arith.select %68, %66, %69 : vector<16x384xi1>, vector<16x384xf32>
    %71 = math.exp %70 : vector<16x384xf32>
    %cst_27 = arith.constant 9.99999974E-5 : f32
    %72 = vector.broadcast %cst_27 : f32 to vector<16x384xf32>
    %73 = arith.addf %71, %72 : vector<16x384xf32>
    %cst_28 = arith.constant 0.0613139346 : f32
    %74 = vector.broadcast %cst_28 : f32 to vector<16x384xf32>
    %75 = arith.mulf %74, %73 : vector<16x384xf32>
    %cst_29 = arith.constant 0.000000e+00 : f32
    %76 = vector.shape_cast %35 : vector<1x384xi1> to vector<1x384xi1>
    %77 = vector.broadcast %76 : vector<1x384xi1> to vector<16x384xi1>
    %78 = vector.broadcast %cst_29 : f32 to vector<16x384xf32>
    %79 = arith.select %77, %75, %78 : vector<16x384xi1>, vector<16x384xf32>
    %80 = vector.broadcast %56 : vector<16x1xf32> to vector<16x384xf32>
    %81 = arith.subf %46, %80 : vector<16x384xf32>
    %cst_30 = arith.constant 9.99999974E-5 : f32
    %82 = vector.broadcast %cst_30 : f32 to vector<16x384xf32>
    %83 = arith.addf %81, %82 : vector<16x384xf32>
    %84 = math.exp %83 : vector<16x384xf32>
    %cst_31 = arith.constant 0.0613139346 : f32
    %85 = vector.broadcast %cst_31 : f32 to vector<16x384xf32>
    %86 = arith.mulf %85, %84 : vector<16x384xf32>
    %cst_32 = arith.constant 0.000000e+00 : f32
    %87 = vector.shape_cast %35 : vector<1x384xi1> to vector<1x384xi1>
    %88 = vector.broadcast %87 : vector<1x384xi1> to vector<16x384xi1>
    %89 = vector.broadcast %cst_32 : f32 to vector<16x384xf32>
    %90 = arith.select %88, %86, %89 : vector<16x384xi1>, vector<16x384xf32>
    %cst_33 = arith.constant dense<0.000000e+00> : vector<384xf32>
    %91 = vector.multi_reduction <add>, %90, %cst_33 [0] : vector<16x384xf32> to vector<384xf32>
    %92 = vector.shape_cast %91 : vector<384xf32> to vector<1x384xf32>
    %93 = vector.broadcast %92 : vector<1x384xf32> to vector<16x384xf32>
    %94 = arith.mulf %79, %93 : vector<16x384xf32>
    %cst_34 = arith.constant dense<0.000000e+00> : vector<16xf32>
    %95 = vector.multi_reduction <add>, %94, %cst_34 [1] : vector<16x384xf32> to vector<16xf32>
    %96 = vector.shape_cast %95 : vector<16xf32> to vector<16x1xf32>
    %cst_35 = arith.constant 9.99999993E-9 : f32
    %97 = vector.broadcast %cst_35 : f32 to vector<16x1xf32>
    %98 = arith.addf %96, %97 : vector<16x1xf32>
    %99 = arith.truncf %42 : vector<16x64xf32> to vector<16x64xbf16>
    %100 = arith.truncf %90 : vector<16x384xf32> to vector<16x384xbf16>
    %cst_36 = arith.constant dense<0.000000e+00> : vector<64x384xf32>
    %101 = tpu.matmul %99, %100, %cst_36 {dimension_numbers = #tpu.dot_dimension_numbers<[0], [0], [1], [1], [0, 1, 1, 1], [], []>} : vector<16x64xbf16>, vector<16x384xbf16>, vector<64x384xf32> -> vector<64x384xf32>
    %102 = arith.truncf %79 : vector<16x384xf32> to vector<16x384xbf16>
    %103 = arith.truncf %101 : vector<64x384xf32> to vector<64x384xbf16>
    %cst_37 = arith.constant dense<0.000000e+00> : vector<16x64xf32>
    %104 = tpu.matmul %102, %103, %cst_37 {dimension_numbers = #tpu.dot_dimension_numbers<[1], [1], [0], [0], [0, 0, 1, 0], [], []>} : vector<16x384xbf16>, vector<64x384xbf16>, vector<16x64xf32> -> vector<16x64xf32>
    %105 = vector.broadcast %98 : vector<16x1xf32> to vector<16x64xf32>
    %106 = arith.divf %104, %105 : vector<16x64xf32>
    %c0_38 = arith.constant 0 : index
    %c0_39 = arith.constant 0 : index
    %107 = vector.load %arg13[%c0_38, %c0_39] : memref<16x128xf32, #tpu.memory_space<vmem>>, vector<16x64xf32>
    tpu.vector_store %arg13[%c0_38, %c0_39], %106 {strides = array<i32>} : memref<16x128xf32, #tpu.memory_space<vmem>>, vector<16x64xf32>,
    %108 = vector.extract_strided_slice %31 {offsets = [0, 64], sizes = [16, 64], strides = [1, 1]} : vector<16x384xf32> to vector<16x64xf32>
    %cst_40 = arith.constant 0.353553385 : f32
    %109 = vector.broadcast %cst_40 : f32 to vector<16x64xf32>
    %110 = arith.mulf %108, %109 : vector<16x64xf32>
    %111 = vector.extract_strided_slice %31 {offsets = [0, 192], sizes = [16, 64], strides = [1, 1]} : vector<16x384xf32> to vector<16x64xf32>
    %cst_41 = arith.constant 0.353553385 : f32
    %112 = vector.broadcast %cst_41 : f32 to vector<16x64xf32>
    %113 = arith.mulf %111, %112 : vector<16x64xf32>
    %114 = vector.extract_strided_slice %31 {offsets = [0, 320], sizes = [16, 64], strides = [1, 1]} : vector<16x384xf32> to vector<16x64xf32>
    %115 = arith.truncf %110 : vector<16x64xf32> to vector<16x64xbf16>
    %cst_42 = arith.constant dense<0.000000e+00> : vector<16x384xf32>
    %116 = tpu.matmul %115, %32, %cst_42 {dimension_numbers = #tpu.dot_dimension_numbers<[1], [0], [0], [1], [0, 0, 1, 1], [], []>} : vector<16x64xbf16>, vector<64x384xbf16>, vector<16x384xf32> -> vector<16x384xf32>
    %117 = arith.truncf %113 : vector<16x64xf32> to vector<16x64xbf16>
    %cst_43 = arith.constant dense<0.000000e+00> : vector<16x384xf32>
    %118 = tpu.matmul %117, %32, %cst_43 {dimension_numbers = #tpu.dot_dimension_numbers<[1], [0], [0], [1], [0, 0, 1, 1], [], []>} : vector<16x64xbf16>, vector<64x384xbf16>, vector<16x384xf32> -> vector<16x384xf32>
    %119 = arith.mulf %110, %110 : vector<16x64xf32>
    %cst_44 = arith.constant dense<0.000000e+00> : vector<16xf32>
    %120 = vector.multi_reduction <add>, %119, %cst_44 [1] : vector<16x64xf32> to vector<16xf32>
    %121 = vector.shape_cast %120 : vector<16xf32> to vector<16x1xf32>
    %cst_45 = arith.constant 5.000000e-01 : f32
    %122 = vector.broadcast %cst_45 : f32 to vector<16x1xf32>
    %123 = arith.mulf %121, %122 : vector<16x1xf32>
    %124 = arith.mulf %113, %113 : vector<16x64xf32>
    %cst_46 = arith.constant dense<0.000000e+00> : vector<16xf32>
    %125 = vector.multi_reduction <add>, %124, %cst_46 [1] : vector<16x64xf32> to vector<16xf32>
    %126 = vector.shape_cast %125 : vector<16xf32> to vector<16x1xf32>
    %cst_47 = arith.constant 5.000000e-01 : f32
    %127 = vector.broadcast %cst_47 : f32 to vector<16x1xf32>
    %128 = arith.mulf %126, %127 : vector<16x1xf32>
    %cst_48 = arith.constant -1.000000e+30 : f32
    %129 = vector.shape_cast %35 : vector<1x384xi1> to vector<1x384xi1>
    %130 = vector.broadcast %129 : vector<1x384xi1> to vector<16x384xi1>
    %131 = vector.broadcast %cst_48 : f32 to vector<16x384xf32>
    %132 = arith.select %130, %116, %131 : vector<16x384xi1>, vector<16x384xf32>
    %cst_49 = arith.constant dense<0xFF800000> : vector<16xf32>
    %133 = vector.multi_reduction <maximumf>, %132, %cst_49 [1] : vector<16x384xf32> to vector<16xf32>
    %134 = vector.shape_cast %133 : vector<16xf32> to vector<16x1xf32>
    %135 = vector.broadcast %123 : vector<16x1xf32> to vector<16x384xf32>
    %136 = arith.subf %116, %135 : vector<16x384xf32>
    %137 = vector.broadcast %134 : vector<16x1xf32> to vector<16x384xf32>
    %138 = arith.subf %136, %137 : vector<16x384xf32>
    %cst_50 = arith.constant -1.000000e+30 : f32
    %139 = vector.shape_cast %35 : vector<1x384xi1> to vector<1x384xi1>
    %140 = vector.broadcast %139 : vector<1x384xi1> to vector<16x384xi1>
    %141 = vector.broadcast %cst_50 : f32 to vector<16x384xf32>
    %142 = arith.select %140, %138, %141 : vector<16x384xi1>, vector<16x384xf32>
    %143 = math.exp %142 : vector<16x384xf32>
    %cst_51 = arith.constant 9.99999974E-5 : f32
    %144 = vector.broadcast %cst_51 : f32 to vector<16x384xf32>
    %145 = arith.addf %143, %144 : vector<16x384xf32>
    %cst_52 = arith.constant 0.0613139346 : f32
    %146 = vector.broadcast %cst_52 : f32 to vector<16x384xf32>
    %147 = arith.mulf %146, %145 : vector<16x384xf32>
    %cst_53 = arith.constant 0.000000e+00 : f32
    %148 = vector.shape_cast %35 : vector<1x384xi1> to vector<1x384xi1>
    %149 = vector.broadcast %148 : vector<1x384xi1> to vector<16x384xi1>
    %150 = vector.broadcast %cst_53 : f32 to vector<16x384xf32>
    %151 = arith.select %149, %147, %150 : vector<16x384xi1>, vector<16x384xf32>
    %152 = vector.broadcast %128 : vector<16x1xf32> to vector<16x384xf32>
    %153 = arith.subf %118, %152 : vector<16x384xf32>
    %cst_54 = arith.constant 9.99999974E-5 : f32
    %154 = vector.broadcast %cst_54 : f32 to vector<16x384xf32>
    %155 = arith.addf %153, %154 : vector<16x384xf32>
    %156 = math.exp %155 : vector<16x384xf32>
    %cst_55 = arith.constant 0.0613139346 : f32
    %157 = vector.broadcast %cst_55 : f32 to vector<16x384xf32>
    %158 = arith.mulf %157, %156 : vector<16x384xf32>
    %cst_56 = arith.constant 0.000000e+00 : f32
    %159 = vector.shape_cast %35 : vector<1x384xi1> to vector<1x384xi1>
    %160 = vector.broadcast %159 : vector<1x384xi1> to vector<16x384xi1>
    %161 = vector.broadcast %cst_56 : f32 to vector<16x384xf32>
    %162 = arith.select %160, %158, %161 : vector<16x384xi1>, vector<16x384xf32>
    %cst_57 = arith.constant dense<0.000000e+00> : vector<384xf32>
    %163 = vector.multi_reduction <add>, %162, %cst_57 [0] : vector<16x384xf32> to vector<384xf32>
    %164 = vector.shape_cast %163 : vector<384xf32> to vector<1x384xf32>
    %165 = vector.broadcast %164 : vector<1x384xf32> to vector<16x384xf32>
    %166 = arith.mulf %151, %165 : vector<16x384xf32>
    %cst_58 = arith.constant dense<0.000000e+00> : vector<16xf32>
    %167 = vector.multi_reduction <add>, %166, %cst_58 [1] : vector<16x384xf32> to vector<16xf32>
    %168 = vector.shape_cast %167 : vector<16xf32> to vector<16x1xf32>
    %cst_59 = arith.constant 9.99999993E-9 : f32
    %169 = vector.broadcast %cst_59 : f32 to vector<16x1xf32>
    %170 = arith.addf %168, %169 : vector<16x1xf32>
    %171 = arith.truncf %114 : vector<16x64xf32> to vector<16x64xbf16>
    %172 = arith.truncf %162 : vector<16x384xf32> to vector<16x384xbf16>
    %cst_60 = arith.constant dense<0.000000e+00> : vector<64x384xf32>
    %173 = tpu.matmul %171, %172, %cst_60 {dimension_numbers = #tpu.dot_dimension_numbers<[0], [0], [1], [1], [0, 1, 1, 1], [], []>} : vector<16x64xbf16>, vector<16x384xbf16>, vector<64x384xf32> -> vector<64x384xf32>
    %174 = arith.truncf %151 : vector<16x384xf32> to vector<16x384xbf16>
    %175 = arith.truncf %173 : vector<64x384xf32> to vector<64x384xbf16>
    %cst_61 = arith.constant dense<0.000000e+00> : vector<16x64xf32>
    %176 = tpu.matmul %174, %175, %cst_61 {dimension_numbers = #tpu.dot_dimension_numbers<[1], [1], [0], [0], [0, 0, 1, 0], [], []>} : vector<16x384xbf16>, vector<64x384xbf16>, vector<16x64xf32> -> vector<16x64xf32>
    %177 = vector.broadcast %170 : vector<16x1xf32> to vector<16x64xf32>
    %178 = arith.divf %176, %177 : vector<16x64xf32>
    %c0_62 = arith.constant 0 : index
    %c64 = arith.constant 64 : index
    %179 = vector.load %arg13[%c0_62, %c64] : memref<16x128xf32, #tpu.memory_space<vmem>>, vector<16x64xf32>
    tpu.vector_store %arg13[%c0_62, %c64], %178 {strides = array<i32>} : memref<16x128xf32, #tpu.memory_space<vmem>>, vector<16x64xf32>,
    %c0_63 = arith.constant 0 : index
    %c0_64 = arith.constant 0 : index
    %180 = vector.load %arg13[%c0_63, %c0_64] : memref<16x128xf32, #tpu.memory_space<vmem>>, vector<16x128xf32>
    %181 = arith.truncf %180 : vector<16x128xf32> to vector<16x128xbf16>
    %c0_65 = arith.constant 0 : index
    %c0_66 = arith.constant 0 : index
    %182 = vector.load %arg6[%c0_65, %c0_66] : memref<128x32xbf16, #tpu.memory_space<vmem>>, vector<128x32xbf16>
    %cst_67 = arith.constant dense<0.000000e+00> : vector<16x32xf32>
    %183 = tpu.matmul %181, %182, %cst_67 {dimension_numbers = #tpu.dot_dimension_numbers<[1], [0], [0], [1], [0, 0, 1, 1], [], []>} : vector<16x128xbf16>, vector<128x32xbf16>, vector<16x32xf32> -> vector<16x32xf32>
    %c2 = arith.constant 2 : index
    %c0_68 = arith.constant 0 : index
    %184 = vector.load %arg2[%c2, %c0_68] : memref<6x32xf32, #tpu.memory_space<vmem>>, vector<1x32xf32>
    %185 = vector.broadcast %184 : vector<1x32xf32> to vector<16x32xf32>
    %186 = arith.addf %183, %185 : vector<16x32xf32>
    %187 = arith.addf %1, %186 : vector<16x32xf32>
    %c3 = arith.constant 3 : index
    %c0_69 = arith.constant 0 : index
    %188 = vector.load %arg2[%c3, %c0_69] : memref<6x32xf32, #tpu.memory_space<vmem>>, vector<1x32xf32>
    %c4 = arith.constant 4 : index
    %c0_70 = arith.constant 0 : index
    %189 = vector.load %arg2[%c4, %c0_70] : memref<6x32xf32, #tpu.memory_space<vmem>>, vector<1x32xf32>
    %cst_71 = arith.constant dense<0.000000e+00> : vector<16xf32>
    %190 = vector.multi_reduction <add>, %187, %cst_71 [1] : vector<16x32xf32> to vector<16xf32>
    %191 = vector.shape_cast %190 : vector<16xf32> to vector<16x1xf32>
    %cst_72 = arith.constant 3.200000e+01 : f32
    %192 = vector.broadcast %cst_72 : f32 to vector<16x1xf32>
    %193 = arith.divf %191, %192 : vector<16x1xf32>
    %194 = vector.broadcast %193 : vector<16x1xf32> to vector<16x32xf32>
    %195 = arith.subf %187, %194 : vector<16x32xf32>
    %196 = arith.mulf %195, %195 : vector<16x32xf32>
    %cst_73 = arith.constant dense<0.000000e+00> : vector<16xf32>
    %197 = vector.multi_reduction <add>, %196, %cst_73 [1] : vector<16x32xf32> to vector<16xf32>
    %198 = vector.shape_cast %197 : vector<16xf32> to vector<16x1xf32>
    %cst_74 = arith.constant 3.200000e+01 : f32
    %199 = vector.broadcast %cst_74 : f32 to vector<16x1xf32>
    %200 = arith.divf %198, %199 : vector<16x1xf32>
    %201 = vector.broadcast %193 : vector<16x1xf32> to vector<16x32xf32>
    %202 = arith.subf %187, %201 : vector<16x32xf32>
    %cst_75 = arith.constant 9.99999974E-6 : f32
    %203 = vector.broadcast %cst_75 : f32 to vector<16x1xf32>
    %204 = arith.addf %200, %203 : vector<16x1xf32>
    %205 = math.rsqrt %204 : vector<16x1xf32>
    %206 = vector.broadcast %205 : vector<16x1xf32> to vector<16x32xf32>
    %207 = arith.mulf %202, %206 : vector<16x32xf32>
    %208 = vector.broadcast %188 : vector<1x32xf32> to vector<16x32xf32>
    %209 = arith.mulf %207, %208 : vector<16x32xf32>
    %210 = vector.broadcast %189 : vector<1x32xf32> to vector<16x32xf32>
    %211 = arith.addf %209, %210 : vector<16x32xf32>
    %212 = arith.truncf %211 : vector<16x32xf32> to vector<16x32xbf16>
    %c0_76 = arith.constant 0 : index
    %c0_77 = arith.constant 0 : index
    %213 = vector.load %arg7[%c0_76, %c0_77] : memref<32x64xbf16, #tpu.memory_space<vmem>>, vector<32x64xbf16>
    %cst_78 = arith.constant dense<0.000000e+00> : vector<16x64xf32>
    %214 = tpu.matmul %212, %213, %cst_78 {dimension_numbers = #tpu.dot_dimension_numbers<[1], [0], [0], [1], [0, 0, 1, 1], [], []>} : vector<16x32xbf16>, vector<32x64xbf16>, vector<16x64xf32> -> vector<16x64xf32>
    %c0_79 = arith.constant 0 : index
    %c0_80 = arith.constant 0 : index
    %215 = vector.load %arg9[%c0_79, %c0_80] : memref<3x64xf32, #tpu.memory_space<vmem>>, vector<1x64xf32>
    %216 = vector.broadcast %215 : vector<1x64xf32> to vector<16x64xf32>
    %217 = arith.addf %214, %216 : vector<16x64xf32>
    %c0_81 = arith.constant 0 : index
    %c0_82 = arith.constant 0 : index
    %218 = vector.load %arg8[%c0_81, %c0_82] : memref<32x64xbf16, #tpu.memory_space<vmem>>, vector<32x64xbf16>
    %cst_83 = arith.constant dense<0.000000e+00> : vector<16x64xf32>
    %219 = tpu.matmul %212, %218, %cst_83 {dimension_numbers = #tpu.dot_dimension_numbers<[1], [0], [0], [1], [0, 0, 1, 1], [], []>} : vector<16x32xbf16>, vector<32x64xbf16>, vector<16x64xf32> -> vector<16x64xf32>
    %c1_84 = arith.constant 1 : index
    %c0_85 = arith.constant 0 : index
    %220 = vector.load %arg9[%c1_84, %c0_85] : memref<3x64xf32, #tpu.memory_space<vmem>>, vector<1x64xf32>
    %221 = vector.broadcast %220 : vector<1x64xf32> to vector<16x64xf32>
    %222 = arith.addf %219, %221 : vector<16x64xf32>
    %223 = arith.negf %222 : vector<16x64xf32>
    %224 = math.exp %223 : vector<16x64xf32>
    %cst_86 = arith.constant 1.000000e+00 : f32
    %225 = vector.broadcast %cst_86 : f32 to vector<16x64xf32>
    %226 = arith.addf %225, %224 : vector<16x64xf32>
    %227 = arith.divf %225, %226 : vector<16x64xf32>
    %228 = arith.mulf %217, %227 : vector<16x64xf32>
    %cst_87 = arith.constant 0.000000e+00 : f32
    %229 = vector.broadcast %cst_87 : f32 to vector<15x64xf32>
    %c0_88 = arith.constant 0 : index
    %c0_89 = arith.constant 0 : index
    %230 = vector.load %arg14[%c0_88, %c0_89] : memref<46x64xf32, #tpu.memory_space<vmem>>, vector<15x64xf32>
    tpu.vector_store %arg14[%c0_88, %c0_89], %229 {strides = array<i32>} : memref<46x64xf32, #tpu.memory_space<vmem>>, vector<15x64xf32>,
    %cst_90 = arith.constant 0.000000e+00 : f32
    %231 = vector.broadcast %cst_90 : f32 to vector<15x64xf32>
    %c31 = arith.constant 31 : index
    %c0_91 = arith.constant 0 : index
    %232 = vector.load %arg14[%c31, %c0_91] : memref<46x64xf32, #tpu.memory_space<vmem>>, vector<15x64xf32>
    tpu.vector_store %arg14[%c31, %c0_91], %231 {strides = array<i32>} : memref<46x64xf32, #tpu.memory_space<vmem>>, vector<15x64xf32>,
    %c15 = arith.constant 15 : index
    %c0_92 = arith.constant 0 : index
    %233 = vector.load %arg14[%c15, %c0_92] : memref<46x64xf32, #tpu.memory_space<vmem>>, vector<16x64xf32>
    tpu.vector_store %arg14[%c15, %c0_92], %228 {strides = array<i32>} : memref<46x64xf32, #tpu.memory_space<vmem>>, vector<16x64xf32>,
    %c0_93 = arith.constant 0 : index
    %c0_94 = arith.constant 0 : index
    %234 = vector.load %arg10[%c0_93, %c0_94] : memref<31x64xf32, #tpu.memory_space<vmem>>, vector<31x64xf32>
    %cst_95 = arith.constant 0.000000e+00 : f32
    %235 = vector.broadcast %cst_95 : f32 to vector<16x64xf32>
    %c0_96 = arith.constant 0 : index
    %c0_97 = arith.constant 0 : index
    %236 = vector.load %arg14[%c0_96, %c0_97] : memref<46x64xf32, #tpu.memory_space<vmem>>, vector<16x64xf32>
    %237 = vector.extract_strided_slice %234 {offsets = [0, 0], sizes = [1, 64], strides = [1, 1]} : vector<31x64xf32> to vector<1x64xf32>
    %238 = vector.broadcast %237 : vector<1x64xf32> to vector<16x64xf32>
    %239 = arith.mulf %236, %238 : vector<16x64xf32>
    %240 = arith.addf %235, %239 : vector<16x64xf32>
    %c1_98 = arith.constant 1 : index
    %c0_99 = arith.constant 0 : index
    %241 = vector.load %arg14[%c1_98, %c0_99] : memref<46x64xf32, #tpu.memory_space<vmem>>, vector<16x64xf32>
    %242 = vector.extract_strided_slice %234 {offsets = [1, 0], sizes = [1, 64], strides = [1, 1]} : vector<31x64xf32> to vector<1x64xf32>
    %243 = vector.broadcast %242 : vector<1x64xf32> to vector<16x64xf32>
    %244 = arith.mulf %241, %243 : vector<16x64xf32>
    %245 = arith.addf %240, %244 : vector<16x64xf32>
    %c2_100 = arith.constant 2 : index
    %c0_101 = arith.constant 0 : index
    %246 = vector.load %arg14[%c2_100, %c0_101] : memref<46x64xf32, #tpu.memory_space<vmem>>, vector<16x64xf32>
    %247 = vector.extract_strided_slice %234 {offsets = [2, 0], sizes = [1, 64], strides = [1, 1]} : vector<31x64xf32> to vector<1x64xf32>
    %248 = vector.broadcast %247 : vector<1x64xf32> to vector<16x64xf32>
    %249 = arith.mulf %246, %248 : vector<16x64xf32>
    %250 = arith.addf %245, %249 : vector<16x64xf32>
    %c3_102 = arith.constant 3 : index
    %c0_103 = arith.constant 0 : index
    %251 = vector.load %arg14[%c3_102, %c0_103] : memref<46x64xf32, #tpu.memory_space<vmem>>, vector<16x64xf32>
    %252 = vector.extract_strided_slice %234 {offsets = [3, 0], sizes = [1, 64], strides = [1, 1]} : vector<31x64xf32> to vector<1x64xf32>
    %253 = vector.broadcast %252 : vector<1x64xf32> to vector<16x64xf32>
    %254 = arith.mulf %251, %253 : vector<16x64xf32>
    %255 = arith.addf %250, %254 : vector<16x64xf32>
    %c4_104 = arith.constant 4 : index
    %c0_105 = arith.constant 0 : index
    %256 = vector.load %arg14[%c4_104, %c0_105] : memref<46x64xf32, #tpu.memory_space<vmem>>, vector<16x64xf32>
    %257 = vector.extract_strided_slice %234 {offsets = [4, 0], sizes = [1, 64], strides = [1, 1]} : vector<31x64xf32> to vector<1x64xf32>
    %258 = vector.broadcast %257 : vector<1x64xf32> to vector<16x64xf32>
    %259 = arith.mulf %256, %258 : vector<16x64xf32>
    %260 = arith.addf %255, %259 : vector<16x64xf32>
    %c5 = arith.constant 5 : index
    %c0_106 = arith.constant 0 : index
    %261 = vector.load %arg14[%c5, %c0_106] : memref<46x64xf32, #tpu.memory_space<vmem>>, vector<16x64xf32>
    %262 = vector.extract_strided_slice %234 {offsets = [5, 0], sizes = [1, 64], strides = [1, 1]} : vector<31x64xf32> to vector<1x64xf32>
    %263 = vector.broadcast %262 : vector<1x64xf32> to vector<16x64xf32>
    %264 = arith.mulf %261, %263 : vector<16x64xf32>
    %265 = arith.addf %260, %264 : vector<16x64xf32>
    %c6 = arith.constant 6 : index
    %c0_107 = arith.constant 0 : index
    %266 = vector.load %arg14[%c6, %c0_107] : memref<46x64xf32, #tpu.memory_space<vmem>>, vector<16x64xf32>
    %267 = vector.extract_strided_slice %234 {offsets = [6, 0], sizes = [1, 64], strides = [1, 1]} : vector<31x64xf32> to vector<1x64xf32>
    %268 = vector.broadcast %267 : vector<1x64xf32> to vector<16x64xf32>
    %269 = arith.mulf %266, %268 : vector<16x64xf32>
    %270 = arith.addf %265, %269 : vector<16x64xf32>
    %c7 = arith.constant 7 : index
    %c0_108 = arith.constant 0 : index
    %271 = vector.load %arg14[%c7, %c0_108] : memref<46x64xf32, #tpu.memory_space<vmem>>, vector<16x64xf32>
    %272 = vector.extract_strided_slice %234 {offsets = [7, 0], sizes = [1, 64], strides = [1, 1]} : vector<31x64xf32> to vector<1x64xf32>
    %273 = vector.broadcast %272 : vector<1x64xf32> to vector<16x64xf32>
    %274 = arith.mulf %271, %273 : vector<16x64xf32>
    %275 = arith.addf %270, %274 : vector<16x64xf32>
    %c8 = arith.constant 8 : index
    %c0_109 = arith.constant 0 : index
    %276 = vector.load %arg14[%c8, %c0_109] : memref<46x64xf32, #tpu.memory_space<vmem>>, vector<16x64xf32>
    %277 = vector.extract_strided_slice %234 {offsets = [8, 0], sizes = [1, 64], strides = [1, 1]} : vector<31x64xf32> to vector<1x64xf32>
    %278 = vector.broadcast %277 : vector<1x64xf32> to vector<16x64xf32>
    %279 = arith.mulf %276, %278 : vector<16x64xf32>
    %280 = arith.addf %275, %279 : vector<16x64xf32>
    %c9 = arith.constant 9 : index
    %c0_110 = arith.constant 0 : index
    %281 = vector.load %arg14[%c9, %c0_110] : memref<46x64xf32, #tpu.memory_space<vmem>>, vector<16x64xf32>
    %282 = vector.extract_strided_slice %234 {offsets = [9, 0], sizes = [1, 64], strides = [1, 1]} : vector<31x64xf32> to vector<1x64xf32>
    %283 = vector.broadcast %282 : vector<1x64xf32> to vector<16x64xf32>
    %284 = arith.mulf %281, %283 : vector<16x64xf32>
    %285 = arith.addf %280, %284 : vector<16x64xf32>
    %c10 = arith.constant 10 : index
    %c0_111 = arith.constant 0 : index
    %286 = vector.load %arg14[%c10, %c0_111] : memref<46x64xf32, #tpu.memory_space<vmem>>, vector<16x64xf32>
    %287 = vector.extract_strided_slice %234 {offsets = [10, 0], sizes = [1, 64], strides = [1, 1]} : vector<31x64xf32> to vector<1x64xf32>
    %288 = vector.broadcast %287 : vector<1x64xf32> to vector<16x64xf32>
    %289 = arith.mulf %286, %288 : vector<16x64xf32>
    %290 = arith.addf %285, %289 : vector<16x64xf32>
    %c11 = arith.constant 11 : index
    %c0_112 = arith.constant 0 : index
    %291 = vector.load %arg14[%c11, %c0_112] : memref<46x64xf32, #tpu.memory_space<vmem>>, vector<16x64xf32>
    %292 = vector.extract_strided_slice %234 {offsets = [11, 0], sizes = [1, 64], strides = [1, 1]} : vector<31x64xf32> to vector<1x64xf32>
    %293 = vector.broadcast %292 : vector<1x64xf32> to vector<16x64xf32>
    %294 = arith.mulf %291, %293 : vector<16x64xf32>
    %295 = arith.addf %290, %294 : vector<16x64xf32>
    %c12 = arith.constant 12 : index
    %c0_113 = arith.constant 0 : index
    %296 = vector.load %arg14[%c12, %c0_113] : memref<46x64xf32, #tpu.memory_space<vmem>>, vector<16x64xf32>
    %297 = vector.extract_strided_slice %234 {offsets = [12, 0], sizes = [1, 64], strides = [1, 1]} : vector<31x64xf32> to vector<1x64xf32>
    %298 = vector.broadcast %297 : vector<1x64xf32> to vector<16x64xf32>
    %299 = arith.mulf %296, %298 : vector<16x64xf32>
    %300 = arith.addf %295, %299 : vector<16x64xf32>
    %c13 = arith.constant 13 : index
    %c0_114 = arith.constant 0 : index
    %301 = vector.load %arg14[%c13, %c0_114] : memref<46x64xf32, #tpu.memory_space<vmem>>, vector<16x64xf32>
    %302 = vector.extract_strided_slice %234 {offsets = [13, 0], sizes = [1, 64], strides = [1, 1]} : vector<31x64xf32> to vector<1x64xf32>
    %303 = vector.broadcast %302 : vector<1x64xf32> to vector<16x64xf32>
    %304 = arith.mulf %301, %303 : vector<16x64xf32>
    %305 = arith.addf %300, %304 : vector<16x64xf32>
    %c14 = arith.constant 14 : index
    %c0_115 = arith.constant 0 : index
    %306 = vector.load %arg14[%c14, %c0_115] : memref<46x64xf32, #tpu.memory_space<vmem>>, vector<16x64xf32>
    %307 = vector.extract_strided_slice %234 {offsets = [14, 0], sizes = [1, 64], strides = [1, 1]} : vector<31x64xf32> to vector<1x64xf32>
    %308 = vector.broadcast %307 : vector<1x64xf32> to vector<16x64xf32>
    %309 = arith.mulf %306, %308 : vector<16x64xf32>
    %310 = arith.addf %305, %309 : vector<16x64xf32>
    %c15_116 = arith.constant 15 : index
    %c0_117 = arith.constant 0 : index
    %311 = vector.load %arg14[%c15_116, %c0_117] : memref<46x64xf32, #tpu.memory_space<vmem>>, vector<16x64xf32>
    %312 = vector.extract_strided_slice %234 {offsets = [15, 0], sizes = [1, 64], strides = [1, 1]} : vector<31x64xf32> to vector<1x64xf32>
    %313 = vector.broadcast %312 : vector<1x64xf32> to vector<16x64xf32>
    %314 = arith.mulf %311, %313 : vector<16x64xf32>
    %315 = arith.addf %310, %314 : vector<16x64xf32>
    %c16 = arith.constant 16 : index
    %c0_118 = arith.constant 0 : index
    %316 = vector.load %arg14[%c16, %c0_118] : memref<46x64xf32, #tpu.memory_space<vmem>>, vector<16x64xf32>
    %317 = vector.extract_strided_slice %234 {offsets = [16, 0], sizes = [1, 64], strides = [1, 1]} : vector<31x64xf32> to vector<1x64xf32>
    %318 = vector.broadcast %317 : vector<1x64xf32> to vector<16x64xf32>
    %319 = arith.mulf %316, %318 : vector<16x64xf32>
    %320 = arith.addf %315, %319 : vector<16x64xf32>
    %c17 = arith.constant 17 : index
    %c0_119 = arith.constant 0 : index
    %321 = vector.load %arg14[%c17, %c0_119] : memref<46x64xf32, #tpu.memory_space<vmem>>, vector<16x64xf32>
    %322 = vector.extract_strided_slice %234 {offsets = [17, 0], sizes = [1, 64], strides = [1, 1]} : vector<31x64xf32> to vector<1x64xf32>
    %323 = vector.broadcast %322 : vector<1x64xf32> to vector<16x64xf32>
    %324 = arith.mulf %321, %323 : vector<16x64xf32>
    %325 = arith.addf %320, %324 : vector<16x64xf32>
    %c18 = arith.constant 18 : index
    %c0_120 = arith.constant 0 : index
    %326 = vector.load %arg14[%c18, %c0_120] : memref<46x64xf32, #tpu.memory_space<vmem>>, vector<16x64xf32>
    %327 = vector.extract_strided_slice %234 {offsets = [18, 0], sizes = [1, 64], strides = [1, 1]} : vector<31x64xf32> to vector<1x64xf32>
    %328 = vector.broadcast %327 : vector<1x64xf32> to vector<16x64xf32>
    %329 = arith.mulf %326, %328 : vector<16x64xf32>
    %330 = arith.addf %325, %329 : vector<16x64xf32>
    %c19 = arith.constant 19 : index
    %c0_121 = arith.constant 0 : index
    %331 = vector.load %arg14[%c19, %c0_121] : memref<46x64xf32, #tpu.memory_space<vmem>>, vector<16x64xf32>
    %332 = vector.extract_strided_slice %234 {offsets = [19, 0], sizes = [1, 64], strides = [1, 1]} : vector<31x64xf32> to vector<1x64xf32>
    %333 = vector.broadcast %332 : vector<1x64xf32> to vector<16x64xf32>
    %334 = arith.mulf %331, %333 : vector<16x64xf32>
    %335 = arith.addf %330, %334 : vector<16x64xf32>
    %c20 = arith.constant 20 : index
    %c0_122 = arith.constant 0 : index
    %336 = vector.load %arg14[%c20, %c0_122] : memref<46x64xf32, #tpu.memory_space<vmem>>, vector<16x64xf32>
    %337 = vector.extract_strided_slice %234 {offsets = [20, 0], sizes = [1, 64], strides = [1, 1]} : vector<31x64xf32> to vector<1x64xf32>
    %338 = vector.broadcast %337 : vector<1x64xf32> to vector<16x64xf32>
    %339 = arith.mulf %336, %338 : vector<16x64xf32>
    %340 = arith.addf %335, %339 : vector<16x64xf32>
    %c21 = arith.constant 21 : index
    %c0_123 = arith.constant 0 : index
    %341 = vector.load %arg14[%c21, %c0_123] : memref<46x64xf32, #tpu.memory_space<vmem>>, vector<16x64xf32>
    %342 = vector.extract_strided_slice %234 {offsets = [21, 0], sizes = [1, 64], strides = [1, 1]} : vector<31x64xf32> to vector<1x64xf32>
    %343 = vector.broadcast %342 : vector<1x64xf32> to vector<16x64xf32>
    %344 = arith.mulf %341, %343 : vector<16x64xf32>
    %345 = arith.addf %340, %344 : vector<16x64xf32>
    %c22 = arith.constant 22 : index
    %c0_124 = arith.constant 0 : index
    %346 = vector.load %arg14[%c22, %c0_124] : memref<46x64xf32, #tpu.memory_space<vmem>>, vector<16x64xf32>
    %347 = vector.extract_strided_slice %234 {offsets = [22, 0], sizes = [1, 64], strides = [1, 1]} : vector<31x64xf32> to vector<1x64xf32>
    %348 = vector.broadcast %347 : vector<1x64xf32> to vector<16x64xf32>
    %349 = arith.mulf %346, %348 : vector<16x64xf32>
    %350 = arith.addf %345, %349 : vector<16x64xf32>
    %c23 = arith.constant 23 : index
    %c0_125 = arith.constant 0 : index
    %351 = vector.load %arg14[%c23, %c0_125] : memref<46x64xf32, #tpu.memory_space<vmem>>, vector<16x64xf32>
    %352 = vector.extract_strided_slice %234 {offsets = [23, 0], sizes = [1, 64], strides = [1, 1]} : vector<31x64xf32> to vector<1x64xf32>
    %353 = vector.broadcast %352 : vector<1x64xf32> to vector<16x64xf32>
    %354 = arith.mulf %351, %353 : vector<16x64xf32>
    %355 = arith.addf %350, %354 : vector<16x64xf32>
    %c24 = arith.constant 24 : index
    %c0_126 = arith.constant 0 : index
    %356 = vector.load %arg14[%c24, %c0_126] : memref<46x64xf32, #tpu.memory_space<vmem>>, vector<16x64xf32>
    %357 = vector.extract_strided_slice %234 {offsets = [24, 0], sizes = [1, 64], strides = [1, 1]} : vector<31x64xf32> to vector<1x64xf32>
    %358 = vector.broadcast %357 : vector<1x64xf32> to vector<16x64xf32>
    %359 = arith.mulf %356, %358 : vector<16x64xf32>
    %360 = arith.addf %355, %359 : vector<16x64xf32>
    %c25 = arith.constant 25 : index
    %c0_127 = arith.constant 0 : index
    %361 = vector.load %arg14[%c25, %c0_127] : memref<46x64xf32, #tpu.memory_space<vmem>>, vector<16x64xf32>
    %362 = vector.extract_strided_slice %234 {offsets = [25, 0], sizes = [1, 64], strides = [1, 1]} : vector<31x64xf32> to vector<1x64xf32>
    %363 = vector.broadcast %362 : vector<1x64xf32> to vector<16x64xf32>
    %364 = arith.mulf %361, %363 : vector<16x64xf32>
    %365 = arith.addf %360, %364 : vector<16x64xf32>
    %c26 = arith.constant 26 : index
    %c0_128 = arith.constant 0 : index
    %366 = vector.load %arg14[%c26, %c0_128] : memref<46x64xf32, #tpu.memory_space<vmem>>, vector<16x64xf32>
    %367 = vector.extract_strided_slice %234 {offsets = [26, 0], sizes = [1, 64], strides = [1, 1]} : vector<31x64xf32> to vector<1x64xf32>
    %368 = vector.broadcast %367 : vector<1x64xf32> to vector<16x64xf32>
    %369 = arith.mulf %366, %368 : vector<16x64xf32>
    %370 = arith.addf %365, %369 : vector<16x64xf32>
    %c27 = arith.constant 27 : index
    %c0_129 = arith.constant 0 : index
    %371 = vector.load %arg14[%c27, %c0_129] : memref<46x64xf32, #tpu.memory_space<vmem>>, vector<16x64xf32>
    %372 = vector.extract_strided_slice %234 {offsets = [27, 0], sizes = [1, 64], strides = [1, 1]} : vector<31x64xf32> to vector<1x64xf32>
    %373 = vector.broadcast %372 : vector<1x64xf32> to vector<16x64xf32>
    %374 = arith.mulf %371, %373 : vector<16x64xf32>
    %375 = arith.addf %370, %374 : vector<16x64xf32>
    %c28 = arith.constant 28 : index
    %c0_130 = arith.constant 0 : index
    %376 = vector.load %arg14[%c28, %c0_130] : memref<46x64xf32, #tpu.memory_space<vmem>>, vector<16x64xf32>
    %377 = vector.extract_strided_slice %234 {offsets = [28, 0], sizes = [1, 64], strides = [1, 1]} : vector<31x64xf32> to vector<1x64xf32>
    %378 = vector.broadcast %377 : vector<1x64xf32> to vector<16x64xf32>
    %379 = arith.mulf %376, %378 : vector<16x64xf32>
    %380 = arith.addf %375, %379 : vector<16x64xf32>
    %c29 = arith.constant 29 : index
    %c0_131 = arith.constant 0 : index
    %381 = vector.load %arg14[%c29, %c0_131] : memref<46x64xf32, #tpu.memory_space<vmem>>, vector<16x64xf32>
    %382 = vector.extract_strided_slice %234 {offsets = [29, 0], sizes = [1, 64], strides = [1, 1]} : vector<31x64xf32> to vector<1x64xf32>
    %383 = vector.broadcast %382 : vector<1x64xf32> to vector<16x64xf32>
    %384 = arith.mulf %381, %383 : vector<16x64xf32>
    %385 = arith.addf %380, %384 : vector<16x64xf32>
    %c30 = arith.constant 30 : index
    %c0_132 = arith.constant 0 : index
    %386 = vector.load %arg14[%c30, %c0_132] : memref<46x64xf32, #tpu.memory_space<vmem>>, vector<16x64xf32>
    %387 = vector.extract_strided_slice %234 {offsets = [30, 0], sizes = [1, 64], strides = [1, 1]} : vector<31x64xf32> to vector<1x64xf32>
    %388 = vector.broadcast %387 : vector<1x64xf32> to vector<16x64xf32>
    %389 = arith.mulf %386, %388 : vector<16x64xf32>
    %390 = arith.addf %385, %389 : vector<16x64xf32>
    %c2_133 = arith.constant 2 : index
    %c0_134 = arith.constant 0 : index
    %391 = vector.load %arg9[%c2_133, %c0_134] : memref<3x64xf32, #tpu.memory_space<vmem>>, vector<1x64xf32>
    %392 = vector.broadcast %391 : vector<1x64xf32> to vector<16x64xf32>
    %393 = arith.addf %390, %392 : vector<16x64xf32>
    %394 = arith.negf %393 : vector<16x64xf32>
    %395 = math.exp %394 : vector<16x64xf32>
    %cst_135 = arith.constant 1.000000e+00 : f32
    %396 = vector.broadcast %cst_135 : f32 to vector<16x64xf32>
    %397 = arith.addf %396, %395 : vector<16x64xf32>
    %398 = arith.divf %396, %397 : vector<16x64xf32>
    %399 = arith.mulf %393, %398 : vector<16x64xf32>
    %400 = arith.truncf %399 : vector<16x64xf32> to vector<16x64xbf16>
    %c0_136 = arith.constant 0 : index
    %c0_137 = arith.constant 0 : index
    %401 = vector.load %arg11[%c0_136, %c0_137] : memref<64x32xbf16, #tpu.memory_space<vmem>>, vector<64x32xbf16>
    %cst_138 = arith.constant dense<0.000000e+00> : vector<16x32xf32>
    %402 = tpu.matmul %400, %401, %cst_138 {dimension_numbers = #tpu.dot_dimension_numbers<[1], [0], [0], [1], [0, 0, 1, 1], [], []>} : vector<16x64xbf16>, vector<64x32xbf16>, vector<16x32xf32> -> vector<16x32xf32>
    %c5_139 = arith.constant 5 : index
    %c0_140 = arith.constant 0 : index
    %403 = vector.load %arg2[%c5_139, %c0_140] : memref<6x32xf32, #tpu.memory_space<vmem>>, vector<1x32xf32>
    %404 = vector.broadcast %403 : vector<1x32xf32> to vector<16x32xf32>
    %405 = arith.addf %402, %404 : vector<16x32xf32>
    %406 = arith.addf %187, %405 : vector<16x32xf32>
    %c0_141 = arith.constant 0 : index
    %c0_142 = arith.constant 0 : index
    %c0_143 = arith.constant 0 : index
    %407 = vector.load %arg12[%c0_141, %c0_142, %c0_143] : memref<1x16x32xf32, #tpu.memory_space<vmem>>, vector<1x16x32xf32>
    %408 = vector.shape_cast %407 : vector<1x16x32xf32> to vector<16x32xf32>
    %409 = vector.shape_cast %406 : vector<16x32xf32> to vector<1x16x32xf32>
    tpu.vector_store %arg12[%c0_141, %c0_142, %c0_143], %409 {strides = array<i32>} : memref<1x16x32xf32, #tpu.memory_space<vmem>>, vector<1x16x32xf32>,
    return
  }
  func.func @transform_0(%arg0: i32) -> (i32, i32, i32) {
    %c0_i32 = arith.constant 0 : i32
    %c0_i32_0 = arith.constant 0 : i32
    %c0_i32_1 = arith.constant 0 : i32
    return %arg0, %c0_i32, %c0_i32_0 : i32, i32, i32
  }
  func.func @transform_1(%arg0: i32) -> (i32, i32) {
    %c0_i32 = arith.constant 0 : i32
    %c0_i32_0 = arith.constant 0 : i32
    %c0_i32_1 = arith.constant 0 : i32
    return %c0_i32, %c0_i32_0 : i32, i32
  }
  func.func @transform_2(%arg0: i32) -> (i32, i32) {
    %c0_i32 = arith.constant 0 : i32
    %c0_i32_0 = arith.constant 0 : i32
    %c0_i32_1 = arith.constant 0 : i32
    return %c0_i32, %c0_i32_0 : i32, i32
  }
  func.func @transform_3(%arg0: i32) -> (i32, i32) {
    %c0_i32 = arith.constant 0 : i32
    %c0_i32_0 = arith.constant 0 : i32
    %c0_i32_1 = arith.constant 0 : i32
    return %c0_i32, %c0_i32_0 : i32, i32
  }
  func.func @transform_4(%arg0: i32) -> (i32, i32) {
    %c0_i32 = arith.constant 0 : i32
    %c0_i32_0 = arith.constant 0 : i32
    %c0_i32_1 = arith.constant 0 : i32
    return %c0_i32, %c0_i32_0 : i32, i32
  }
  func.func @transform_5(%arg0: i32) -> (i32, i32) {
    %c0_i32 = arith.constant 0 : i32
    %c0_i32_0 = arith.constant 0 : i32
    %c0_i32_1 = arith.constant 0 : i32
    return %c0_i32, %c0_i32_0 : i32, i32
  }
  func.func @transform_6(%arg0: i32) -> (i32, i32) {
    %c0_i32 = arith.constant 0 : i32
    %c0_i32_0 = arith.constant 0 : i32
    %c0_i32_1 = arith.constant 0 : i32
    return %c0_i32, %c0_i32_0 : i32, i32
  }
  func.func @transform_7(%arg0: i32) -> (i32, i32) {
    %c0_i32 = arith.constant 0 : i32
    %c0_i32_0 = arith.constant 0 : i32
    %c0_i32_1 = arith.constant 0 : i32
    return %c0_i32, %c0_i32_0 : i32, i32
  }
  func.func @transform_8(%arg0: i32) -> (i32, i32) {
    %c0_i32 = arith.constant 0 : i32
    %c0_i32_0 = arith.constant 0 : i32
    %c0_i32_1 = arith.constant 0 : i32
    return %c0_i32, %c0_i32_0 : i32, i32
  }
  func.func @transform_9(%arg0: i32) -> (i32, i32) {
    %c0_i32 = arith.constant 0 : i32
    %c0_i32_0 = arith.constant 0 : i32
    %c0_i32_1 = arith.constant 0 : i32
    return %c0_i32, %c0_i32_0 : i32, i32
  }
  func.func @transform_10(%arg0: i32) -> (i32, i32) {
    %c0_i32 = arith.constant 0 : i32
    %c0_i32_0 = arith.constant 0 : i32
    %c0_i32_1 = arith.constant 0 : i32
    return %c0_i32, %c0_i32_0 : i32, i32
  }
  func.func @transform_11(%arg0: i32) -> (i32, i32, i32) {
    %c0_i32 = arith.constant 0 : i32
    %c0_i32_0 = arith.constant 0 : i32
    %c0_i32_1 = arith.constant 0 : i32
    return %arg0, %c0_i32, %c0_i32_0 : i32, i32, i32
  }
}

</mosaic_0001>

<bundles_post_ra>
// kernel: encoder_forward.3
= control target key start
LH: loop header
LB: loop body
LE: loop exit
PB: predicated region body
PF: predicated region fallthrough
CT: control target
= control target key end

     0   :  { %s4067_s0 = inlined_call_operand.vmem [shape: f32[2,16,32], index: 0, kind: input, shape index: {}]   ;;  %s4068_s1 = inlined_call_operand.vmem [shape: f32[6,32], index: 1, kind: input, shape index: {}]   ;;  %s4069_s2 = inlined_call_operand.vmem [shape: bf16[32,384], index: 2, kind: input, shape index: {}]   ;;  %s4070_s3 = inlined_call_operand.vmem [shape: f32[1,384], index: 3, kind: input, shape index: {}]   ;;  %s4071_s4 = inlined_call_operand.vmem [shape: bf16[64,384], index: 4, kind: input, shape index: {}]   ;;  %s4072_s5 = inlined_call_operand.vmem [shape: bf16[128,32], index: 5, kind: input, shape index: {}]   ;;  %s4073_s6 = inlined_call_operand.vmem [shape: bf16[32,64], index: 6, kind: input, shape index: {}]   ;;  %s4074_s7 = inlined_call_operand.vmem [shape: bf16[32,64], index: 7, kind: input, shape index: {}]   ;;  %s4075_s8 = inlined_call_operand.vmem [shape: f32[3,64], index: 8, kind: input, shape index: {}]   ;;  %s4076_s9 = inlined_call_operand.vmem [shape: f32[31,64], index: 9, kind: input, shape index: {}]   ;;  %s4077_s10 = inlined_call_operand.vmem [shape: bf16[64,32], index: 10, kind: input, shape index: {}]   ;;  %s4078_s11 = inlined_call_operand.hbm [shape: f32[2,16,32], index: 11, kind: output, shape index: {}]  }
   0x1   :  { %4079 = sst [smem:[#allocation7_spill]] %s4067_s0 }
   0x2   :  { %16 = vsyncpa [#allocation5], 0 }
   0x3   :  { %18 = vsyncpa [#allocation5 + $0x1], 0  ;;  %s3298_s17 = smov 0   ;;  %s3300_s18 = smov 0  }
   0x4   :  { %s3302_s19 = smov 0   ;;  %s3304_s20 = smov 0  }
   0x5 LB: > { %s3319_s21 = sadd.s32 4294967295, %s3229_s20   ;;  %s2688_s22 = sadd.s32 4294967294, %s3229_s20   ;;  %s3229_s20 = sphi %s3304_s20, %s4091_s20   ;;  %s3225_s19 = sphi %s3302_s19, %s4090_s19   ;;  %s3221_s18 = sphi %s3300_s18, %s4089_s18   ;;  %s3217_s17 = sphi %s3298_s17, %s4088_s17  }
   0x6   : > { %s3323_s23 = sadd.s32 1, %s3229_s20   ;;  %s267_s24 = sadd.s32 1, %s3225_s19 }
   0x7   : > { %s264_s25 = ssub.s32 %s3229_s20, %s3323_s23  ;;  %p277_p0 = scmp.ne.s32.totalorder %s3225_s19, %s3221_s18 }
   0x8   : > { %p265_p1 = scmp.eq.s32.totalorder %s264_s25, 0  ;;  %p278_p2 = scmp.eq.s32.totalorder %s3319_s21, 1 }
   0x9   : > { %p283_p3 = scmp.ne.s32.totalorder %s3221_s18, %s3217_s17  ;;  %p284_p4 = scmp.eq.s32.totalorder %s2688_s22, 1 }
   0xa   : > { %s3334_s26 = scalar_select %p265_p1, %s3225_s19, %s267_s24  }
   0xb   : > { %p3336_p5 = por %p278_p2, %p277_p0  ;;  %p3340_p6 = por %p284_p4, %p283_p3 }
   0xc   : > { %p2691_p7 = scmp.ge.s32.totalorder %s3229_s20, 1  ;;  %p340_p8 = scmp.lt.s32.totalorder %s3229_s20, 3 }
   0xe   : > { %p341_p9 = pnand %p2691_p7, %p340_p8 }
   0xf   : > { %p380_p10 = scmp.lt.s32.totalorder (!%p341_p9), %s3319_s21, 1  ;;  %s4082_s0 = sld [smem:[#allocation7_spill]] (!%p341_p9) }
  0x10   : > { %344 = sbr.rel (%p341_p9) target bundleno = 2957 (0xb8d), region = 64  ;;  %s3234_s13 = smov (!%p341_p9), 64  }
  0x11   : > { %s377_s25 = sand.u32 (!%p341_p9), 1, %s3221_s18  }
  0x12   : > { %s2692_s12 = sshll.u32 (!%p341_p9), %s377_s25, 4 }
  0x13   : > { %s379_s15 = scalar_lea.vmem (!%p341_p9), [#allocation4], %s2692_s12 }
  0x14   : > { %s2626_s16 = sshll.u32 (!%p341_p9), %s379_s15, 4  ;;  %s4023_s16 = int_to_ptr.vmem [resolvable:$true] %s2626_s16 }
  0x15   : > { %s381_s29 = scalar_select %p380_p10, %s3319_s21, 1  ;;  %vm390_vm0 = vcmask 261120   ;;  %v3046_v14 = vld [vmem:[%s4069_s2 + $0x1c] ss:$12 sps:$4 sm:$0xff]   ;;  %v3048_v15 = vld [vmem:[%s4069_s2 + $0x18] ss:$12 sps:$4 sm:$0xff]   ;;  %v441_v45 = vlaneseq }
  0x16   : > { %v3231_v16 = vmov 0.0   ;;  %v3049_v17 = vld [vmem:[%s4069_s2 + $0x20] ss:$12 sps:$4 sm:$0xff]   ;;  %v3050_v18 = vld [vmem:[%s4069_s2 + $0x4] ss:$12 sps:$4 sm:$0xff]   ;;  %v3232_v19 = vmov 0   ;;  %503 = vmatprep.subr.bf16.mxu0 %v3046_v14 }
  0x17   : > { %s2788_s30 = sshll.u32 %s381_s29, 4  ;;  %2853 = vmatprep.subr.bf16.mxu1 %v3231_v16  ;;  %523 = vmatprep.mubr.bf16.mxu0 %v3232_v19  ;;  %v3052_v20 = vld [vmem:[%s4069_s2] ss:$12 sps:$4 sm:$0xff]   ;;  %v3053_v21 = vld [vmem:[%s4069_s2 + $0x8] ss:$12 sps:$4 sm:$0xff]   ;;  %vm3233_vm1 = vmmov 0  }
  0x18   : > { %s3351_s14 = scalar_lea.vmem %s4082_s0, %s2788_s30  ;;  %504 = vmatpush1.bf16.msra.mxu0 %v3048_v15  ;;  %2854 = vmatpush3.bf16.msra.mxu1 %v3049_v17  ;;  %v3386_v22 = vld [vmem:[%s4071_s4 + $0x4c] ss:$12 sps:$4 sm:$0xff]   ;;  %v2695_v31 = vld [vmem:[%s4068_s1] ss:$0 sm:$0xff]  ;;  %v2696_v35 = vld [vmem:[%s4068_s1 + $0x1] ss:$0 sm:$0xff] }
  0x19   : > { %v386_v0 = vld [vmem:[%s3351_s14] sm:$0xff]  ;;  %v387_v1 = vld [vmem:[%s3351_s14 + $0x8] sm:$0xff]  ;;  %505 = vmatprep.subr.bf16.mxu0 %v3050_v18  ;;  %2855 = vmatprep.subr.bf16.mxu1 %v3231_v16  ;;  %v3403_v40 = vld [vmem:[%s4071_s4 + $0x50] ss:$12 sps:$4 sm:$0xff]   ;;  %v3448_v49 = vshrl.u32 %v441_v45, 7  ;;  %vm667_vm2 = vcmask 523264  }
  0x1a   : > { %v391_v2 = vsel %vm390_vm0, %v386_v0, 0.0  ;;  %v394_v3 = vsel %vm390_vm0, %v387_v1, 0.0  ;;  %2857 = vmatprep.mubr.msk.bf16.mxu1 %vm3233_vm1, %v3231_v16  ;;  %v3398_v39 = vld [vmem:[%s4071_s4 + $0x48] ss:$12 sps:$4 sm:$0xff]   ;;  %v3417_v43 = vld [vmem:[%s4071_s4 + $0x30] ss:$12 sps:$4 sm:$0xff]  }
  0x1b   : > { %392 = vadd.xlane.f32.xlu0 %v391_v2  ;;  %v3408_v42 = vld [vmem:[%s4071_s4 + $0x34] ss:$12 sps:$4 sm:$0xff]   ;;  %v3422_v44 = vld [vmem:[%s4071_s4 + $0x38] ss:$12 sps:$4 sm:$0xff]   ;;  %v3435_v46 = vld [vmem:[%s4071_s4 + $0x1c] ss:$12 sps:$4 sm:$0xff]  }
  0x1c   : > { %506 = vmatpush1.bf16.msra.mxu0 %v3052_v20  ;;  %2856 = vmatpush3.bf16.msra.mxu1 %v3053_v21  ;;  %v3440_v47 = vld [vmem:[%s4071_s4 + $0x18] ss:$12 sps:$4 sm:$0xff]   ;;  %v3445_v48 = vld [vmem:[%s4071_s4 + $0x20] ss:$12 sps:$4 sm:$0xff]   ;;  %vm2208_vm3 = vcmask 522240   ;;  %2207 = vst.msk [vmem:[#allocation3] sm:$0xff] %vm667_vm2, %v3231_v16 }
  0x1d   : > { %2861 = vmatprep.subr.bf16.mxu1 %v3231_v16  ;;  %679 = vmatprep.subr.bf16.mxu0 %v3386_v22  ;;  %2210 = vst.msk [vmem:[#allocation3 + $0x1f] sm:$0xff] %vm667_vm2, %v3231_v16  ;;  %v3462_v50 = vld [vmem:[%s4071_s4 + $0x4] ss:$12 sps:$4 sm:$0xff]   ;;  %v3471_v52 = vld [vmem:[%s4071_s4] ss:$12 sps:$4 sm:$0xff]   ;;  %v3479_v54 = vsub.s32 0, %v3448_v49 }
  0x1e   : > { %2211 = vst.msk [vmem:[#allocation3 + $0x27] sm:$0x7f] %vm2208_vm3, %v3231_v16  ;;  %2209 = vst.msk [vmem:[#allocation3 + $0x8] sm:$0x7f] %vm2208_vm3, %v3231_v16  ;;  %v2214_v51 = vld [vmem:[%s4076_s9] sm:$0xff]  ;;  %v3483_v55 = vsub.s32 2, %v3448_v49 }
  0x1f   : > { %395 = vadd.xlane.f32.xlu0 %v394_v3  ;;  %v3476_v53 = vld [vmem:[%s4071_s4 + $0x8] ss:$12 sps:$4 sm:$0xff]   ;;  %v3486_v56 = vsub.s32 1, %v3448_v49  ;;  %v3491_v57 = vrot.slane %v2214_v51, %v3479_v54  ;;  %vm1024_vm4 = vcmask 130048   ;;  %vm1907_vm7 = vcmask 1048064   ;;  %s3169_s29 = scalar_lea.vmem %s4023_s16, 256 }
  0x20   : > { %v3496_v58 = vrot.slane %v2214_v51, %v3483_v55  ;;  %p3170_p11 = scmp.ne.s32.totalorder %s4023_s16, %s3169_s29  ;;  %s3235_s30 = smov [#allocation4]  }
  0x21   : > { %v3499_v59 = vrot.slane %v2214_v51, %v3486_v56  ;;  %s3173_s12 = sshll.u32 %s3235_s30, 4  ;;  %s3174_s12 = int_to_ptr.vmem [resolvable:$false] %s3173_s12 }
  0x22   : > { %p3171_p12 = pnand %p3170_p11, %p3336_p5  ;;  %p3176_p0 = scmp.lt.s32.totalorder %s4023_s16, %s3174_s12 }
  0x23   : > { %v2218_v60 = vld [vmem:[#allocation3] sm:$0xff] }
  0x24   : > { %v2224_v62 = vmul.f32 %v3491_v57, %v2218_v60  ;;  %p3172_p13 = pneg %p3171_p12 }
  0x25   : > { %v2238_v61 = vld [vmem:[#allocation3 + $0x2] sm:$0xff] }
  0x26   : > { %v2228_v63 = vld [vmem:[#allocation3 + $0x1] sm:$0xff] }
  0xa4   : > { %v393_v4 = vpop.xlane.xlu0 %392 }
  0xa5   : > { %v398_v5 = vmul.f32 0.03125, %v393_v4  ;;  %v439_v4 = vld [vmem:[%s4070_s3] sm:$0x7] }
  0xa7   : > { %v400_v6 = vsub.f32 %v386_v0, %v398_v5  ;;  %v2244_v0 = vmul.f32 %v3496_v58, %v2238_v61  ;;  %v444_v5 = vrot.slane %v439_v4, %v3479_v54 }
  0xa8   : > { %v396_v7 = vpop.xlane.xlu0 %395 }
  0xa9   : > { %v399_v8 = vmul.f32 0.03125, %v396_v7  ;;  %v402_v9 = vmul.f32 %v400_v6, %v400_v6 }
  0xab   : > { %v401_v10 = vsub.f32 %v387_v1, %v399_v8  ;;  %v404_v11 = vsel %vm390_vm0, %v402_v9, 0.0  ;;  %v2234_v1 = vmul.f32 %v3499_v59, %v2228_v63 }
  0xac   : > { %405 = vadd.xlane.f32.xlu1 %v404_v11 }
  0xad   : > { %v403_v12 = vmul.f32 %v401_v10, %v401_v10  ;;  %v2236_v2 = vadd.f32 %v2234_v1, %v2224_v62  ;;  %v592_v62 = vand.u32 127, %v441_v45 }
  0xaf   : > { %v407_v13 = vsel %vm390_vm0, %v403_v12, 0.0  ;;  %v3504_v3 = vadd.f32 %v2244_v0, %v2236_v2  ;;  %v3566_v0 = vadd.s32 256, %v592_v62 }
  0xb0   : > { %408 = vadd.xlane.f32.xlu1 %v407_v13 }
  0xb1   : > { %vm597_vm5 = vcmp.lt.s32.totalorder %v3566_v0, 266 }
  0xb2   : > { %vm3614_vm6 = vmpackc.low %vm597_vm5, %vm597_vm5 }
 0x135   : > { %v406_v23 = vpop.xlane.xlu1 %405 }
 0x136   : > { %v410_v24 = vmul.f32 0.03125, %v406_v23 }
 0x138   : > { %v412_v25 = vadd.f32 1e-05, %v410_v24 }
 0x139   : > { %v409_v26 = vpop.xlane.xlu1 %408 }
 0x13a   : > { %3086 = vrsqrt.f32 %v412_v25  ;;  %v411_v27 = vmul.f32 0.03125, %v409_v26 }
 0x13c   : > { %v413_v28 = vadd.f32 1e-05, %v411_v27 }
 0x13e   : > { %3088 = vrsqrt.f32 %v413_v28 }
 0x147   : > { %v3087_v29 = vpop.eup %3086 }
 0x148   : > { %v416_v30 = vmul.f32 %v3087_v29, %v400_v6  ;;  %v448_v6 = vrot.slane %v439_v4, %v3486_v56 }
 0x14a   : > { %v422_v34 = vmul.f32 %v2695_v31, %v416_v30 }
 0x14b   : > { %v3089_v32 = vpop.eup %3088 }
 0x14c   : > { %v417_v33 = vmul.f32 %v3089_v32, %v401_v10  ;;  %v428_v37 = vadd.f32 %v2696_v35, %v422_v34 }
 0x14e   : > { %v423_v36 = vmul.f32 %v2695_v31, %v417_v33 }
 0x150   : > { %v429_v38 = vadd.f32 %v2696_v35, %v423_v36  ;;  %v452_v36 = vrot.slane %v439_v4, %v3483_v55 }
 0x152   : > { %v430_v41 = vpack.c.bf16 %v429_v38, %v428_v37 }
 0x154   : > { %2703 = vmatmul.mubr.msk.bf16.vlgmr.msra.gmra.mxu0 %vm390_vm0, %v430_v41  ;;  %2858 = vmatmul.mubr.msk.bf16.vlgmr.msra.gmra.mxu1 %vm390_vm0, %v430_v41 }
 0x155   : > { %680 = vmatpush1.bf16.msra.mxu0 %v3398_v39  ;;  %2862 = vmatpush3.bf16.msra.mxu1 %v3403_v40 }
 0x156   : > { %681 = vmatprep.subr.bf16.mxu0 %v3408_v42  ;;  %2863 = vmatprep.subr.bf16.mxu1 %v3231_v16 }
 0x157   : > { %703 = vmatprep.mubr.bf16.mxu0 %v3232_v19  ;;  %2869 = vmatprep.mubr.msk.bf16.mxu1 %vm3233_vm1, %v3231_v16 }
 0x159   : > { %682 = vmatpush1.bf16.msra.mxu0 %v3417_v43  ;;  %2864 = vmatpush3.bf16.msra.mxu1 %v3422_v44 }
 0x15a   : > { %2865 = vmatprep.subr.bf16.mxu1 %v3231_v16  ;;  %683 = vmatprep.subr.bf16.mxu0 %v3435_v46 }
 0x15d   : > { %684 = vmatpush1.bf16.msra.mxu0 %v3440_v47  ;;  %2866 = vmatpush3.bf16.msra.mxu1 %v3445_v48 }
 0x15e   : > { %2867 = vmatprep.subr.bf16.mxu1 %v3231_v16  ;;  %685 = vmatprep.subr.bf16.mxu0 %v3462_v50 }
 0x161   : > { %686 = vmatpush1.bf16.msra.mxu0 %v3471_v52  ;;  %2868 = vmatpush3.bf16.msra.mxu1 %v3476_v53 }
 0x162   : > { %767 = vmatprep.subr.bf16.mxu0 %v3386_v22  ;;  %2873 = vmatprep.subr.bf16.mxu1 %v3231_v16 }
 0x214   : > { %v525_v7 = vpop.f32.mrf.mxu0  ;;  %v568_v8 = vpop.f32.mrf.mxu1 }
 0x215   : > { %v526_v11 = vadd.f32 %v525_v7, %v444_v5  ;;  %v569_v38 = vadd.f32 %v568_v8, %v452_v36 }
 0x216   : > { %v527_v9 = vpop.f32.mrf.mxu0  ;;  %v2859_v10 = vpop.f32.mrf.mxu1 }
 0x217   : > { %v528_v12 = vadd.f32 %v527_v9, %v448_v6  ;;  %v598_v21 = vmul.f32 0.35355338, %v526_v11 }
 0x218   : > { %v529_v13 = vpop.f32.mrf.mxu0  ;;  %v571_v14 = vpop.f32.mrf.mxu1 }
 0x219   : > { %v600_v15 = vmul.f32 0.35355338, %v528_v12  ;;  %v530_v17 = vadd.f32 %v529_v13, %v444_v5  ;;  %v3529_v31 = vmul.f32 %v598_v21, %v598_v21  ;;  %v572_v37 = vadd.f32 %v571_v14, %v452_v36 }
 0x21a   : > { %v531_v18 = vpop.f32.mrf.mxu0  ;;  %v2860_v20 = vpop.f32.mrf.mxu1 }
 0x21b   : > { %v599_v23 = vmul.f32 0.35355338, %v530_v17  ;;  %v532_v24 = vadd.f32 %v531_v18, %v448_v6  ;;  %v3511_v25 = vmul.f32 %v600_v15, %v600_v15  ;;  %v845_v32 = vsel %vm667_vm2, %v3529_v31, 0.0 }
 0x21c   : > { %v3558_v41 = vpack.c.bf16 %v572_v37, %v569_v38 }
 0x21d   : > { %v3513_v26 = vpack.c.bf16 %v599_v23, %v598_v21  ;;  %v601_v27 = vmul.f32 0.35355338, %v532_v24  ;;  %v855_v28 = vsel %vm667_vm2, %v3511_v25, 0.0  ;;  %v3540_v33 = vmul.f32 %v599_v23, %v599_v23 }
 0x21e   : > { %856 = vadd.xlane.f32.xlu0 %v855_v28 }
 0x21f   : > { %2717 = vmatmul.mubr.msk.bf16.vlgmr.msra.gmra.mxu0 %vm667_vm2, %v3513_v26  ;;  %2870 = vmatmul.mubr.msk.bf16.vlgmr.msra.gmra.mxu1 %vm667_vm2, %v3513_v26  ;;  %v3521_v29 = vmul.f32 %v601_v27, %v601_v27  ;;  %v848_v34 = vsel %vm667_vm2, %v3540_v33, 0.0  ;;  %v3550_v35 = vpack.c.bf16 %v601_v27, %v600_v15 }
 0x220   : > { %768 = vmatpush1.bf16.msra.mxu0 %v3398_v39  ;;  %2874 = vmatpush3.bf16.msra.mxu1 %v3403_v40 }
 0x221   : > { %v858_v30 = vsel %vm667_vm2, %v3521_v29, 0.0  ;;  %769 = vmatprep.subr.bf16.mxu0 %v3408_v42  ;;  %2875 = vmatprep.subr.bf16.mxu1 %v3231_v16 }
 0x222   : > { %859 = vadd.xlane.f32.xlu1 %v858_v30  ;;  %791 = vmatprep.mubr.bf16.mxu0 %v3232_v19 }
 0x223   : > { %2881 = vmatprep.mubr.msk.bf16.mxu1 %vm3233_vm1, %v3231_v16 }
 0x224   : > { %770 = vmatpush1.bf16.msra.mxu0 %v3417_v43  ;;  %2876 = vmatpush3.bf16.msra.mxu1 %v3422_v44 }
 0x225   : > { %771 = vmatprep.subr.bf16.mxu0 %v3435_v46  ;;  %2877 = vmatprep.subr.bf16.mxu1 %v3231_v16 }
 0x226   : > { %846 = vadd.xlane.f32.xlu1 %v845_v32 }
 0x228   : > { %772 = vmatpush1.bf16.msra.mxu0 %v3440_v47  ;;  %2878 = vmatpush3.bf16.msra.mxu1 %v3445_v48 }
 0x229   : > { %773 = vmatprep.subr.bf16.mxu0 %v3462_v50  ;;  %2879 = vmatprep.subr.bf16.mxu1 %v3231_v16 }
 0x22a   : > { %849 = vadd.xlane.f32.xlu1 %v848_v34 }
 0x22c   : > { %774 = vmatpush1.bf16.msra.mxu0 %v3471_v52  ;;  %2880 = vmatpush3.bf16.msra.mxu1 %v3476_v53 }
 0x22f   : > { %2719 = vmatmul.mubr.msk.bf16.vlgmr.msra.gmra.mxu0 %vm667_vm2, %v3550_v35  ;;  %2882 = vmatmul.mubr.msk.bf16.vlgmr.msra.gmra.mxu1 %vm667_vm2, %v3550_v35 }
 0x230   : > { %1069 = vmatprep.mubr.bf16.mxu0 %v3232_v19 }
 0x24b   : > { %1008 = vxpose.xlu0.c.b16.start.end [1/1] (short) (narrow) %v3558_v41, 64 }
 0x2a7   : > { %v857_v51 = vpop.xlane.xlu0 %856 }
 0x2a8   : > { %v861_v27 = vmul.f32 0.5, %v857_v51 }
 0x2ab   : > { %v860_v61 = vpop.xlane.xlu1 %859 }
 0x2ac   : > { %v862_v38 = vmul.f32 0.5, %v860_v61 }
 0x2ad   : > { %v3561_v60 = vpop.trf.xlu0 }
 0x2ae   : > { %2887 = vmatprep.mubr.msk.bf16.mxu1 %vm1024_vm4, %v3561_v60 }
 0x2af   : > { %v847_v63 = vpop.xlane.xlu1 %846 }
 0x2b0   : > { %v3569_v1 = vmul.f32 0.5, %v847_v63 }
 0x2b3   : > { %v850_v2 = vpop.xlane.xlu1 %849 }
 0x2b4   : > { %v3585_v11 = vmul.f32 0.5, %v850_v2 }
 0x2df   : > { %v3571_v4 = vpop.f32.mrf.mxu0  ;;  %v3573_v5 = vpop.f32.mrf.mxu1 }
 0x2e0   : > { %v883_v6 = vsub.f32 %v3571_v4, %v3569_v1  ;;  %v871_v7 = vsel %vm597_vm5, %v3573_v5, -1e+30 }
 0x2e1   : > { %v875_v8 = vmax.f32 %v3571_v4, %v871_v7  ;;  %v3583_v9 = vpop.f32.mrf.mxu0  ;;  %v2871_v10 = vpop.f32.mrf.mxu1 }
 0x2e3   : > { %v3587_v12 = vpop.f32.mrf.mxu0  ;;  %v3589_v13 = vpop.f32.mrf.mxu1  ;;  %v876_v14 = vmax.f32 %v875_v8, %v3583_v9 }
 0x2e4   : > { %v874_v17 = vsel %vm597_vm5, %v3589_v13, -1e+30  ;;  %v4086_v4 = vsub.f32 %v3587_v12, %v3585_v11 }
 0x2e5   : > { %v879_v20 = vmax.f32 %v3587_v12, %v874_v17  ;;  %v2872_v21 = vpop.f32.mrf.mxu1  ;;  %877 = vmax.xlane.f32.xlu1 %v876_v14  ;;  %v3600_v23 = vpop.f32.mrf.mxu0 }
 0x2e7   : > { %v880_v24 = vmax.f32 %v879_v20, %v3600_v23 }
 0x2e9   : > { %881 = vmax.xlane.f32.xlu1 %v880_v24 }
 0x2ef   : > { %v793_v28 = vpop.f32.mrf.mxu0  ;;  %v836_v30 = vpop.f32.mrf.mxu1 }
 0x2f0   : > { %v931_v32 = vsub.f32 %v793_v28, %v861_v27  ;;  %v933_v34 = vsub.f32 %v836_v30, %v861_v27 }
 0x2f1   : > { %v795_v36 = vpop.f32.mrf.mxu0  ;;  %v2883_v37 = vpop.f32.mrf.mxu1 }
 0x2f2   : > { %v937_v62 = vadd.f32 0.0001, %v931_v32  ;;  %v939_v63 = vadd.f32 0.0001, %v933_v34  ;;  %v932_v2 = vsub.f32 %v795_v36, %v861_v27 }
 0x2f3   : > { %v797_v7 = vpop.f32.mrf.mxu0  ;;  %v839_v8 = vpop.f32.mrf.mxu1 }
 0x2f4   : > { %v943_v10 = vmul.f32 1.442695, %v937_v62  ;;  %v947_v14 = vmul.f32 1.442695, %v939_v63  ;;  %v938_v17 = vadd.f32 0.0001, %v932_v2  ;;  %v934_v21 = vsub.f32 %v797_v7, %v862_v38 }
 0x2f5   : > { %v936_v18 = vsub.f32 %v839_v8, %v862_v38  ;;  %v799_v20 = vpop.f32.mrf.mxu0  ;;  %v2884_v24 = vpop.f32.mrf.mxu1 }
 0x2f6   : > { %v945_v51 = vmul.f32 1.442695, %v938_v17  ;;  %v940_v15 = vadd.f32 0.0001, %v934_v21  ;;  %v935_v45 = vsub.f32 %v799_v20, %v862_v38  ;;  %3090 = vpow2.f32 %v947_v14 }
 0x2f7   : > { %v942_v28 = vadd.f32 0.0001, %v936_v18  ;;  %3092 = vpow2.f32 %v943_v10 }
 0x2f8   : > { %v949_v30 = vmul.f32 1.442695, %v940_v15  ;;  %v941_v61 = vadd.f32 0.0001, %v935_v45  ;;  %3094 = vpow2.f32 %v945_v51 }
 0x2f9   : > { %v953_v32 = vmul.f32 1.442695, %v942_v28 }
 0x2fa   : > { %3096 = vpow2.f32 %v949_v30  ;;  %v951_v27 = vmul.f32 1.442695, %v941_v61  ;;  %1279 = vrot.lane.b32.xlu1 %v3513_v26, %s3234_s13 }
 0x2fb   : > { %3098 = vpow2.f32 %v953_v32 }
 0x2fc   : > { %3100 = vpow2.f32 %v951_v27 }
 0x2fe   : > { %1369 = vrot.lane.b32.xlu1 %v3550_v35, %s3234_s13  ;;  %v1017_v35 = vpop.trf.xlu0 }
 0x302   : > { %1476 = vrot.lane.b32.xlu1 %v3511_v25, %s3234_s13  ;;  %v1018_v51 = vpop.trf.xlu0 }
 0x303   : > { %v3091_v18 = vpop.eup %3090 }
 0x304   : > { %v3093_v34 = vpop.eup %3092  ;;  %v957_v36 = vmul.f32 0.061313935, %v3091_v18  ;;  %v4085_v18 = vsub.f32 %v3573_v5, %v3569_v1  ;;  %v4087_v5 = vsub.f32 %v3589_v13, %v3585_v11 }
 0x305   : > { %v3095_v15 = vpop.eup %3094  ;;  %v955_v38 = vmul.f32 0.061313935, %v3093_v34 }
 0x306   : > { %1478 = vrot.lane.b32.xlu1 %v3521_v29, %s3234_s13  ;;  %v956_v2 = vmul.f32 0.061313935, %v3095_v15  ;;  %v963_v29 = vsel %vm597_vm5, %v957_v36, 0.0  ;;  %v1019_v28 = vpop.trf.xlu0 }
 0x307   : > { %v3097_v45 = vpop.eup %3096 }
 0x308   : > { %v3099_v37 = vpop.eup %3098  ;;  %v958_v62 = vmul.f32 0.061313935, %v3097_v45  ;;  %v887_v45 = vsub.f32 %v3600_v23, %v3585_v11 }
 0x309   : > { %v3101_v26 = vpop.eup %3100  ;;  %v960_v63 = vmul.f32 0.061313935, %v3099_v37 }
 0x30a   : > { %v967_v7 = vadd.f32 %v958_v62, %v955_v38  ;;  %v959_v8 = vmul.f32 0.061313935, %v3101_v26  ;;  %v1005_v24 = vpack.c.bf16 %v958_v62, %v955_v38 }
 0x30b   : > { %v966_v10 = vsel %vm597_vm5, %v960_v63, 0.0  ;;  %v2726_v14 = vpack.c.bf16 %v960_v63, %v957_v36 }
 0x30c   : > { %v981_v17 = vadd.f32 %v966_v10, %v963_v29  ;;  %v974_v21 = vadd.f32 %v959_v8, %v956_v2  ;;  %v1006_v20 = vpack.c.bf16 %v959_v8, %v956_v2  ;;  %v968_v30 = vrot.slane %v967_v7, 4 }
 0x30d   : > { %2885 = vmatprep.subr.msk.bf16.mxu1 %vm3614_vm6, %v2726_v14 }
 0x30e   : > { %2886 = vmatpush3.bf16.msk.msra.mxu1 %vm3614_vm6, %v2726_v14  ;;  %1051 = vmatprep.subr.bf16.mxu0 %v1006_v20  ;;  %v975_v15 = vrot.slane %v974_v21, 4  ;;  %v969_v38 = vadd.f32 %v968_v30, %v967_v7  ;;  %v982_v62 = vrot.slane %v981_v17, 4 }
 0x30f   : > { %1052 = vmatpush1.bf16.msra.mxu0 %v1005_v24  ;;  %2895 = vmatprep.subr.bf16.mxu1 %v3231_v16 }
 0x310   : > { %v976_v23 = vadd.f32 %v975_v15, %v974_v21  ;;  %v983_v14 = vadd.f32 %v982_v62, %v981_v17  ;;  %v970_v12 = vrot.slane %v969_v38, 2 }
 0x311   : > { %2888 = vmatmul.mubr.msk.bf16.vlgmr.msra.gmra.mxu1 %vm1024_vm4, %v1017_v35 }
 0x312   : > { %2721 = vmatmul.mubr.msk.bf16.vlgmr.msra.gmra.mxu0 %vm1024_vm4, %v3561_v60  ;;  %2891 = vmatprep.mubr.msk.bf16.mxu1 %vm1024_vm4, %v1018_v51  ;;  %v884_v60 = vsub.f32 %v3583_v9, %v3569_v1  ;;  %v977_v20 = vrot.slane %v976_v23, 2  ;;  %v984_v11 = vrot.slane %v983_v14, 2  ;;  %v971_v13 = vadd.f32 %v970_v12, %v969_v38 }
 0x313   : > { %1079 = vmatprep.mubr.bf16.mxu0 %v3232_v19 }
 0x314   : > { %v978_v21 = vadd.f32 %v977_v20, %v976_v23  ;;  %v972_v30 = vrot.slane %v971_v13, 1 }
 0x316   : > { %v973_v38 = vadd.f32 %v972_v30, %v971_v13 }
 0x319   : > { %2892 = vmatmul.mubr.msk.bf16.gmra.mxu1 %vm1024_vm4, %v1019_v28 }
 0x31a   : > { %2722 = vmatmul.mubr.msk.bf16.gmra.mxu0 %vm1024_vm4, %v1017_v35  ;;  %2903 = vmatprep.mubr.msk.bf16.mxu1 %vm3233_vm1, %v3231_v16 }
 0x31b   : > { %1089 = vmatprep.mubr.bf16.mxu0 %v3232_v19 }
 0x322   : > { %2723 = vmatmul.mubr.msk.bf16.gmra.mxu0 %vm1024_vm4, %v1018_v51 }
 0x323   : > { %1099 = vmatprep.mubr.bf16.mxu0 %v3232_v19 }
 0x32a   : > { %2724 = vmatmul.mubr.msk.bf16.gmra.mxu0 %vm1024_vm4, %v1019_v28  ;;  %v985_v28 = vadd.f32 %v984_v11, %v983_v14 }
 0x36e   : > { %v878_v61 = vpop.xlane.xlu1 %877 }
 0x36f   : > { %v889_v32 = vsub.f32 %v883_v6, %v878_v61  ;;  %v890_v27 = vsub.f32 %v884_v60, %v878_v61  ;;  %v891_v34 = vsub.f32 %v4085_v18, %v878_v61 }
 0x371   : > { %v897_v36 = vsel %vm597_vm5, %v891_v34, -1e+30  ;;  %v901_v37 = vmul.f32 1.442695, %v889_v32  ;;  %v903_v9 = vmul.f32 1.442695, %v890_v27 }
 0x372   : > { %v905_v26 = vmul.f32 1.442695, %v897_v36  ;;  %v882_v63 = vpop.xlane.xlu1 %881  ;;  %v979_v32 = vrot.slane %v978_v21, 1 }
 0x373   : > { %3102 = vpow2.f32 %v901_v37  ;;  %v892_v6 = vsub.f32 %v4086_v4, %v882_v63  ;;  %v893_v1 = vsub.f32 %v887_v45, %v882_v63  ;;  %v894_v2 = vsub.f32 %v4087_v5, %v882_v63 }
 0x374   : > { %3104 = vpow2.f32 %v903_v9  ;;  %v986_v45 = vrot.slane %v985_v28, 1  ;;  %v980_v63 = vadd.f32 %v979_v32, %v978_v21 }
 0x375   : > { %3106 = vpow2.f32 %v905_v26  ;;  %v900_v8 = vsel %vm597_vm5, %v894_v2, -1e+30  ;;  %v907_v7 = vmul.f32 1.442695, %v892_v6  ;;  %v909_v35 = vmul.f32 1.442695, %v893_v1 }
 0x376   : > { %v911_v29 = vmul.f32 1.442695, %v900_v8  ;;  %v3660_v10 = vpop.permute.xlu1 %1279  ;;  %v987_v8 = vadd.f32 %v986_v45, %v985_v28 }
 0x377   : > { %3108 = vpow2.f32 %v907_v7 }
 0x378   : > { %3110 = vpow2.f32 %v909_v35 }
 0x379   : > { %3112 = vpow2.f32 %v911_v29 }
 0x37a   : > { %v3662_v24 = vpop.permute.xlu1 %1369 }
 0x37e   : > { %v1477_v51 = vpop.permute.xlu1 %1476 }
 0x37f   : > { %v1482_v60 = vsel %vm667_vm2, %v1477_v51, 0.0 }
 0x380   : > { %v3103_v61 = vpop.eup %3102  ;;  %1483 = vadd.xlane.f32.xlu0 %v1482_v60 }
 0x381   : > { %v3105_v27 = vpop.eup %3104  ;;  %v913_v17 = vadd.f32 0.0001, %v3103_v61 }
 0x382   : > { %v3107_v18 = vpop.eup %3106  ;;  %v1479_v34 = vpop.permute.xlu1 %1478  ;;  %v914_v15 = vadd.f32 0.0001, %v3105_v27 }
 0x383   : > { %v915_v36 = vadd.f32 0.0001, %v3107_v18  ;;  %v3665_v37 = vmul.f32 0.061313935, %v913_v17  ;;  %v1485_v9 = vsel %vm667_vm2, %v1479_v34, 0.0 }
 0x384   : > { %v3109_v62 = vpop.eup %3108  ;;  %1486 = vadd.xlane.f32.xlu1 %v1485_v9  ;;  %v920_v26 = vmul.f32 0.061313935, %v914_v15 }
 0x385   : > { %v3111_v4 = vpop.eup %3110  ;;  %v3668_v6 = vmul.f32 0.061313935, %v915_v36  ;;  %v916_v1 = vadd.f32 0.0001, %v3109_v62  ;;  %v988_v5 = vmul.f32 %v973_v38, %v3665_v37 }
 0x386   : > { %v3113_v2 = vpop.eup %3112  ;;  %v917_v23 = vadd.f32 0.0001, %v3111_v4  ;;  %v989_v7 = vmul.f32 %v980_v63, %v920_v26 }
 0x387   : > { %v918_v35 = vadd.f32 0.0001, %v3113_v2  ;;  %v3671_v29 = vmul.f32 0.061313935, %v916_v1  ;;  %v927_v14 = vsel %vm597_vm5, %v3668_v6, 0.0 }
 0x388   : > { %v923_v12 = vmul.f32 0.061313935, %v917_v23  ;;  %v990_v20 = vmul.f32 %v987_v8, %v927_v14  ;;  %v994_v11 = vadd.f32 %v989_v7, %v988_v5 }
 0x389   : > { %v924_v13 = vmul.f32 0.061313935, %v918_v35  ;;  %v1175_v21 = vpack.c.bf16 %v3671_v29, %v3665_v37  ;;  %v991_v51 = vmul.f32 %v973_v38, %v3671_v29 }
 0x38a   : > { %v1176_v60 = vpack.c.bf16 %v923_v12, %v920_v26  ;;  %v3679_v30 = vadd.f32 %v994_v11, %v990_v20  ;;  %v992_v28 = vmul.f32 %v980_v63, %v923_v12 }
 0x38b   : > { %v2733_v61 = vpack.c.bf16 %v924_v13, %v3668_v6  ;;  %v930_v32 = vsel %vm597_vm5, %v924_v13, 0.0 }
 0x38c   : > { %1222 = vmatprep.mubr.bf16.mxu0 %v1176_v60  ;;  %v993_v27 = vmul.f32 %v987_v8, %v930_v32  ;;  %v998_v17 = vadd.f32 %v992_v28, %v991_v51 }
 0x38e   : > { %v3684_v18 = vadd.f32 %v998_v17, %v993_v27 }
 0x396   : > { %1629 = vrot.lane.b32.xlu0 %v3558_v41, %s3234_s13 }
 0x39a   : > { %1460 = vrot.lane.b32.xlu0 %v3529_v31, %s3234_s13 }
 0x39e   : > { %1462 = vrot.lane.b32.xlu0 %v3540_v33, %s3234_s13 }
 0x3d1   : > { %v2889_v34 = vpop.f32.mrf.mxu1 }
 0x3d2   : > { %v1071_v15 = vpop.f32.mrf.mxu0 }
 0x3d3   : > { %v1144_v45 = vpop.f32.mrf.mxu1 }
 0x3d4   : > { %v1073_v36 = vpop.f32.mrf.mxu0 }
 0x3d5   : > { %v2890_v9 = vpop.f32.mrf.mxu1 }
 0x3d6   : > { %v1075_v38 = vpop.f32.mrf.mxu0  ;;  %v1183_v11 = vpack.c.bf16 %v2890_v9, %v2889_v34 }
 0x3d7   : > { %v1147_v62 = vpop.f32.mrf.mxu1 }
 0x3d8   : > { %v1077_v26 = vpop.f32.mrf.mxu0  ;;  %v1180_v27 = vpack.c.bf16 %v1147_v62, %v1144_v45  ;;  %v1178_v45 = vpack.c.bf16 %v1075_v38, %v1071_v15 }
 0x3d9   : > { %v2893_v63 = vpop.f32.mrf.mxu1  ;;  %v1179_v9 = vpack.c.bf16 %v1077_v26, %v1073_v36 }
 0x3da   : > { %v1081_v4 = vpop.f32.mrf.mxu0 }
 0x3db   : > { %v1160_v6 = vpop.f32.mrf.mxu1 }
 0x3dc   : > { %v1083_v1 = vpop.f32.mrf.mxu0 }
 0x3dd   : > { %v2894_v5 = vpop.f32.mrf.mxu1 }
 0x3de   : > { %v1189_v41 = vpack.c.bf16 %v2894_v5, %v2893_v63  ;;  %v1085_v2 = vpop.f32.mrf.mxu0 }
 0x3df   : > { %v1163_v23 = vpop.f32.mrf.mxu1  ;;  %v1181_v34 = vpack.c.bf16 %v1085_v2, %v1081_v4 }
 0x3e0   : > { %2896 = vmatpush3.bf16.xpose.msra.mxu1 %v1189_v41  ;;  %v1087_v31 = vpop.f32.mrf.mxu0  ;;  %v1186_v7 = vpack.c.bf16 %v1163_v23, %v1160_v6 }
 0x3e1   : > { %2897 = vmatprep.subr.bf16.mxu1 %v3231_v16  ;;  %v1182_v63 = vpack.c.bf16 %v1087_v31, %v1083_v1 }
 0x3e2   : > { %v1091_v33 = vpop.f32.mrf.mxu0 }
 0x3e4   : > { %v1093_v8 = vpop.f32.mrf.mxu0 }
 0x3e6   : > { %v1095_v35 = vpop.f32.mrf.mxu0 }
 0x3e7   : > { %v1184_v17 = vpack.c.bf16 %v1095_v35, %v1091_v33 }
 0x3e8   : > { %2898 = vmatpush3.bf16.xpose.msra.mxu1 %v1186_v7  ;;  %v1097_v14 = vpop.f32.mrf.mxu0 }
 0x3e9   : > { %2899 = vmatprep.subr.bf16.mxu1 %v3231_v16  ;;  %v1185_v32 = vpack.c.bf16 %v1097_v14, %v1093_v8 }
 0x3ea   : > { %v1101_v12 = vpop.f32.mrf.mxu0 }
 0x3ec   : > { %v1103_v20 = vpop.f32.mrf.mxu0 }
 0x3ee   : > { %v1105_v13 = vpop.f32.mrf.mxu0 }
 0x3ef   : > { %v1187_v28 = vpack.c.bf16 %v1105_v13, %v1101_v12 }
 0x3f0   : > { %2900 = vmatpush3.bf16.xpose.msra.mxu1 %v1183_v11  ;;  %v1107_v51 = vpop.f32.mrf.mxu0 }
 0x3f1   : > { %v1188_v60 = vpack.c.bf16 %v1107_v51, %v1103_v20  ;;  %2901 = vmatprep.subr.bf16.mxu1 %v3231_v16 }
 0x3f3   : > { %1198 = vmatprep.subr.bf16.mxu0 %v1188_v60 }
 0x3f4   : > { %1199 = vmatpush1.bf16.xpose.msra.mxu0 %v1187_v28 }
 0x3f5   : > { %1200 = vmatprep.subr.bf16.mxu0 %v1185_v32 }
 0x3f8   : > { %2902 = vmatpush3.bf16.xpose.msra.mxu1 %v1180_v27 }
 0x3f9   : > { %2907 = vmatprep.subr.bf16.mxu1 %v3231_v16 }
 0x3fc   : > { %1201 = vmatpush1.bf16.xpose.msra.mxu0 %v1184_v17 }
 0x3fd   : > { %1202 = vmatprep.subr.bf16.mxu0 %v1182_v63 }
 0x3ff   : > { %2904 = vmatmul.mubr.msk.bf16.vlgmr.msra.gmra.mxu1 %vm3614_vm6, %v2733_v61 }
 0x400   : > { %2908 = vmatpush3.bf16.msra.mxu1 %v3403_v40  ;;  %2915 = vmatprep.mubr.msk.bf16.mxu1 %vm3233_vm1, %v3231_v16 }
 0x401   : > { %2909 = vmatprep.subr.bf16.mxu1 %v3231_v16 }
 0x404   : > { %2910 = vmatpush3.bf16.msra.mxu1 %v3422_v44  ;;  %1203 = vmatpush1.bf16.xpose.msra.mxu0 %v1181_v34 }
 0x405   : > { %1204 = vmatprep.subr.bf16.mxu0 %v1179_v9  ;;  %2911 = vmatprep.subr.bf16.mxu1 %v3231_v16 }
 0x408   : > { %2912 = vmatpush3.bf16.msra.mxu1 %v3445_v48 }
 0x409   : > { %2913 = vmatprep.subr.bf16.mxu1 %v3231_v16  ;;  %v1484_v61 = vpop.xlane.xlu0 %1483 }
 0x40a   : > { %v1488_v26 = vmul.f32 0.5, %v1484_v61 }
 0x40c   : > { %2914 = vmatpush3.bf16.msra.mxu1 %v3476_v53  ;;  %1205 = vmatpush1.bf16.xpose.msra.mxu0 %v1178_v45 }
 0x40d   : > { %2919 = vmatprep.subr.bf16.mxu1 %v3231_v16  ;;  %v1630_v62 = vpop.permute.xlu0 %1629  ;;  %1292 = vmatprep.subr.bf16.mxu0 %v3386_v22 }
 0x40e   : > { %1632 = vxpose.xlu1.c.b16.start.end [1/1] (short) (narrow) %v1630_v62, 64 }
 0x40f   : > { %2916 = vmatmul.mubr.msk.bf16.vlgmr.msra.gmra.mxu1 %vm667_vm2, %v3660_v10 }
 0x410   : > { %2920 = vmatpush3.bf16.msra.mxu1 %v3403_v40  ;;  %2927 = vmatprep.mubr.msk.bf16.mxu1 %vm3233_vm1, %v3231_v16 }
 0x411   : > { %2921 = vmatprep.subr.bf16.mxu1 %v3231_v16  ;;  %v1461_v15 = vpop.permute.xlu0 %1460 }
 0x412   : > { %v1466_v36 = vsel %vm667_vm2, %v1461_v15, 0.0 }
 0x413   : > { %1223 = vmatmul.mubr.bf16.vlgmr.msra.gmra.mxu0 %v1175_v21  ;;  %1467 = vadd.xlane.f32.xlu0 %v1466_v36 }
 0x414   : > { %2922 = vmatpush3.bf16.msra.mxu1 %v3422_v44  ;;  %1293 = vmatpush1.bf16.msra.mxu0 %v3398_v39 }
 0x415   : > { %2923 = vmatprep.subr.bf16.mxu1 %v3231_v16  ;;  %1294 = vmatprep.subr.bf16.mxu0 %v3408_v42  ;;  %v1463_v40 = vpop.permute.xlu0 %1462 }
 0x416   : > { %1316 = vmatprep.mubr.bf16.mxu0 %v3232_v19  ;;  %v1469_v44 = vsel %vm667_vm2, %v1463_v40, 0.0 }
 0x418   : > { %2924 = vmatpush3.bf16.msra.mxu1 %v3445_v48  ;;  %1295 = vmatpush1.bf16.msra.mxu0 %v3417_v43 }
 0x419   : > { %2925 = vmatprep.subr.bf16.mxu1 %v3231_v16  ;;  %1296 = vmatprep.subr.bf16.mxu0 %v3435_v46 }
 0x41c   : > { %2926 = vmatpush3.bf16.msra.mxu1 %v3476_v53  ;;  %1297 = vmatpush1.bf16.msra.mxu0 %v3440_v47 }
 0x41d   : > { %1298 = vmatprep.subr.bf16.mxu0 %v3462_v50 }
 0x41f   : > { %2928 = vmatmul.mubr.msk.bf16.vlgmr.msra.gmra.mxu1 %vm667_vm2, %v3662_v24 }
 0x420   : > { %1299 = vmatpush1.bf16.msra.mxu0 %v3471_v52 }
 0x421   : > { %1382 = vmatprep.subr.bf16.mxu0 %v3386_v22  ;;  %v1487_v22 = vpop.xlane.xlu1 %1486 }
 0x422   : > { %v1489_v5 = vmul.f32 0.5, %v1487_v22 }
 0x423   : > { %2735 = vmatmul.mubr.msk.bf16.vlgmr.msra.gmra.mxu0 %vm667_vm2, %v3660_v10 }
 0x424   : > { %1383 = vmatpush1.bf16.msra.mxu0 %v3398_v39  ;;  %1406 = vmatprep.mubr.bf16.mxu0 %v3232_v19 }
 0x425   : > { %1384 = vmatprep.subr.bf16.mxu0 %v3408_v42 }
 0x427   : > { %1470 = vadd.xlane.f32.xlu1 %v1469_v44 }
 0x428   : > { %1385 = vmatpush1.bf16.msra.mxu0 %v3417_v43 }
 0x429   : > { %1386 = vmatprep.subr.bf16.mxu0 %v3435_v46 }
 0x42c   : > { %1387 = vmatpush1.bf16.msra.mxu0 %v3440_v47 }
 0x42d   : > { %1388 = vmatprep.subr.bf16.mxu0 %v3462_v50 }
 0x430   : > { %1389 = vmatpush1.bf16.msra.mxu0 %v3471_v52 }
 0x433   : > { %2737 = vmatmul.mubr.msk.bf16.vlgmr.msra.gmra.mxu0 %vm667_vm2, %v3662_v24 }
 0x434   : > { %1692 = vmatprep.mubr.bf16.mxu0 %v3232_v19 }
 0x470   : > { %v3749_v39 = vpop.trf.xlu1 }
 0x471   : > { %2933 = vmatprep.mubr.msk.bf16.mxu1 %vm1024_vm4, %v3749_v39 }
 0x4bf   : > { %v1265_v42 = vpop.f32.mrf.mxu1 }
 0x4c1   : > { %v2905_v43 = vpop.f32.mrf.mxu1 }
 0x4c3   : > { %v1268_v46 = vpop.f32.mrf.mxu1 }
 0x4c5   : > { %v2906_v48 = vpop.f32.mrf.mxu1 }
 0x4cf   : > { %v3753_v47 = vpop.f32.mrf.mxu1 }
 0x4d0   : > { %v1492_v2 = vsel %vm597_vm5, %v3753_v47, -1e+30 }
 0x4d1   : > { %v2917_v50 = vpop.f32.mrf.mxu1 }
 0x4d2   : > { %v1641_v50 = vpop.trf.xlu1 }
 0x4d3   : > { %v3755_v53 = vpop.f32.mrf.mxu1  ;;  %v1224_v52 = vpop.f32.mrf.mxu0 }
 0x4d4   : > { %v3757_v10 = vadd.f32 %v1265_v42, %v1224_v52  ;;  %v1495_v11 = vsel %vm597_vm5, %v3755_v53, -1e+30 }
 0x4d5   : > { %v2918_v24 = vpop.f32.mrf.mxu1  ;;  %v1226_v37 = vpop.f32.mrf.mxu0 }
 0x4d7   : > { %v1227_v29 = vpop.f32.mrf.mxu0 }
 0x4d8   : > { %v3759_v21 = vadd.f32 %v1268_v46, %v1227_v29 }
 0x4d9   : > { %v1229_v38 = vpop.f32.mrf.mxu0 }
 0x4df   : > { %v1451_v4 = vpop.f32.mrf.mxu1 }
 0x4e0   : > { %v1554_v6 = vsub.f32 %v1451_v4, %v1488_v26 }
 0x4e1   : > { %v2929_v1 = vpop.f32.mrf.mxu1 }
 0x4e2   : > { %v1560_v41 = vadd.f32 0.0001, %v1554_v6  ;;  %v1642_v6 = vpop.trf.xlu1 }
 0x4e3   : > { %v1454_v31 = vpop.f32.mrf.mxu1  ;;  %v3764_v23 = vpop.f32.mrf.mxu0 }
 0x4e4   : > { %v1568_v33 = vmul.f32 1.442695, %v1560_v41  ;;  %v1557_v8 = vsub.f32 %v1454_v31, %v1489_v5  ;;  %v1496_v7 = vmax.f32 %v3764_v23, %v1492_v2 }
 0x4e5   : > { %v2930_v35 = vpop.f32.mrf.mxu1  ;;  %v3767_v14 = vpop.f32.mrf.mxu0 }
 0x4e6   : > { %3114 = vpow2.f32 %v1568_v33  ;;  %v1563_v12 = vadd.f32 0.0001, %v1557_v8  ;;  %v1497_v20 = vmax.f32 %v1496_v7, %v3767_v14  ;;  %v1643_v1 = vpop.trf.xlu1 }
 0x4e7   : > { %v3773_v13 = vpop.f32.mrf.mxu0 }
 0x4e8   : > { %v1574_v51 = vmul.f32 1.442695, %v1563_v12  ;;  %v1500_v60 = vmax.f32 %v3773_v13, %v1495_v11  ;;  %1498 = vmax.xlane.f32.xlu0 %v1497_v20 }
 0x4e9   : > { %v3776_v28 = vpop.f32.mrf.mxu0 }
 0x4ea   : > { %3116 = vpow2.f32 %v1574_v51  ;;  %v1501_v32 = vmax.f32 %v1500_v60, %v3776_v28  ;;  %v1468_v60 = vpop.xlane.xlu0 %1467 }
 0x4ec   : > { %1502 = vmax.xlane.f32.xlu0 %v1501_v32  ;;  %v1472_v32 = vmul.f32 0.5, %v1468_v60 }
 0x4f3   : > { %v3115_v27 = vpop.eup %3114  ;;  %v1408_v17 = vpop.f32.mrf.mxu0 }
 0x4f4   : > { %v1552_v63 = vsub.f32 %v1408_v17, %v1488_v26  ;;  %v1578_v9 = vmul.f32 0.061313935, %v3115_v27  ;;  %v1471_v27 = vpop.xlane.xlu1 %1470  ;;  %v1506_v17 = vsub.f32 %v3753_v47, %v1472_v32 }
 0x4f5   : > { %v1410_v34 = vpop.f32.mrf.mxu0 }
 0x4f6   : > { %v1558_v61 = vadd.f32 0.0001, %v1552_v63  ;;  %v1553_v45 = vsub.f32 %v1410_v34, %v1488_v26  ;;  %v1584_v43 = vsel %vm597_vm5, %v1578_v9, 0.0  ;;  %v1504_v63 = vsub.f32 %v3764_v23, %v1472_v32 }
 0x4f7   : > { %v3117_v62 = vpop.eup %3116  ;;  %v1412_v15 = vpop.f32.mrf.mxu0  ;;  %v1473_v34 = vmul.f32 0.5, %v1471_v27 }
 0x4f8   : > { %v1581_v36 = vmul.f32 0.061313935, %v3117_v62  ;;  %v1564_v40 = vmul.f32 1.442695, %v1558_v61  ;;  %v1559_v44 = vadd.f32 0.0001, %v1553_v45  ;;  %v1555_v22 = vsub.f32 %v1412_v15, %v1489_v5 }
 0x4f9   : > { %v1414_v42 = vpop.f32.mrf.mxu0 }
 0x4fa   : > { %v1587_v46 = vsel %vm597_vm5, %v1581_v36, 0.0  ;;  %v1561_v48 = vadd.f32 0.0001, %v1555_v22  ;;  %v1566_v24 = vmul.f32 1.442695, %v1559_v44  ;;  %v1556_v37 = vsub.f32 %v1414_v42, %v1489_v5 }
 0x4fb   : > { %v3783_v52 = vadd.f32 %v1587_v46, %v1584_v43  ;;  %v2744_v29 = vpack.c.bf16 %v1581_v36, %v1578_v9  ;;  %3118 = vpow2.f32 %v1564_v40  ;;  %v1509_v36 = vsub.f32 %v3755_v53, %v1473_v34 }
 0x4fc   : > { %v1570_v38 = vmul.f32 1.442695, %v1561_v48  ;;  %v1562_v26 = vadd.f32 0.0001, %v1556_v37  ;;  %v1508_v44 = vsub.f32 %v3776_v28, %v1473_v34 }
 0x4fd   : > { %2931 = vmatprep.subr.msk.bf16.mxu1 %vm3614_vm6, %v2744_v29 }
 0x4fe   : > { %3120 = vpow2.f32 %v1570_v38  ;;  %2932 = vmatpush3.bf16.msk.msra.mxu1 %vm3614_vm6, %v2744_v29  ;;  %v1572_v4 = vmul.f32 1.442695, %v1562_v26 }
 0x4ff   : > { %3122 = vpow2.f32 %v1566_v24  ;;  %2941 = vmatprep.subr.bf16.mxu1 %v3231_v16 }
 0x500   : > { %3124 = vpow2.f32 %v1572_v4 }
 0x501   : > { %2934 = vmatmul.mubr.msk.bf16.vlgmr.msra.gmra.mxu1 %vm1024_vm4, %v1641_v50 }
 0x502   : > { %2937 = vmatprep.mubr.msk.bf16.mxu1 %vm1024_vm4, %v1642_v6 }
 0x508   : > { %v3119_v5 = vpop.eup %3118 }
 0x509   : > { %2938 = vmatmul.mubr.msk.bf16.gmra.mxu1 %vm1024_vm4, %v1643_v1  ;;  %v1576_v31 = vmul.f32 0.061313935, %v3119_v5 }
 0x50a   : > { %2949 = vmatprep.mubr.msk.bf16.mxu1 %vm3233_vm1, %v3231_v16 }
 0x50b   : > { %v3121_v41 = vpop.eup %3120 }
 0x50c   : > { %v3123_v2 = vpop.eup %3122  ;;  %v1579_v33 = vmul.f32 0.061313935, %v3121_v41 }
 0x50d   : > { %v3125_v8 = vpop.eup %3124  ;;  %v1577_v35 = vmul.f32 0.061313935, %v3123_v2 }
 0x50e   : > { %v1588_v7 = vadd.f32 %v1579_v33, %v1576_v31  ;;  %v1580_v12 = vmul.f32 0.061313935, %v3125_v8  ;;  %v1625_v51 = vpack.c.bf16 %v1579_v33, %v1576_v31 }
 0x510   : > { %v1595_v20 = vadd.f32 %v1580_v12, %v1577_v35  ;;  %v1626_v11 = vpack.c.bf16 %v1580_v12, %v1577_v35  ;;  %v1589_v9 = vrot.slane %v1588_v7, 4 }
 0x512   : > { %1674 = vmatprep.subr.bf16.mxu0 %v1626_v11  ;;  %v1596_v40 = vrot.slane %v1595_v20, 4  ;;  %v1590_v42 = vadd.f32 %v1589_v9, %v1588_v7 }
 0x513   : > { %1675 = vmatpush1.bf16.msra.mxu0 %v1625_v51 }
 0x514   : > { %v1597_v53 = vadd.f32 %v1596_v40, %v1595_v20  ;;  %v1591_v26 = vrot.slane %v1590_v42, 2 }
 0x516   : > { %2739 = vmatmul.mubr.msk.bf16.vlgmr.msra.gmra.mxu0 %vm1024_vm4, %v3749_v39  ;;  %v1505_v39 = vsub.f32 %v3767_v14, %v1472_v32  ;;  %v1603_v14 = vrot.slane %v3783_v52, 4  ;;  %v1598_v4 = vrot.slane %v1597_v53, 2 }
 0x517   : > { %1702 = vmatprep.mubr.bf16.mxu0 %v3232_v19 }
 0x518   : > { %v1604_v38 = vadd.f32 %v1603_v14, %v3783_v52  ;;  %v1599_v5 = vadd.f32 %v1598_v4, %v1597_v53 }
 0x51a   : > { %v1600_v33 = vrot.slane %v1599_v5, 1 }
 0x51c   : > { %v1601_v27 = vadd.f32 %v1600_v33, %v1599_v5 }
 0x51e   : > { %2740 = vmatmul.mubr.msk.bf16.gmra.mxu0 %vm1024_vm4, %v1641_v50 }
 0x51f   : > { %1712 = vmatprep.mubr.bf16.mxu0 %v3232_v19 }
 0x526   : > { %2741 = vmatmul.mubr.msk.bf16.gmra.mxu0 %vm1024_vm4, %v1642_v6  ;;  %v1605_v6 = vrot.slane %v1604_v38, 2 }
 0x527   : > { %1722 = vmatprep.mubr.bf16.mxu0 %v3232_v19  ;;  %v1507_v19 = vsub.f32 %v3773_v13, %v1473_v34 }
 0x528   : > { %v1606_v41 = vadd.f32 %v1605_v6, %v1604_v38 }
 0x52a   : > { %v1607_v20 = vrot.slane %v1606_v41, 1 }
 0x52e   : > { %2742 = vmatmul.mubr.msk.bf16.gmra.mxu0 %vm1024_vm4, %v1643_v1  ;;  %v1592_v1 = vadd.f32 %v1591_v26, %v1590_v42 }
 0x530   : > { %v1593_v2 = vrot.slane %v1592_v1, 1 }
 0x532   : > { %v1594_v52 = vadd.f32 %v1593_v2, %v1592_v1 }
 0x571   : > { %v1499_v61 = vpop.xlane.xlu0 %1498 }
 0x572   : > { %v1510_v45 = vsub.f32 %v1504_v63, %v1499_v61  ;;  %v1511_v62 = vsub.f32 %v1505_v39, %v1499_v61  ;;  %v1512_v15 = vsub.f32 %v1506_v17, %v1499_v61 }
 0x574   : > { %v1518_v47 = vsel %vm597_vm5, %v1512_v15, -1e+30  ;;  %v1522_v22 = vmul.f32 1.442695, %v1510_v45  ;;  %v1524_v23 = vmul.f32 1.442695, %v1511_v62  ;;  %v1608_v45 = vadd.f32 %v1607_v20, %v1606_v41 }
 0x575   : > { %v1526_v43 = vmul.f32 1.442695, %v1518_v47  ;;  %v1503_v46 = vpop.xlane.xlu0 %1502 }
 0x576   : > { %3126 = vpow2.f32 %v1522_v22  ;;  %v1513_v48 = vsub.f32 %v1507_v19, %v1503_v46  ;;  %v1514_v50 = vsub.f32 %v1508_v44, %v1503_v46  ;;  %v1515_v24 = vsub.f32 %v1509_v36, %v1503_v46 }
 0x577   : > { %3128 = vpow2.f32 %v1524_v23 }
 0x578   : > { %3130 = vpow2.f32 %v1526_v43  ;;  %v1521_v13 = vsel %vm597_vm5, %v1515_v24, -1e+30  ;;  %v1528_v28 = vmul.f32 1.442695, %v1513_v48  ;;  %v1530_v37 = vmul.f32 1.442695, %v1514_v50 }
 0x579   : > { %v1532_v29 = vmul.f32 1.442695, %v1521_v13 }
 0x57a   : > { %3132 = vpow2.f32 %v1528_v28 }
 0x57b   : > { %3134 = vpow2.f32 %v1530_v37 }
 0x57c   : > { %3136 = vpow2.f32 %v1532_v29 }
 0x583   : > { %v3127_v31 = vpop.eup %3126 }
 0x584   : > { %v3129_v8 = vpop.eup %3128  ;;  %v1534_v7 = vadd.f32 0.0001, %v3127_v31 }
 0x585   : > { %v3131_v35 = vpop.eup %3130  ;;  %v1535_v12 = vadd.f32 0.0001, %v3129_v8 }
 0x586   : > { %v1536_v11 = vadd.f32 0.0001, %v3131_v35  ;;  %v3815_v51 = vmul.f32 0.061313935, %v1534_v7 }
 0x587   : > { %v3133_v60 = vpop.eup %3132  ;;  %v1541_v32 = vmul.f32 0.061313935, %v1535_v12 }
 0x588   : > { %v3135_v17 = vpop.eup %3134  ;;  %v1542_v63 = vmul.f32 0.061313935, %v1536_v11  ;;  %v1609_v39 = vmul.f32 %v1594_v52, %v3815_v51  ;;  %v1537_v34 = vadd.f32 0.0001, %v3133_v60 }
 0x589   : > { %v3137_v9 = vpop.eup %3136  ;;  %v1538_v61 = vadd.f32 0.0001, %v3135_v17  ;;  %v1610_v62 = vmul.f32 %v1601_v27, %v1541_v32 }
 0x58a   : > { %v1548_v15 = vsel %vm597_vm5, %v1542_v63, 0.0  ;;  %v1539_v36 = vadd.f32 0.0001, %v3137_v9  ;;  %v3820_v19 = vmul.f32 0.061313935, %v1537_v34 }
 0x58b   : > { %v1544_v40 = vmul.f32 0.061313935, %v1538_v61  ;;  %v1611_v44 = vmul.f32 %v1608_v45, %v1548_v15  ;;  %v1615_v47 = vadd.f32 %v1610_v62, %v1609_v39 }
 0x58c   : > { %v1545_v22 = vmul.f32 0.061313935, %v1539_v36  ;;  %v1612_v23 = vmul.f32 %v1594_v52, %v3820_v19  ;;  %v1798_v14 = vpack.c.bf16 %v3820_v19, %v3815_v51  ;;  %v3070_v19 = vld [vmem:[%s4072_s5 + $0x38] sm:$0xff]  }
 0x58d   : > { %v1799_v42 = vpack.c.bf16 %v1544_v40, %v1541_v32  ;;  %v1616_v43 = vadd.f32 %v1615_v47, %v1611_v44  ;;  %v1613_v46 = vmul.f32 %v1601_v27, %v1544_v40 }
 0x58e   : > { %v1551_v48 = vsel %vm597_vm5, %v1545_v22, 0.0  ;;  %v2751_v50 = vpack.c.bf16 %v1545_v22, %v1542_v63 }
 0x58f   : > { %1845 = vmatprep.mubr.bf16.mxu0 %v1799_v42  ;;  %1617 = vadd.xlane.f32.xlu0 %v1616_v43  ;;  %v1614_v24 = vmul.f32 %v1608_v45, %v1551_v48  ;;  %v1619_v53 = vadd.f32 %v1613_v46, %v1612_v23  ;;  %v3074_v48 = vld [vmem:[%s4072_s5 + $0x18] sm:$0xff]  }
 0x591   : > { %v1620_v13 = vadd.f32 %v1619_v53, %v1614_v24 }
 0x593   : > { %1621 = vadd.xlane.f32.xlu0 %v1620_v13 }
 0x597   : > { %996 = vadd.xlane.f32.xlu0 %v3679_v30 }
 0x59b   : > { %1000 = vadd.xlane.f32.xlu0 %v3684_v18 }
 0x5c1   : > { %v2935_v28 = vpop.f32.mrf.mxu1 }
 0x5c3   : > { %v1767_v37 = vpop.f32.mrf.mxu1 }
 0x5c5   : > { %v2936_v29 = vpop.f32.mrf.mxu1 }
 0x5c6   : > { %v1806_v18 = vpack.c.bf16 %v2936_v29, %v2935_v28  ;;  %v3075_v29 = vld [vmem:[%s4072_s5 + $0x10] sm:$0xff]  }
 0x5c7   : > { %v1770_v38 = vpop.f32.mrf.mxu1 }
 0x5c8   : > { %v1803_v12 = vpack.c.bf16 %v1770_v38, %v1767_v37  ;;  %v3076_v38 = vld [vmem:[%s4072_s5 + $0x8] sm:$0xff]  }
 0x5c9   : > { %v2939_v26 = vpop.f32.mrf.mxu1 }
 0x5cb   : > { %v1783_v4 = vpop.f32.mrf.mxu1 }
 0x5cd   : > { %v2940_v6 = vpop.f32.mrf.mxu1 }
 0x5ce   : > { %v1812_v0 = vpack.c.bf16 %v2940_v6, %v2939_v26  ;;  %v3077_v26 = vld [vmem:[%s4072_s5] sm:$0xff]  }
 0x5cf   : > { %v1786_v1 = vpop.f32.mrf.mxu1 }
 0x5d0   : > { %2942 = vmatpush3.bf16.xpose.msra.mxu1 %v1812_v0  ;;  %v1809_v5 = vpack.c.bf16 %v1786_v1, %v1783_v4 }
 0x5d1   : > { %2943 = vmatprep.subr.bf16.mxu1 %v3231_v16 }
 0x5d6   : > { %v1694_v41 = vpop.f32.mrf.mxu0 }
 0x5d8   : > { %2944 = vmatpush3.bf16.xpose.msra.mxu1 %v1809_v5  ;;  %v1696_v2 = vpop.f32.mrf.mxu0 }
 0x5d9   : > { %2945 = vmatprep.subr.bf16.mxu1 %v3231_v16 }
 0x5da   : > { %v1698_v30 = vpop.f32.mrf.mxu0 }
 0x5db   : > { %v1801_v15 = vpack.c.bf16 %v1698_v30, %v1694_v41 }
 0x5dc   : > { %v1700_v31 = vpop.f32.mrf.mxu0 }
 0x5dd   : > { %v1802_v25 = vpack.c.bf16 %v1700_v31, %v1696_v2 }
 0x5de   : > { %v1704_v33 = vpop.f32.mrf.mxu0 }
 0x5e0   : > { %2946 = vmatpush3.bf16.xpose.msra.mxu1 %v1806_v18  ;;  %v1706_v8 = vpop.f32.mrf.mxu0 }
 0x5e1   : > { %2947 = vmatprep.subr.bf16.mxu1 %v3231_v16 }
 0x5e2   : > { %v1708_v7 = vpop.f32.mrf.mxu0 }
 0x5e3   : > { %v1804_v62 = vpack.c.bf16 %v1708_v7, %v1704_v33 }
 0x5e4   : > { %v1710_v35 = vpop.f32.mrf.mxu0 }
 0x5e5   : > { %v1805_v45 = vpack.c.bf16 %v1710_v35, %v1706_v8 }
 0x5e6   : > { %v1714_v20 = vpop.f32.mrf.mxu0 }
 0x5e8   : > { %2948 = vmatpush3.bf16.xpose.msra.mxu1 %v1803_v12  ;;  %v1716_v11 = vpop.f32.mrf.mxu0 }
 0x5e9   : > { %2973 = vmatprep.subr.bf16.mxu1 %v3231_v16 }
 0x5ea   : > { %v1718_v52 = vpop.f32.mrf.mxu0 }
 0x5eb   : > { %v1807_v61 = vpack.c.bf16 %v1718_v52, %v1714_v20  ;;  %v2753_v20 = vld [vmem:[%s4068_s1 + $0x2] ss:$0 sm:$0xff] }
 0x5ec   : > { %v1720_v60 = vpop.f32.mrf.mxu0 }
 0x5ed   : > { %v1808_v9 = vpack.c.bf16 %v1720_v60, %v1716_v11 }
 0x5ee   : > { %v1724_v32 = vpop.f32.mrf.mxu0 }
 0x5ef   : > { %2950 = vmatmul.mubr.msk.bf16.vlgmr.msra.gmra.mxu1 %vm3614_vm6, %v2751_v50 }
 0x5f0   : > { %2977 = vmatprep.mubr.msk.bf16.mxu1 %vm3233_vm1, %v3231_v16  ;;  %v1726_v27 = vpop.f32.mrf.mxu0 }
 0x5f2   : > { %v1728_v17 = vpop.f32.mrf.mxu0 }
 0x5f3   : > { %v1810_v34 = vpack.c.bf16 %v1728_v17, %v1724_v32  ;;  %v3166_v32 = vld [vmem:[%s3351_s14] sm:$0xff] }
 0x5f4   : > { %v1730_v63 = vpop.f32.mrf.mxu0 }
 0x5f5   : > { %v1811_v39 = vpack.c.bf16 %v1730_v63, %v1726_v27 }
 0x5f7   : > { %1821 = vmatprep.subr.bf16.mxu0 %v1811_v39 }
 0x5f8   : > { %1822 = vmatpush1.bf16.xpose.msra.mxu0 %v1810_v34 }
 0x5f9   : > { %1823 = vmatprep.subr.bf16.mxu0 %v1808_v9  ;;  %v3167_v9 = vld [vmem:[%s3351_s14 + $0x8] sm:$0xff]  ;;  %s2789_s14 = sshll.u32 %s3319_s21, 8  ;;  %s4027_s21 = scalar_lea.sflag [#allocation5], %s377_s25 }
 0x5fa   : > { %s4021_s24 = scalar_lea.hbm %s4078_s11, %s2789_s14  ;;  %s3175_s14 = scalar_lea.vmem %s3174_s12, 512 }
 0x5fb   : > { %p3177_p1 = scmp.lt.s32.totalorder %s3175_s14, %s3169_s29 }
 0x5fd   : > { %p3178_p2 = por %p3177_p1, %p3176_p0 }
 0x5ff   : > { %p3179_p3 = pnand %p3178_p2, %p3172_p13 }
 0x600   : > { %1824 = vmatpush1.bf16.xpose.msra.mxu0 %v1807_v61 }
 0x601   : > { %1825 = vmatprep.subr.bf16.mxu0 %v1805_v45 }
 0x608   : > { %1826 = vmatpush1.bf16.xpose.msra.mxu0 %v1804_v62 }
 0x609   : > { %1827 = vmatprep.subr.bf16.mxu0 %v1802_v25 }
 0x610   : > { %1828 = vmatpush1.bf16.xpose.msra.mxu0 %v1801_v15 }
 0x611   : > { %2953 = vmatprep.subr.bf16.mxu0 %v3231_v16 }
 0x617   : > { %1846 = vmatmul.mubr.bf16.vlgmr.msra.gmra.mxu0 %v1798_v14  ;;  %v3071_v14 = vld [vmem:[%s4072_s5 + $0x30] sm:$0xff]  }
 0x618   : > { %v1618_v36 = vpop.xlane.xlu0 %1617  ;;  %2969 = vmatprep.mubr.msk.bf16.mxu0 %vm3233_vm1, %v3231_v16  ;;  %2954 = vmatpush3.bf16.msra.mxu0 %v3070_v19 }
 0x619   : > { %2955 = vmatprep.subr.bf16.mxu0 %v3231_v16  ;;  %v1623_v28 = vadd.f32 1e-08, %v1618_v36 }
 0x61c   : > { %v1622_v40 = vpop.xlane.xlu0 %1621  ;;  %2956 = vmatpush3.bf16.msra.mxu0 %v3071_v14 }
 0x61d   : > { %2957 = vmatprep.subr.bf16.mxu0 %v3231_v16  ;;  %v1624_v37 = vadd.f32 1e-08, %v1622_v40 }
 0x620   : > { %v997_v44 = vpop.xlane.xlu0 %996 }
 0x621   : > { %v1002_v47 = vadd.f32 1e-08, %v997_v44 }
 0x623   : > { %3138 = vrcp.f32 %v1002_v47 }
 0x624   : > { %v1001_v22 = vpop.xlane.xlu0 %1000 }
 0x625   : > { %v1003_v23 = vadd.f32 1e-08, %v1001_v22 }
 0x627   : > { %3140 = vrcp.f32 %v1003_v23 }
 0x628   : > { %3142 = vrcp.f32 %v1623_v28 }
 0x629   : > { %3144 = vrcp.f32 %v1624_v37 }
 0x630   : > { %v3139_v42 = vpop.eup %3138 }
 0x631   : > { %v1273_v43 = vmul.f32 %v3139_v42, %v3757_v10  ;;  %v3072_v10 = vld [vmem:[%s4072_s5 + $0x28] sm:$0xff]  }
 0x632   : > { %2958 = vmatpush3.bf16.msra.mxu0 %v3072_v10 }
 0x633   : > { %1276 = vst.msk [vmem:[#allocation2] sm:$0xff] %vm667_vm2, %v1273_v43  ;;  %2959 = vmatprep.subr.bf16.mxu0 %v3231_v16  ;;  %v3078_v43 = vld [vmem:[%s4073_s6 + $0x8] sm:$0xff]  }
 0x634   : > { %v3141_v46 = vpop.eup %3140  ;;  %2974 = vmatpush3.bf16.msra.mxu1 %v3078_v43  ;;  %v3960_v43 = vsub.s32 6, %v3448_v49 }
 0x635   : > { %v1275_v51 = vmul.f32 %v3141_v46, %v3759_v21  ;;  %v3073_v21 = vld [vmem:[%s4072_s5 + $0x20] sm:$0xff]   ;;  %v3143_v0 = vpop.eup %3142  ;;  %2975 = vmatprep.subr.bf16.mxu1 %v3231_v16 }
 0x636   : > { %2960 = vmatpush3.bf16.msra.mxu0 %v3073_v21  ;;  %v3145_v30 = vpop.eup %3144  ;;  %v3079_v46 = vld [vmem:[%s4073_s6] sm:$0xff]  }
 0x637   : > { %1277 = vst.msk [vmem:[#allocation2 + $0x8] sm:$0xff] %vm667_vm2, %v1275_v51  ;;  %2961 = vmatprep.subr.bf16.mxu0 %v3231_v16 }
 0x638   : > { %2976 = vmatpush3.bf16.msra.mxu1 %v3079_v46  ;;  %v2268_v46 = vld [vmem:[#allocation3 + $0x5] sm:$0xff] }
 0x639   : > { %2981 = vmatprep.subr.bf16.mxu1 %v3231_v16 }
 0x63a   : > { %2962 = vmatpush3.bf16.msra.mxu0 %v3074_v48 }
 0x63b   : > { %2963 = vmatprep.subr.bf16.mxu0 %v3231_v16 }
 0x63e   : > { %2964 = vmatpush3.bf16.msra.mxu0 %v3075_v29  ;;  %v2763_v29 = vld [vmem:[%s4068_s1 + $0x4] ss:$0 sm:$0xff] }
 0x63f   : > { %2965 = vmatprep.subr.bf16.mxu0 %v3231_v16 }
 0x642   : > { %2966 = vmatpush3.bf16.msra.mxu0 %v3076_v38 }
 0x643   : > { %2967 = vmatprep.subr.bf16.mxu0 %v3231_v16 }
 0x646   : > { %2968 = vmatpush3.bf16.msra.mxu0 %v3077_v26 }
 0x6af   : > { %v1888_v50 = vpop.f32.mrf.mxu1 }
 0x6b1   : > { %v2951_v24 = vpop.f32.mrf.mxu1 }
 0x6b3   : > { %v1891_v53 = vpop.f32.mrf.mxu1 }
 0x6b5   : > { %v2952_v13 = vpop.f32.mrf.mxu1 }
 0x6d7   : > { %v1847_v4 = vpop.f32.mrf.mxu0 }
 0x6d8   : > { %v1889_v6 = vadd.f32 %v1888_v50, %v1847_v4 }
 0x6d9   : > { %v1849_v1 = vpop.f32.mrf.mxu0 }
 0x6da   : > { %v1896_v5 = vmul.f32 %v3143_v0, %v1889_v6  ;;  %v3080_v6 = vld [vmem:[%s4074_s7 + $0x8] sm:$0xff]   ;;  %v3081_v1 = vld [vmem:[%s4074_s7] sm:$0xff]  }
 0x6db   : > { %v1850_v41 = vpop.f32.mrf.mxu0 }
 0x6dc   : > { %v1892_v2 = vadd.f32 %v1891_v53, %v1850_v41  ;;  %1901 = vrot.lane.b32.xlu1 %v1896_v5, %s3234_s13  ;;  %v2762_v53 = vld [vmem:[%s4068_s1 + $0x3] ss:$0 sm:$0xff]  ;;  %v3082_v5 = vld [vmem:[%s4077_s10 + $0x18] sm:$0xff]   ;;  %v3083_v41 = vld [vmem:[%s4077_s10 + $0x10] sm:$0xff]  }
 0x6dd   : > { %v1852_v18 = vpop.f32.mrf.mxu0 }
 0x6de   : > { %v1898_v31 = vmul.f32 %v3145_v30, %v1892_v2  ;;  %v3084_v2 = vld [vmem:[%s4077_s10 + $0x8] sm:$0xff]   ;;  %v3085_v30 = vld [vmem:[%s4077_s10] sm:$0xff]  }
 0x6e0   : > { %1903 = vrot.lane.b32.xlu0 %v1898_v31, %s3234_s13 }
 0x74e   : > { %v1902_v33 = vpop.permute.xlu1 %1901 }
 0x74f   : > { %1908 = vst.msk [vmem:[#allocation2] sm:$0xff] %vm1907_vm7, %v1902_v33 }
 0x752   : > { %v1904_v8 = vpop.permute.xlu0 %1903 }
 0x753   : > { %1909 = vst.msk [vmem:[#allocation2 + $0x8] sm:$0xff] %vm1907_vm7, %v1904_v8 }
 0x756   : > { %v1910_v7 = vld [vmem:[#allocation2] sm:$0xff] }
 0x75a   : > { %v1911_v35 = vld [vmem:[#allocation2 + $0x8] sm:$0xff] }
 0x75b   : > { %v1912_v12 = vpack.c.bf16 %v1911_v35, %v1910_v7  ;;  %v2768_v7 = vld [vmem:[%s4075_s8 + $0x1] ss:$0 sm:$0xff] }
 0x75d   : > { %2970 = vmatmul.mubr.bf16.vlgmr.msra.gmra.mxu0 %v1912_v12 }
 0x81d   : > { %v2016_v11 = vpop.f32.mrf.mxu0 }
 0x81e   : > { %v2017_v52 = vadd.f32 %v2753_v20, %v2016_v11 }
 0x81f   : > { %v2971_v60 = vpop.f32.mrf.mxu0 }
 0x820   : > { %v3884_v27 = vadd.f32 %v3166_v32, %v2017_v52 }
 0x821   : > { %v2019_v17 = vpop.f32.mrf.mxu0 }
 0x822   : > { %v2020_v63 = vadd.f32 %v2753_v20, %v2019_v17  ;;  %v2027_v39 = vsel %vm390_vm0, %v3884_v27, 0.0 }
 0x823   : > { %2028 = vadd.xlane.f32.xlu1 %v2027_v39  ;;  %v2972_v34 = vpop.f32.mrf.mxu0  ;;  %v3168_v39 = vld [vmem:[%s4076_s9] sm:$0xff] }
 0x824   : > { %v3889_v61 = vadd.f32 %v3167_v9, %v2020_v63 }
 0x826   : > { %v2030_v45 = vsel %vm390_vm0, %v3889_v61, 0.0 }
 0x827   : > { %2031 = vadd.xlane.f32.xlu0 %v2030_v45  ;;  %v3951_v45 = vsub.s32 4, %v3448_v49 }
 0x8ac   : > { %v2029_v62 = vpop.xlane.xlu1 %2028 }
 0x8ad   : > { %v2033_v25 = vmul.f32 0.03125, %v2029_v62  ;;  %v2248_v62 = vld [vmem:[#allocation3 + $0x3] sm:$0xff] }
 0x8af   : > { %v2035_v15 = vsub.f32 %v3884_v27, %v2033_v25 }
 0x8b0   : > { %v2032_v36 = vpop.xlane.xlu0 %2031 }
 0x8b1   : > { %v2034_v40 = vmul.f32 0.03125, %v2032_v36  ;;  %v2037_v44 = vmul.f32 %v2035_v15, %v2035_v15 }
 0x8b3   : > { %v2036_v47 = vsub.f32 %v3889_v61, %v2034_v40  ;;  %v2039_v22 = vsel %vm390_vm0, %v2037_v44, 0.0  ;;  %v2263_v40 = vrot.slane %v3168_v39, %v3951_v45  ;;  %v3955_v44 = vsub.s32 5, %v3448_v49 }
 0x8b4   : > { %2040 = vadd.xlane.f32.xlu1 %v2039_v22 }
 0x8b5   : > { %v2038_v23 = vmul.f32 %v2036_v47, %v2036_v47 }
 0x8b7   : > { %v2042_v42 = vsel %vm390_vm0, %v2038_v23, 0.0 }
 0x8b8   : > { %2043 = vadd.xlane.f32.xlu0 %v2042_v42  ;;  %v2273_v42 = vrot.slane %v3168_v39, %v3955_v44 }
 0x93d   : > { %v2041_v51 = vpop.xlane.xlu1 %2040 }
 0x93e   : > { %v2045_v19 = vmul.f32 0.03125, %v2041_v51  ;;  %v2764_v51 = vld [vmem:[%s4075_s8] ss:$0 sm:$0xff] }
 0x940   : > { %v2047_v14 = vadd.f32 1e-05, %v2045_v19 }
 0x941   : > { %v2044_v10 = vpop.xlane.xlu0 %2043 }
 0x942   : > { %3146 = vrsqrt.f32 %v2047_v14  ;;  %v2046_v21 = vmul.f32 0.03125, %v2044_v10  ;;  %v2274_v14 = vmul.f32 %v2273_v42, %v2268_v46  ;;  %v2283_v10 = vrot.slane %v3168_v39, %v3960_v43 }
 0x944   : > { %v2048_v48 = vadd.f32 1e-05, %v2046_v21  ;;  %v3967_v21 = vsub.s32 7, %v3448_v49 }
 0x946   : > { %3148 = vrsqrt.f32 %v2048_v48  ;;  %v2278_v48 = vld [vmem:[#allocation3 + $0x6] sm:$0xff] }
 0x94f   : > { %v3147_v50 = vpop.eup %3146 }
 0x950   : > { %v2051_v24 = vmul.f32 %v3147_v50, %v2035_v15 }
 0x952   : > { %v2057_v37 = vmul.f32 %v2762_v53, %v2051_v24 }
 0x953   : > { %v3149_v13 = vpop.eup %3148 }
 0x954   : > { %v2052_v28 = vmul.f32 %v3149_v13, %v2036_v47  ;;  %v2063_v26 = vadd.f32 %v2763_v29, %v2057_v37  ;;  %v2258_v47 = vld [vmem:[#allocation3 + $0x4] sm:$0xff]  ;;  %v2284_v13 = vmul.f32 %v2283_v10, %v2278_v48 }
 0x955   : > { %v2264_v23 = vmul.f32 %v2263_v40, %v2258_v47  ;;  %v2288_v37 = vld [vmem:[#allocation3 + $0x7] sm:$0xff] }
 0x956   : > { %v2058_v38 = vmul.f32 %v2762_v53, %v2052_v28  ;;  %v2293_v28 = vrot.slane %v3168_v39, %v3967_v21 }
 0x958   : > { %v2064_v4 = vadd.f32 %v2763_v29, %v2058_v38 }
 0x95a   : > { %v2065_v0 = vpack.c.bf16 %v2064_v4, %v2063_v26  ;;  %v2215_v26 = vld [vmem:[%s4076_s9 + $0x8] sm:$0xff] }
 0x95c   : > { %2978 = vmatmul.mubr.msk.bf16.vlgmr.msra.gmra.mxu1 %vm390_vm0, %v2065_v0 }
 0x95d   : > { %2982 = vmatpush3.bf16.msra.mxu1 %v3080_v6  ;;  %2985 = vmatprep.mubr.msk.bf16.mxu1 %vm3233_vm1, %v3231_v16  ;;  %v2294_v6 = vmul.f32 %v2293_v28, %v2288_v37 }
 0x95e   : > { %2983 = vmatprep.subr.bf16.mxu1 %v3231_v16 }
 0x961   : > { %2984 = vmatpush3.bf16.msra.mxu1 %v3081_v1  ;;  %v2311_v1 = vrot.slane %v2215_v26, %v3486_v56 }
 0x962   : > { %2989 = vmatprep.subr.bf16.mxu1 %v3231_v16 }
 0x964   : > { %2986 = vmatmul.mubr.msk.bf16.vlgmr.msra.gmra.mxu1 %vm390_vm0, %v2065_v0  ;;  %v2302_v0 = vrot.slane %v2215_v26, %v3479_v54 }
 0x965   : > { %2997 = vmatprep.mubr.msk.bf16.mxu1 %vm3233_vm1, %v3231_v16  ;;  %2990 = vmatpush3.bf16.msra.mxu1 %v3082_v5 }
 0x966   : > { %2991 = vmatprep.subr.bf16.mxu1 %v3231_v16 }
 0x969   : > { %2992 = vmatpush3.bf16.msra.mxu1 %v3083_v41 }
 0x96a   : > { %2993 = vmatprep.subr.bf16.mxu1 %v3231_v16 }
 0x96d   : > { %2994 = vmatpush3.bf16.msra.mxu1 %v3084_v2 }
 0x96e   : > { %2995 = vmatprep.subr.bf16.mxu1 %v3231_v16  ;;  %v3944_v16 = vsub.s32 3, %v3448_v49 }
 0x970   : > { %v2253_v34 = vrot.slane %v3168_v39, %v3944_v16 }
 0x971   : > { %2996 = vmatpush3.bf16.msra.mxu1 %v3085_v30 }
 0x972   : > { %v2254_v15 = vmul.f32 %v2253_v34, %v2248_v62 }
 0x974   : > { %v2256_v22 = vadd.f32 %v2254_v15, %v3504_v3 }
 0x976   : > { %v2266_v19 = vadd.f32 %v2264_v23, %v2256_v22  ;;  %v2356_v22 = vrot.slane %v2215_v26, %v3960_v43 }
 0x978   : > { %v2276_v53 = vadd.f32 %v2274_v14, %v2266_v19  ;;  %v2365_v14 = vrot.slane %v2215_v26, %v3967_v21 }
 0x97a   : > { %v2286_v49 = vadd.f32 %v2284_v13, %v2276_v53 }
 0x97c   : > { %v2296_v5 = vadd.f32 %v2294_v6, %v2286_v49 }
 0xa1c   : > { %v2124_v18 = vpop.f32.mrf.mxu1 }
 0xa1d   : > { %v2125_v3 = vadd.f32 %v2764_v51, %v2124_v18  ;;  %v2320_v18 = vrot.slane %v2215_v26, %v3483_v55 }
 0xa1e   : > { %v2979_v31 = vpop.f32.mrf.mxu1 }
 0xa20   : > { %v2127_v33 = vpop.f32.mrf.mxu1 }
 0xa21   : > { %v2128_v29 = vadd.f32 %v2764_v51, %v2127_v33 }
 0xa22   : > { %v2980_v8 = vpop.f32.mrf.mxu1 }
 0xa24   : > { %v2186_v35 = vpop.f32.mrf.mxu1 }
 0xa25   : > { %v2187_v12 = vadd.f32 %v2768_v7, %v2186_v35  ;;  %v2329_v35 = vrot.slane %v2215_v26, %v3944_v16 }
 0xa26   : > { %v2987_v20 = vpop.f32.mrf.mxu1 }
 0xa27   : > { %v2772_v11 = vmul.f32 -1.442695, %v2187_v12 }
 0xa28   : > { %v2189_v52 = vpop.f32.mrf.mxu1 }
 0xa29   : > { %3150 = vpow2.f32 %v2772_v11  ;;  %v2190_v60 = vadd.f32 %v2768_v7, %v2189_v52 }
 0xa2a   : > { %v2988_v32 = vpop.f32.mrf.mxu1 }
 0xa2b   : > { %v2773_v17 = vmul.f32 -1.442695, %v2190_v60  ;;  %v2338_v32 = vrot.slane %v2215_v26, %v3951_v45 }
 0xa2d   : > { %3152 = vpow2.f32 %v2773_v17 }
 0xa36   : > { %v3151_v63 = vpop.eup %3150 }
 0xa37   : > { %v2199_v9 = vadd.f32 1.0, %v3151_v63 }
 0xa39   : > { %3154 = vrcp.f32 %v2199_v9 }
 0xa3a   : > { %v3153_v25 = vpop.eup %3152 }
 0xa3b   : > { %v2200_v36 = vadd.f32 1.0, %v3153_v25 }
 0xa3d   : > { %3156 = vrcp.f32 %v2200_v36 }
 0xa46   : > { %v3155_v50 = vpop.eup %3154 }
 0xa47   : > { %v2205_v24 = vmul.f32 %v3155_v50, %v2125_v3 }
 0xa49   : > { %2212 = vst.msk [vmem:[#allocation3 + $0xf] sm:$0xff] %vm667_vm2, %v2205_v24 }
 0xa4a   : > { %v3157_v38 = vpop.eup %3156 }
 0xa4b   : > { %v2206_v4 = vmul.f32 %v3157_v38, %v2128_v29 }
 0xa4d   : > { %2213 = vst.msk [vmem:[#allocation3 + $0x17] sm:$0xff] %vm667_vm2, %v2206_v4 }
 0xa50   : > { %v2219_v41 = vld [vmem:[#allocation3 + $0x8] sm:$0xff] }
 0xa51   : > { %v2229_v2 = vld [vmem:[#allocation3 + $0x9] sm:$0xff]  ;;  %v2225_v31 = vmul.f32 %v3491_v57, %v2219_v41  ;;  %v2303_v8 = vmul.f32 %v2302_v0, %v2219_v41  ;;  %v2347_v57 = vrot.slane %v2215_v26, %v3955_v44 }
 0xa52   : > { %v2239_v30 = vld [vmem:[#allocation3 + $0xa] sm:$0xff]  ;;  %v2235_v33 = vmul.f32 %v3499_v59, %v2229_v2  ;;  %v2312_v52 = vmul.f32 %v2311_v1, %v2229_v2 }
 0xa53   : > { %v2249_v7 = vld [vmem:[#allocation3 + $0xb] sm:$0xff]  ;;  %v2245_v20 = vmul.f32 %v3496_v58, %v2239_v30  ;;  %v2305_v11 = vadd.f32 %v2303_v8, %v2296_v5  ;;  %v2321_v9 = vmul.f32 %v2320_v18, %v2239_v30  ;;  %v2216_v58 = vld [vmem:[%s4076_s9 + $0x10] sm:$0xff] }
 0xa54   : > { %v2237_v12 = vadd.f32 %v2235_v33, %v2225_v31  ;;  %v2259_v60 = vld [vmem:[#allocation3 + $0xc] sm:$0xff]  ;;  %v2255_v63 = vmul.f32 %v2253_v34, %v2249_v7  ;;  %v2330_v36 = vmul.f32 %v2329_v35, %v2249_v7  ;;  %v2374_v24 = vrot.slane %v2216_v58, %v3479_v54 }
 0xa55   : > { %v2314_v39 = vadd.f32 %v2312_v52, %v2305_v11  ;;  %v2269_v62 = vld [vmem:[#allocation3 + $0xd] sm:$0xff]  ;;  %v2265_v25 = vmul.f32 %v2263_v40, %v2259_v60  ;;  %v2339_v34 = vmul.f32 %v2338_v32, %v2259_v60  ;;  %v2383_v4 = vrot.slane %v2216_v58, %v3486_v56 }
 0xa56   : > { %v2247_v17 = vadd.f32 %v2245_v20, %v2237_v12  ;;  %v2279_v47 = vld [vmem:[#allocation3 + $0xe] sm:$0xff]  ;;  %v2275_v46 = vmul.f32 %v2273_v42, %v2269_v62  ;;  %v2348_v40 = vmul.f32 %v2347_v57, %v2269_v62  ;;  %v2392_v26 = vrot.slane %v2216_v58, %v3483_v55 }
 0xa57   : > { %v2323_v15 = vadd.f32 %v2321_v9, %v2314_v39  ;;  %v2289_v19 = vld [vmem:[#allocation3 + $0xf] sm:$0xff]  ;;  %v2285_v3 = vmul.f32 %v2283_v10, %v2279_v47  ;;  %v2357_v38 = vmul.f32 %v2356_v22, %v2279_v47  ;;  %v2401_v7 = vrot.slane %v2216_v58, %v3944_v16 }
 0xa58   : > { %v2257_v59 = vadd.f32 %v2255_v63, %v2247_v17  ;;  %v2298_v53 = vld [vmem:[#allocation3 + $0x10] sm:$0xff]  ;;  %v2295_v37 = vmul.f32 %v2293_v28, %v2289_v19  ;;  %v2366_v41 = vmul.f32 %v2365_v14, %v2289_v19  ;;  %v2410_v60 = vrot.slane %v2216_v58, %v3951_v45 }
 0xa59   : > { %v2332_v51 = vadd.f32 %v2330_v36, %v2323_v15  ;;  %v2307_v49 = vld [vmem:[#allocation3 + $0x11] sm:$0xff]  ;;  %v2304_v6 = vmul.f32 %v2302_v0, %v2298_v53  ;;  %v2375_v33 = vmul.f32 %v2374_v24, %v2298_v53  ;;  %v2419_v62 = vrot.slane %v2216_v58, %v3955_v44 }
 0xa5a   : > { %v2267_v23 = vadd.f32 %v2265_v25, %v2257_v59  ;;  %v2316_v2 = vld [vmem:[#allocation3 + $0x12] sm:$0xff]  ;;  %v2313_v30 = vmul.f32 %v2311_v1, %v2307_v49  ;;  %v2384_v11 = vmul.f32 %v2383_v4, %v2307_v49  ;;  %v2428_v47 = vrot.slane %v2216_v58, %v3960_v43 }
 0xa5b   : > { %v2341_v50 = vadd.f32 %v2339_v34, %v2332_v51  ;;  %v2325_v8 = vld [vmem:[#allocation3 + $0x13] sm:$0xff]  ;;  %v2322_v12 = vmul.f32 %v2320_v18, %v2316_v2  ;;  %v2393_v39 = vmul.f32 %v2392_v26, %v2316_v2  ;;  %v2217_v18 = vld [vmem:[%s4076_s9 + $0x18] sm:$0x7f]  ;;  %v2437_v19 = vrot.slane %v2216_v58, %v3967_v21 }
 0xa5c   : > { %v2277_v48 = vadd.f32 %v2275_v46, %v2267_v23  ;;  %v2334_v52 = vld [vmem:[#allocation3 + $0x14] sm:$0xff]  ;;  %v2331_v17 = vmul.f32 %v2329_v35, %v2325_v8  ;;  %v2402_v15 = vmul.f32 %v2401_v7, %v2325_v8  ;;  %v2455_v49 = vrot.slane %v2217_v18, %v3486_v56  ;;  %v2406_v56 = vld [vmem:[#allocation3 + $0x1c] sm:$0xff] }
 0xa5d   : > { %v2350_v29 = vadd.f32 %v2348_v40, %v2341_v50  ;;  %v2343_v9 = vld [vmem:[#allocation3 + $0x15] sm:$0xff]  ;;  %v2340_v59 = vmul.f32 %v2338_v32, %v2334_v52  ;;  %v2411_v35 = vmul.f32 %v2410_v60, %v2334_v52  ;;  %v2446_v40 = vrot.slane %v2217_v18, %v3479_v54 }
 0xa5e   : > { %v2287_v13 = vadd.f32 %v2285_v3, %v2277_v48  ;;  %v2352_v36 = vld [vmem:[#allocation3 + $0x16] sm:$0xff]  ;;  %v2349_v46 = vmul.f32 %v2347_v57, %v2343_v9  ;;  %v2420_v32 = vmul.f32 %v2419_v62, %v2343_v9  ;;  %v2464_v21 = vrot.slane %v2217_v18, %v3483_v55 }
 0xa5f   : > { %v2359_v5 = vadd.f32 %v2357_v38, %v2350_v29  ;;  %v2361_v34 = vld [vmem:[#allocation3 + $0x17] sm:$0xff]  ;;  %v2358_v3 = vmul.f32 %v2356_v22, %v2352_v36  ;;  %v2429_v38 = vmul.f32 %v2428_v47, %v2352_v36 }
 0xa60   : > { %v2297_v42 = vadd.f32 %v2295_v37, %v2287_v13  ;;  %v2370_v53 = vld [vmem:[#allocation3 + $0x18] sm:$0xff]  ;;  %v2367_v37 = vmul.f32 %v2365_v14, %v2361_v34 }
 0xa61   : > { %v2368_v31 = vadd.f32 %v2366_v41, %v2359_v5  ;;  %v2438_v41 = vmul.f32 %v2437_v19, %v2361_v34  ;;  %v2388_v58 = vld [vmem:[#allocation3 + $0x1a] sm:$0xff] }
 0xa62   : > { %v2306_v10 = vadd.f32 %v2304_v6, %v2297_v42  ;;  %v2379_v42 = vld [vmem:[#allocation3 + $0x19] sm:$0xff]  ;;  %v2376_v6 = vmul.f32 %v2374_v24, %v2370_v53  ;;  %v2465_v52 = vmul.f32 %v2464_v21, %v2388_v58 }
 0xa63   : > { %v2377_v20 = vadd.f32 %v2375_v33, %v2368_v31  ;;  %v2385_v2 = vmul.f32 %v2383_v4, %v2379_v42  ;;  %v2397_v54 = vld [vmem:[#allocation3 + $0x1b] sm:$0xff]  ;;  %v2473_v31 = vrot.slane %v2217_v18, %v3944_v16  ;;  %v2394_v33 = vmul.f32 %v2392_v26, %v2388_v58 }
 0xa64   : > { %v2315_v28 = vadd.f32 %v2313_v30, %v2306_v10  ;;  %v2447_v30 = vmul.f32 %v2446_v40, %v2370_v53  ;;  %v2415_v55 = vld [vmem:[#allocation3 + $0x1d] sm:$0xff] }
 0xa65   : > { %v2386_v63 = vadd.f32 %v2384_v11, %v2377_v20  ;;  %v2403_v20 = vmul.f32 %v2401_v7, %v2397_v54  ;;  %v2474_v9 = vmul.f32 %v2473_v31, %v2397_v54  ;;  %v2424_v16 = vld [vmem:[#allocation3 + $0x1e] sm:$0xff]  ;;  %v2421_v26 = vmul.f32 %v2419_v62, %v2415_v55 }
 0xa66   : > { %v2324_v0 = vadd.f32 %v2322_v12, %v2315_v28  ;;  %v2456_v28 = vmul.f32 %v2455_v49, %v2379_v42  ;;  %v2482_v12 = vrot.slane %v2217_v18, %v3951_v45  ;;  %v2500_v45 = vrot.slane %v2217_v18, %v3960_v43  ;;  %v2469_v53 = vld [vmem:[#allocation3 + $0x23] sm:$0xff]  ;;  %v2774_v43 = vld [vmem:[%s4075_s8 + $0x2] ss:$0 sm:$0xff] }
 0xa67   : > { %v2395_v25 = vadd.f32 %v2393_v39, %v2386_v63  ;;  %v2433_v63 = vld [vmem:[#allocation3 + $0x1f] sm:$0xff] }
 0xa68   : > { %v2333_v1 = vadd.f32 %v2331_v17, %v2324_v0  ;;  %v2491_v0 = vrot.slane %v2217_v18, %v3955_v44  ;;  %v2412_v17 = vmul.f32 %v2410_v60, %v2406_v56  ;;  %v2439_v36 = vmul.f32 %v2437_v19, %v2433_v63  ;;  %v2487_v19 = vld [vmem:[#allocation3 + $0x25] sm:$0xff] }
 0xa69   : > { %v2404_v51 = vadd.f32 %v2402_v15, %v2395_v25  ;;  %v2483_v25 = vmul.f32 %v2482_v12, %v2406_v56  ;;  %v2442_v15 = vld [vmem:[#allocation3 + $0x20] sm:$0xff]  ;;  %v2475_v18 = vmul.f32 %v2473_v31, %v2469_v53 }
 0xa6a   : > { %v2342_v23 = vadd.f32 %v2340_v59, %v2333_v1  ;;  %v2448_v44 = vmul.f32 %v2446_v40, %v2442_v15 }
 0xa6b   : > { %v2413_v50 = vadd.f32 %v2411_v35, %v2404_v51  ;;  %v2492_v51 = vmul.f32 %v2491_v0, %v2415_v55  ;;  %v2451_v35 = vld [vmem:[#allocation3 + $0x21] sm:$0xff] }
 0xa6c   : > { %v2351_v48 = vadd.f32 %v2349_v46, %v2342_v23  ;;  %v2430_v23 = vmul.f32 %v2428_v47, %v2424_v16 }
 0xa6d   : > { %v2422_v29 = vadd.f32 %v2420_v32, %v2413_v50  ;;  %v2501_v32 = vmul.f32 %v2500_v45, %v2424_v16 }
 0xa6e   : > { %v2360_v13 = vadd.f32 %v2358_v3, %v2351_v48  ;;  %v2460_v48 = vld [vmem:[#allocation3 + $0x22] sm:$0xff]  ;;  %v2457_v3 = vmul.f32 %v2455_v49, %v2451_v35  ;;  %v2493_v49 = vmul.f32 %v2491_v0, %v2487_v19 }
 0xa6f   : > { %v2431_v5 = vadd.f32 %v2429_v38, %v2422_v29  ;;  %v2478_v29 = vld [vmem:[#allocation3 + $0x24] sm:$0xff] }
 0xa70   : > { %v2369_v57 = vadd.f32 %v2367_v37, %v2360_v13  ;;  %v2466_v13 = vmul.f32 %v2464_v21, %v2460_v48  ;;  %v2484_v40 = vmul.f32 %v2482_v12, %v2478_v29 }
 0xa71   : > { %v2440_v10 = vadd.f32 %v2438_v41, %v2431_v5 }
 0xa72   : > { %v2378_v22 = vadd.f32 %v2376_v6, %v2369_v57  ;;  %v2496_v57 = vld [vmem:[#allocation3 + $0x26] sm:$0xff] }
 0xa73   : > { %v2449_v8 = vadd.f32 %v2447_v30, %v2440_v10  ;;  %v2502_v41 = vmul.f32 %v2500_v45, %v2496_v57 }
 0xa74   : > { %v2387_v14 = vadd.f32 %v2385_v2, %v2378_v22 }
 0xa75   : > { %v2458_v11 = vadd.f32 %v2456_v28, %v2449_v8 }
 0xa76   : > { %v2396_v24 = vadd.f32 %v2394_v33, %v2387_v14 }
 0xa77   : > { %v2467_v39 = vadd.f32 %v2465_v52, %v2458_v11 }
 0xa78   : > { %v2405_v4 = vadd.f32 %v2403_v20, %v2396_v24  ;;  %v2777_v24 = vld [vmem:[%s4068_s1 + $0x5] ss:$0 sm:$0xff] }
 0xa79   : > { %v2476_v59 = vadd.f32 %v2474_v9, %v2467_v39 }
 0xa7a   : > { %v2414_v1 = vadd.f32 %v2412_v17, %v2405_v4 }
 0xa7b   : > { %v2485_v46 = vadd.f32 %v2483_v25, %v2476_v59 }
 0xa7c   : > { %v2423_v7 = vadd.f32 %v2421_v26, %v2414_v1 }
 0xa7d   : > { %v2494_v60 = vadd.f32 %v2492_v51, %v2485_v46 }
 0xa7e   : > { %v2432_v34 = vadd.f32 %v2430_v23, %v2423_v7 }
 0xa7f   : > { %v2503_v37 = vadd.f32 %v2501_v32, %v2494_v60 }
 0xa80   : > { %v2441_v50 = vadd.f32 %v2439_v36, %v2432_v34 }
 0xa81   : > { %v2510_v42 = vadd.f32 %v2774_v43, %v2503_v37 }
 0xa82   : > { %v2450_v62 = vadd.f32 %v2448_v44, %v2441_v50 }
 0xa83   : > { %v2775_v58 = vmul.f32 -1.442695, %v2510_v42 }
 0xa84   : > { %v2459_v47 = vadd.f32 %v2457_v3, %v2450_v62 }
 0xa85   : > { %3158 = vpow2.f32 %v2775_v58 }
 0xa86   : > { %v2468_v38 = vadd.f32 %v2466_v13, %v2459_v47 }
 0xa88   : > { %v2477_v6 = vadd.f32 %v2475_v18, %v2468_v38 }
 0xa8a   : > { %v2486_v5 = vadd.f32 %v2484_v40, %v2477_v6 }
 0xa8c   : > { %v2495_v22 = vadd.f32 %v2493_v49, %v2486_v5 }
 0xa8e   : > { %v2504_v21 = vadd.f32 %v2502_v41, %v2495_v22 }
 0xa90   : > { %v2511_v2 = vadd.f32 %v2774_v43, %v2504_v21 }
 0xa92   : > { %v2776_v10 = vmul.f32 -1.442695, %v2511_v2  ;;  %v3159_v30 = vpop.eup %3158 }
 0xa93   : > { %v2518_v54 = vadd.f32 1.0, %v3159_v30 }
 0xa94   : > { %3160 = vpow2.f32 %v2776_v10 }
 0xa95   : > { %3162 = vrcp.f32 %v2518_v54 }
 0xaa1   : > { %v3161_v31 = vpop.eup %3160 }
 0xaa2   : > { %v2519_v14 = vadd.f32 1.0, %v3161_v31  ;;  %v3163_v33 = vpop.eup %3162 }
 0xaa3   : > { %v2524_v28 = vmul.f32 %v3163_v33, %v2510_v42 }
 0xaa4   : > { %3164 = vrcp.f32 %v2519_v14 }
 0xab1   : > { %v3165_v8 = vpop.eup %3164 }
 0xab2   : > { %v2525_v56 = vmul.f32 %v3165_v8, %v2511_v2 }
 0xab4   : > { %v2526_v12 = vpack.c.bf16 %v2525_v56, %v2524_v28 }
 0xab6   : > { %2998 = vmatmul.mubr.msk.bf16.vlgmr.msra.gmra.mxu1 %vm667_vm2, %v2526_v12 }
 0xb76   : > { %v2601_v20 = vpop.f32.mrf.mxu1 }
 0xb77   : > { %v2602_v11 = vadd.f32 %v2777_v24, %v2601_v20 }
 0xb78   : > { %v2999_v52 = vpop.f32.mrf.mxu1 }
 0xb79   : > { %v2608_v55 = vadd.f32 %v2602_v11, %v3884_v27 }
 0xb7a   : > { %v2604_v0 = vpop.f32.mrf.mxu1 }
 0xb7b   : > { %2610 = vst.msk [vmem:[%s379_s15] sm:$0xff] %vm390_vm0, %v2608_v55  ;;  %v2605_v4 = vadd.f32 %v2777_v24, %v2604_v0 }
 0xb7c   : > { %v3000_v17 = vpop.f32.mrf.mxu1 }
 0xb7d   : > { %v2609_v27 = vadd.f32 %v2605_v4, %v3889_v61 }
 0xb7f   : > { %2611 = vst.msk [vmem:[%s379_s15 + $0x8] sm:$0xff] %vm390_vm0, %v2609_v27 }
 0xb80   : > { %3182 = shalt.err (!%p3179_p3)
}
 0xb81   : > { %s3183_s25 = scalar_lea.hbm %s4021_s24, 256  ;;  %s3187_s22 = scalar_lea.hbm %s4078_s11, 512 }
 0xb82   : > { %p3184_p4 = scmp.ne.s32.totalorder %s4021_s24, %s3183_s25  ;;  %p3188_p9 = scmp.lt.s32.totalorder %s4021_s24, %s4078_s11 }
 0xb83   : > { %p3189_p10 = scmp.lt.s32.totalorder %s3187_s22, %s3183_s25 }
 0xb84   : > { %p3185_p7 = pnand %p3184_p4, %p3336_p5 }
 0xb85   : > { %p3190_p11 = por %p3189_p10, %p3188_p9 }
 0xb86   : > { %p3186_p8 = pneg %p3185_p7 }
 0xb88   : > { %p3191_p12 = pnand %p3190_p11, %p3186_p8 }
 0xb8a   : > { %3194 = shalt.err (!%p3191_p12)
}
 0xb8b   : > { %s3236_s29 = smov 128   ;;  %s3237_s12 = smov 8  }
 0xb8c   : > { %3001 = dma.vmem_to_hbm [thread:$0]  (%p3336_p5), %s4023_s16, 256, %s4021_s24, %s4027_s21, %s3236_s29, %s3236_s29, %s3237_s12  }
 0xb8d PF: > { %p3007_p13 = scmp.ge.s32.totalorder %s3229_s20, 2  ;;  %s2641_s14 = sand.u32 1, %s3217_s17  }
 0xb8e   : > { %s2642_s0 = scalar_lea.sflag [#allocation5], %s2641_s14 }
 0xb8f   : > { %p3004_p0 = pnand %p3007_p13, %p3340_p6 }
 0xb91   : > { %p3005_p1 = pneg %p3004_p0 }
 0xb93   : > { %3212 = dma.done.wait (%p3005_p1), %s2642_s0, 256  }
 0xb94   : > { %3214 = vsyncadd (%p3005_p1), %s2642_s0, 4294967040  ;;  %p21_p2 = scmp.ge.s32.totalorder %s3323_s23, 4   ;;  %s4088_s17 = smov %s3221_s18 }
 0xb95   : > { %s4089_s18 = smov %s3225_s19  ;;  %s4090_s19 = smov %s3334_s26 }
 0xb96   : > { %s4091_s20 = smov %s3323_s23  ;;  %23 = sbr.rel (!%p21_p2) target bundleno = 5 (0x5), region = 99 }
 0xb9b   :  { %2647 = vsyncpa [#allocation5], 1 }
 0xb9c   :  { %2649 = vsyncpa [#allocation5 + $0x1], 1 }

// kernel: encoder_forward.2
= control target key start
LH: loop header
LB: loop body
LE: loop exit
PB: predicated region body
PF: predicated region fallthrough
CT: control target
= control target key end

     0   :  { %16 = vsyncpa [#allocation5], 0  ;;  %s4323_s0 = inlined_call_operand.vmem [shape: f32[2,16,32], index: 0, kind: input, shape index: {}]   ;;  %s4324_s1 = inlined_call_operand.hbm [shape: f32[6,32], index: 1, kind: input, shape index: {}]   ;;  %s4325_s2 = inlined_call_operand.vmem [shape: bf16[32,384], index: 2, kind: input, shape index: {}]   ;;  %s4326_s3 = inlined_call_operand.hbm [shape: f32[1,384], index: 3, kind: input, shape index: {}]   ;;  %s4327_s4 = inlined_call_operand.vmem [shape: bf16[64,384], index: 4, kind: input, shape index: {}]   ;;  %s4328_s5 = inlined_call_operand.vmem [shape: bf16[128,32], index: 5, kind: input, shape index: {}]   ;;  %s4329_s6 = inlined_call_operand.hbm [shape: bf16[32,64], index: 6, kind: input, shape index: {}]   ;;  %s4330_s7 = inlined_call_operand.hbm [shape: bf16[32,64], index: 7, kind: input, shape index: {}]   ;;  %s4331_s8 = inlined_call_operand.hbm [shape: f32[3,64], index: 8, kind: input, shape index: {}]   ;;  %s4332_s9 = inlined_call_operand.hbm [shape: f32[31,64], index: 9, kind: input, shape index: {}]   ;;  %s4333_s10 = inlined_call_operand.vmem [shape: bf16[64,32], index: 10, kind: input, shape index: {}]   ;;  %s4334_s11 = inlined_call_operand.vmem [shape: f32[2,16,32], index: 11, kind: output, shape index: {}]  }
   0x1   :  { %17 = vsyncpa [#allocation7], 0 }
   0x2   :  { %18 = vsyncpa [#allocation10], 0 }
   0x3   :  { %19 = vsyncpa [#allocation13], 0  ;;  %s3589_s17 = smov 0  }
   0x4 LB: > { %s3515_s18 = smov [#allocation6]   ;;  %s3595_s20 = sadd.s32 4294967295, %s3513_s17   ;;  %s3513_s17 = sphi %s3589_s17, %s25_s17  }
   0x5   : > { %s319_s19 = sshll.u32 %s3515_s18, 4  ;;  %p2813_p0 = scmp.ge.s32.totalorder %s3513_s17, 1  ;;  %s320_s19 = int_to_ptr.vmem [resolvable:$true] %s319_s19 }
   0x6   : > { %p292_p1 = scmp.lt.s32.totalorder %s3513_s17, 3  ;;  %p4335_p2 = scmp.eq.s32.totalorder %s3595_s20, 0 }
   0x7   : > { %s3516_s22 = smov [#allocation9]   ;;  %s3517_s25 = smov [#allocation4]  }
   0x8   : > { %p3600_p3 = pnand %p2813_p0, %p292_p1  ;;  %s348_s23 = sshll.u32 %s3516_s22, 4  ;;  %s3606_s23 = int_to_ptr.vmem [resolvable:$true] %s348_s23 }
   0x9   : > { %s305_s26 = sshll.u32 %s3517_s25, 4  ;;  %s3518_s27 = smov [#allocation8]   ;;  %s3614_s26 = int_to_ptr.vmem [resolvable:$true] %s305_s26 }
   0xa   : > { %s4337_s21 = scalar_select %p3600_p3, 1, 0 }
   0xb   : > { %p3159_p4 = pneg %p3600_p3  ;;  %s3616_s28 = sshll.u32 %s3518_s27, 4  ;;  %s336_s28 = int_to_ptr.vmem [resolvable:$true] %s3616_s28 }
   0xc   : > { %s3346_s30 = scalar_lea.vmem %s320_s19, 48  ;;  %s3353_s12 = scalar_lea.vmem %s320_s19, 64 }
   0xd   : > { %p3610_p5 = pnand %p4335_p2, %p3159_p4  ;;  %p3347_p7 = scmp.ne.s32.totalorder %s320_s19, %s3346_s30 }
   0xe   : > { %p3354_p10 = scmp.lt.s32.totalorder %s320_s19, %s320_s19  ;;  %p3355_p11 = scmp.lt.s32.totalorder %s3353_s12, %s3346_s30 }
   0xf   : > { %p3620_p6 = pneg %p3610_p5 }
  0x10   : > { %p3356_p12 = por %p3355_p11, %p3354_p10 }
  0x11   : > { %p3349_p8 = pnand %p3347_p7, %p3620_p6 }
  0x13   : > { %p3350_p9 = pneg %p3349_p8 }
  0x15   : > { %p3357_p13 = pnand %p3356_p12, %p3350_p9 }
  0x17   : > { %3360 = shalt.err (!%p3357_p13)
}
  0x18   : > { %3165 = dma.hbm_to_vmem [thread:$0]  (!%p3610_p5), %s4326_s3, 48, %s320_s19, [#allocation7]  }
  0x19   : > { %s3372_s15 = scalar_lea.vmem %s3606_s23, 256  ;;  %p3380_p7 = scmp.lt.s32.totalorder %s3606_s23, %s3606_s23 }
  0x1a   : > { %p3373_p0 = scmp.ne.s32.totalorder %s3606_s23, %s3372_s15  ;;  %p3381_p8 = scmp.lt.s32.totalorder %s3372_s15, %s3372_s15 }
  0x1c   : > { %p3375_p1 = pnand %p3373_p0, %p3620_p6  ;;  %p3382_p9 = por %p3381_p8, %p3380_p7 }
  0x1e   : > { %p3376_p4 = pneg %p3375_p1 }
  0x20   : > { %p3383_p10 = pnand %p3382_p9, %p3376_p4 }
  0x22   : > { %3386 = shalt.err (!%p3383_p10)
}
  0x23   : > { %s3519_s16 = smov 64   ;;  %s3520_s18 = smov 4  }
  0x24   : > { %3171 = dma.hbm_to_vmem [thread:$0]  (!%p3610_p5), %s4330_s7, 256, %s3606_s23, [#allocation10], %s3519_s16, %s3519_s16, %s3520_s18  }
  0x25   : > { %s3398_s25 = scalar_lea.vmem %s3614_s26, 128  ;;  %p3406_p0 = scmp.lt.s32.totalorder %s3614_s26, %s3614_s26 }
  0x26   : > { %p3399_p11 = scmp.ne.s32.totalorder %s3614_s26, %s3398_s25  ;;  %p3407_p1 = scmp.lt.s32.totalorder %s3398_s25, %s3398_s25 }
  0x28   : > { %p3401_p12 = pnand %p3399_p11, %p3620_p6  ;;  %p3408_p4 = por %p3407_p1, %p3406_p0 }
  0x2a   : > { %p3402_p13 = pneg %p3401_p12 }
  0x2c   : > { %p3409_p7 = pnand %p3408_p4, %p3402_p13 }
  0x2e   : > { %3412 = shalt.err (!%p3409_p7)
}
  0x2f   : > { %3162 = dma.hbm_to_vmem [thread:$0]  (!%p3610_p5), %s4324_s1, 128, %s3614_s26, [#allocation5]  }
  0x30   : > { %s3424_s23 = scalar_lea.vmem %s336_s28, 256  ;;  %p3432_p11 = scmp.lt.s32.totalorder %s336_s28, %s336_s28 }
  0x31   : > { %p3425_p8 = scmp.ne.s32.totalorder %s336_s28, %s3424_s23  ;;  %p3433_p12 = scmp.lt.s32.totalorder %s3424_s23, %s3424_s23 }
  0x33   : > { %p3427_p9 = pnand %p3425_p8, %p3620_p6  ;;  %p3434_p0 = por %p3433_p12, %p3432_p11 }
  0x35   : > { %p3428_p10 = pneg %p3427_p9 }
  0x37   : > { %p3435_p13 = pnand %p3434_p0, %p3428_p10 }
  0x39   : > { %3438 = shalt.err (!%p3435_p13)
}
  0x3a   : > { %3168 = dma.hbm_to_vmem [thread:$0]  (!%p3610_p5), %s4329_s6, 256, %s336_s28, [#allocation7], %s3519_s16, %s3519_s16, %s3520_s18  }
  0x3b   : > { %s3521_s14 = smov [#allocation11]   ;;  %s3522_s15 = smov [#allocation12]  }
  0x3c   : > { %s362_s26 = sshll.u32 %s3521_s14, 4  ;;  %s372_s19 = sshll.u32 %s3522_s15, 4  ;;  %s363_s26 = int_to_ptr.vmem [resolvable:$true] %s362_s26  ;;  %s373_s19 = int_to_ptr.vmem [resolvable:$true] %s372_s19 }
  0x3d   : > { %s3450_s22 = scalar_lea.vmem %s363_s26, 64  ;;  %p3458_p8 = scmp.lt.s32.totalorder %s363_s26, %s363_s26 }
  0x3e   : > { %p3451_p1 = scmp.ne.s32.totalorder %s363_s26, %s3450_s22  ;;  %p3459_p9 = scmp.lt.s32.totalorder %s3450_s22, %s3450_s22 }
  0x40   : > { %p3453_p4 = pnand %p3451_p1, %p3620_p6  ;;  %p3460_p10 = por %p3459_p9, %p3458_p8 }
  0x42   : > { %p3454_p7 = pneg %p3453_p4 }
  0x44   : > { %p3461_p11 = pnand %p3460_p10, %p3454_p7 }
  0x46   : > { %3464 = shalt.err (!%p3461_p11)
}
  0x47   : > { %3174 = dma.hbm_to_vmem [thread:$0]  (!%p3610_p5), %s4331_s8, 64, %s363_s26, [#allocation10]  }
  0x48   : > { %s3476_s28 = scalar_lea.vmem %s373_s19, 512  ;;  %p3484_p1 = scmp.lt.s32.totalorder %s373_s19, %s373_s19 }
  0x49   : > { %p3477_p12 = scmp.ne.s32.totalorder %s373_s19, %s3476_s28  ;;  %p3485_p4 = scmp.lt.s32.totalorder %s3476_s28, %s3476_s28 }
  0x4b   : > { %p3479_p0 = pnand %p3477_p12, %p3620_p6  ;;  %p3486_p2 = por %p3485_p4, %p3484_p1 }
  0x4d   : > { %p3480_p13 = pneg %p3479_p0 }
  0x4f   : > { %p3487_p3 = pnand %p3486_p2, %p3480_p13 }
  0x51   : > { %3490 = shalt.err (!%p3487_p3)
}
  0x52   : > { %s3523_s16 = smov 128   ;;  %s3524_s18 = smov 8  }
  0x53   : > { %3177 = dma.hbm_to_vmem [thread:$0]  (!%p3610_p5), %s4332_s9, 512, %s373_s19, [#allocation13], %s3523_s16, %s3523_s16, %s3524_s18  }
  0x54   : > { %p4340_p7 = scmp.ne.s32.totalorder %s4337_s21, 0 }
  0x55   : > { %p4341_p8 = scmp.eq.s32.totalorder (!%p4340_p7), %s3595_s20, 0 }
  0x56   : > { %399 = sbr.rel (%p4340_p7) target bundleno = 3026 (0xbd2), region = 64 }
  0x5b   : > { %3496 = dma.done.wait (%p4341_p8), [#allocation5], 128   ;;  %p4342_p6 = pmov %p4341_p8 }
  0x5d   : > { %3498 = vsyncadd (%p4342_p6), [#allocation5], 4294967168  ;;  %p4343_p2 = pmov %p4342_p6 }
  0x5f   : > { %3500 = dma.done.wait (%p4343_p2), [#allocation7], 304   ;;  %p4344_p3 = pmov %p4343_p2 }
  0x60   : > { %p4345_p9 = pmov %p4343_p2 }
  0x61   : > { %3502 = vsyncadd (%p4344_p3), [#allocation7], 4294966992 }
  0x62   : > { %3504 = dma.done.wait (%p4345_p9), [#allocation10], 320   ;;  %p4346_p5 = pmov %p4343_p2 }
  0x63   : > { %p4347_p10 = pmov %p4343_p2 }
  0x64   : > { %3506 = vsyncadd (%p4346_p5), [#allocation10], 4294966976 }
  0x65   : > { %3508 = dma.done.wait (%p4347_p10), [#allocation13], 512   ;;  %p4348_p11 = pmov %p4343_p2 }
  0x66   : > { %p459_p12 = scmp.lt.s32.totalorder %s3595_s20, 1  ;;  %vm474_vm0 = vcmask 261120   ;;  %v3212_v14 = vld [vmem:[%s4325_s2 + $0x1c] ss:$12 sps:$4 sm:$0xff]   ;;  %v3214_v15 = vld [vmem:[%s4325_s2 + $0x18] ss:$12 sps:$4 sm:$0xff]   ;;  %v525_v45 = vlaneseq }
  0x67   : > { %3510 = vsyncadd (%p4348_p11), [#allocation13], 4294966784  ;;  %v3525_v16 = vmov 0.0   ;;  %v3215_v17 = vld [vmem:[%s4325_s2 + $0x20] ss:$12 sps:$4 sm:$0xff]   ;;  %v3526_v19 = vmov 0   ;;  %587 = vmatprep.subr.bf16.mxu0 %v3212_v14 }
  0x68   : > { %s4355_s20 = smov (!%p459_p12, %s3595_s20), 1  ;;  %2987 = vmatprep.subr.bf16.mxu1 %v3525_v16  ;;  %v3216_v18 = vld [vmem:[%s4325_s2 + $0x4] ss:$12 sps:$4 sm:$0xff]   ;;  %607 = vmatprep.mubr.bf16.mxu0 %v3526_v19  ;;  %v3218_v20 = vld [vmem:[%s4325_s2] ss:$12 sps:$4 sm:$0xff]   ;;  %vm3527_vm1 = vmmov 0  }
  0x69   : > { %s2922_s21 = sshll.u32 %s4355_s20, 4  ;;  %588 = vmatpush1.bf16.msra.mxu0 %v3214_v15  ;;  %2988 = vmatpush3.bf16.msra.mxu1 %v3215_v17  ;;  %v3219_v21 = vld [vmem:[%s4325_s2 + $0x8] ss:$12 sps:$4 sm:$0xff]   ;;  %v3740_v22 = vld [vmem:[%s4327_s4 + $0x4c] ss:$12 sps:$4 sm:$0xff]   ;;  %v3796_v49 = vshrl.u32 %v525_v45, 7 }
  0x6a   : > { %s3705_s12 = scalar_lea.vmem %s4323_s0, %s2922_s21  ;;  %589 = vmatprep.subr.bf16.mxu0 %v3216_v18  ;;  %2989 = vmatprep.subr.bf16.mxu1 %v3525_v16  ;;  %v2832_v31 = vld [vmem:[#allocation4] ss:$0 sm:$0xff]  ;;  %v2833_v35 = vld [vmem:[#allocation4 + $0x1] ss:$0 sm:$0xff]  ;;  %v3746_v39 = vld [vmem:[%s4327_s4 + $0x48] ss:$12 sps:$4 sm:$0xff]   ;;  %s468_s26 = scalar_lea.vmem %s4334_s11, %s2922_s21 }
  0x6b   : > { %v470_v0 = vld [vmem:[%s3705_s12] sm:$0xff]  ;;  %v471_v1 = vld [vmem:[%s3705_s12 + $0x8] sm:$0xff]  ;;  %2991 = vmatprep.mubr.msk.bf16.mxu1 %vm3527_vm1, %v3525_v16  ;;  %v3751_v40 = vld [vmem:[%s4327_s4 + $0x50] ss:$12 sps:$4 sm:$0xff]   ;;  %vm751_vm2 = vcmask 523264   ;;  %vm2292_vm3 = vcmask 522240  }
  0x6c   : > { %v475_v2 = vsel %vm474_vm0, %v470_v0, 0.0  ;;  %v478_v3 = vsel %vm474_vm0, %v471_v1, 0.0  ;;  %v3756_v42 = vld [vmem:[%s4327_s4 + $0x34] ss:$12 sps:$4 sm:$0xff]   ;;  %v3765_v43 = vld [vmem:[%s4327_s4 + $0x30] ss:$12 sps:$4 sm:$0xff]  }
  0x6d   : > { %476 = vadd.xlane.f32.xlu0 %v475_v2  ;;  %590 = vmatpush1.bf16.msra.mxu0 %v3218_v20  ;;  %v3770_v44 = vld [vmem:[%s4327_s4 + $0x38] ss:$12 sps:$4 sm:$0xff]   ;;  %v3783_v46 = vld [vmem:[%s4327_s4 + $0x1c] ss:$12 sps:$4 sm:$0xff]   ;;  %v3793_v48 = vld [vmem:[%s4327_s4 + $0x20] ss:$12 sps:$4 sm:$0xff]  }
  0x6e   : > { %2990 = vmatpush3.bf16.msra.mxu1 %v3219_v21  ;;  %763 = vmatprep.subr.bf16.mxu0 %v3740_v22  ;;  %v3788_v47 = vld [vmem:[%s4327_s4 + $0x18] ss:$12 sps:$4 sm:$0xff]   ;;  %2291 = vst.msk [vmem:[#allocation3] sm:$0xff] %vm751_vm2, %v3525_v16  ;;  %2294 = vst.msk [vmem:[#allocation3 + $0x1f] sm:$0xff] %vm751_vm2, %v3525_v16  ;;  %v2298_v51 = vld [vmem:[#allocation12] sm:$0xff]  ;;  %v3824_v54 = vsub.s32 0, %v3796_v49 }
  0x6f   : > { %2995 = vmatprep.subr.bf16.mxu1 %v3525_v16  ;;  %2295 = vst.msk [vmem:[#allocation3 + $0x27] sm:$0x7f] %vm2292_vm3, %v3525_v16  ;;  %2293 = vst.msk [vmem:[#allocation3 + $0x8] sm:$0x7f] %vm2292_vm3, %v3525_v16  ;;  %v3810_v50 = vld [vmem:[%s4327_s4 + $0x4] ss:$12 sps:$4 sm:$0xff]  }
  0x70   : > { %v3816_v52 = vld [vmem:[%s4327_s4] ss:$12 sps:$4 sm:$0xff]   ;;  %v3821_v53 = vld [vmem:[%s4327_s4 + $0x8] ss:$12 sps:$4 sm:$0xff]   ;;  %v3828_v55 = vsub.s32 2, %v3796_v49  ;;  %v3831_v56 = vsub.s32 1, %v3796_v49  ;;  %v3836_v57 = vrot.slane %v2298_v51, %v3824_v54 }
  0x71   : > { %479 = vadd.xlane.f32.xlu0 %v478_v3  ;;  %vm1108_vm4 = vcmask 130048   ;;  %s3528_s25 = smov 64   ;;  %vm1991_vm7 = vcmask 1048064  }
  0x72   : > { %v3841_v58 = vrot.slane %v2298_v51, %v3828_v55  ;;  %v3844_v59 = vrot.slane %v2298_v51, %v3831_v56 }
  0x75   : > { %v2302_v60 = vld [vmem:[#allocation3] sm:$0xff] }
  0x76   : > { %v2322_v61 = vld [vmem:[#allocation3 + $0x2] sm:$0xff]  ;;  %v2308_v62 = vmul.f32 %v3836_v57, %v2302_v60 }
  0x77   : > { %v2312_v63 = vld [vmem:[#allocation3 + $0x1] sm:$0xff] }
  0xf6   : > { %v477_v4 = vpop.xlane.xlu0 %476 }
  0xf7   : > { %v482_v5 = vmul.f32 0.03125, %v477_v4  ;;  %v523_v4 = vld [vmem:[#allocation6] sm:$0x7] }
  0xf9   : > { %v484_v6 = vsub.f32 %v470_v0, %v482_v5  ;;  %v2328_v0 = vmul.f32 %v3841_v58, %v2322_v61  ;;  %v528_v5 = vrot.slane %v523_v4, %v3824_v54 }
  0xfa   : > { %v480_v7 = vpop.xlane.xlu0 %479 }
  0xfb   : > { %v483_v8 = vmul.f32 0.03125, %v480_v7  ;;  %v486_v9 = vmul.f32 %v484_v6, %v484_v6 }
  0xfd   : > { %v485_v10 = vsub.f32 %v471_v1, %v483_v8  ;;  %v488_v11 = vsel %vm474_vm0, %v486_v9, 0.0  ;;  %v2318_v1 = vmul.f32 %v3844_v59, %v2312_v63 }
  0xfe   : > { %489 = vadd.xlane.f32.xlu1 %v488_v11 }
  0xff   : > { %v487_v12 = vmul.f32 %v485_v10, %v485_v10  ;;  %v2320_v2 = vadd.f32 %v2318_v1, %v2308_v62  ;;  %v676_v62 = vand.u32 127, %v525_v45 }
 0x101   : > { %v491_v13 = vsel %vm474_vm0, %v487_v12, 0.0  ;;  %v3849_v3 = vadd.f32 %v2328_v0, %v2320_v2  ;;  %v3908_v0 = vadd.s32 256, %v676_v62 }
 0x102   : > { %492 = vadd.xlane.f32.xlu1 %v491_v13 }
 0x103   : > { %vm681_vm5 = vcmp.lt.s32.totalorder %v3908_v0, 266 }
 0x104   : > { %vm3956_vm6 = vmpackc.low %vm681_vm5, %vm681_vm5 }
 0x187   : > { %v490_v23 = vpop.xlane.xlu1 %489 }
 0x188   : > { %v494_v24 = vmul.f32 0.03125, %v490_v23 }
 0x18a   : > { %v496_v25 = vadd.f32 1e-05, %v494_v24 }
 0x18b   : > { %v493_v26 = vpop.xlane.xlu1 %492 }
 0x18c   : > { %3252 = vrsqrt.f32 %v496_v25  ;;  %v495_v27 = vmul.f32 0.03125, %v493_v26 }
 0x18e   : > { %v497_v28 = vadd.f32 1e-05, %v495_v27 }
 0x190   : > { %3254 = vrsqrt.f32 %v497_v28 }
 0x199   : > { %v3253_v29 = vpop.eup %3252 }
 0x19a   : > { %v500_v30 = vmul.f32 %v3253_v29, %v484_v6  ;;  %v532_v6 = vrot.slane %v523_v4, %v3831_v56 }
 0x19c   : > { %v506_v34 = vmul.f32 %v2832_v31, %v500_v30 }
 0x19d   : > { %v3255_v32 = vpop.eup %3254 }
 0x19e   : > { %v501_v33 = vmul.f32 %v3255_v32, %v485_v10  ;;  %v512_v37 = vadd.f32 %v2833_v35, %v506_v34 }
 0x1a0   : > { %v507_v36 = vmul.f32 %v2832_v31, %v501_v33 }
 0x1a2   : > { %v513_v38 = vadd.f32 %v2833_v35, %v507_v36  ;;  %v536_v36 = vrot.slane %v523_v4, %v3828_v55 }
 0x1a4   : > { %v514_v41 = vpack.c.bf16 %v513_v38, %v512_v37 }
 0x1a6   : > { %2840 = vmatmul.mubr.msk.bf16.vlgmr.msra.gmra.mxu0 %vm474_vm0, %v514_v41  ;;  %2992 = vmatmul.mubr.msk.bf16.vlgmr.msra.gmra.mxu1 %vm474_vm0, %v514_v41 }
 0x1a7   : > { %764 = vmatpush1.bf16.msra.mxu0 %v3746_v39  ;;  %2996 = vmatpush3.bf16.msra.mxu1 %v3751_v40 }
 0x1a8   : > { %765 = vmatprep.subr.bf16.mxu0 %v3756_v42  ;;  %2997 = vmatprep.subr.bf16.mxu1 %v3525_v16 }
 0x1a9   : > { %787 = vmatprep.mubr.bf16.mxu0 %v3526_v19  ;;  %3003 = vmatprep.mubr.msk.bf16.mxu1 %vm3527_vm1, %v3525_v16 }
 0x1ab   : > { %766 = vmatpush1.bf16.msra.mxu0 %v3765_v43  ;;  %2998 = vmatpush3.bf16.msra.mxu1 %v3770_v44 }
 0x1ac   : > { %2999 = vmatprep.subr.bf16.mxu1 %v3525_v16  ;;  %767 = vmatprep.subr.bf16.mxu0 %v3783_v46 }
 0x1af   : > { %768 = vmatpush1.bf16.msra.mxu0 %v3788_v47  ;;  %3000 = vmatpush3.bf16.msra.mxu1 %v3793_v48 }
 0x1b0   : > { %3001 = vmatprep.subr.bf16.mxu1 %v3525_v16  ;;  %769 = vmatprep.subr.bf16.mxu0 %v3810_v50 }
 0x1b3   : > { %770 = vmatpush1.bf16.msra.mxu0 %v3816_v52  ;;  %3002 = vmatpush3.bf16.msra.mxu1 %v3821_v53 }
 0x1b4   : > { %851 = vmatprep.subr.bf16.mxu0 %v3740_v22  ;;  %3007 = vmatprep.subr.bf16.mxu1 %v3525_v16 }
 0x266   : > { %v609_v7 = vpop.f32.mrf.mxu0  ;;  %v652_v8 = vpop.f32.mrf.mxu1 }
 0x267   : > { %v610_v11 = vadd.f32 %v609_v7, %v528_v5  ;;  %v653_v38 = vadd.f32 %v652_v8, %v536_v36 }
 0x268   : > { %v611_v9 = vpop.f32.mrf.mxu0  ;;  %v2993_v10 = vpop.f32.mrf.mxu1 }
 0x269   : > { %v612_v12 = vadd.f32 %v611_v9, %v532_v6  ;;  %v682_v21 = vmul.f32 0.35355338, %v610_v11 }
 0x26a   : > { %v613_v13 = vpop.f32.mrf.mxu0  ;;  %v655_v14 = vpop.f32.mrf.mxu1 }
 0x26b   : > { %v684_v15 = vmul.f32 0.35355338, %v612_v12  ;;  %v614_v17 = vadd.f32 %v613_v13, %v528_v5  ;;  %v3871_v31 = vmul.f32 %v682_v21, %v682_v21  ;;  %v656_v37 = vadd.f32 %v655_v14, %v536_v36 }
 0x26c   : > { %v615_v18 = vpop.f32.mrf.mxu0  ;;  %v2994_v20 = vpop.f32.mrf.mxu1 }
 0x26d   : > { %v683_v23 = vmul.f32 0.35355338, %v614_v17  ;;  %v616_v24 = vadd.f32 %v615_v18, %v532_v6  ;;  %v3853_v25 = vmul.f32 %v684_v15, %v684_v15  ;;  %v929_v32 = vsel %vm751_vm2, %v3871_v31, 0.0 }
 0x26e   : > { %v3900_v41 = vpack.c.bf16 %v656_v37, %v653_v38 }
 0x26f   : > { %v3855_v26 = vpack.c.bf16 %v683_v23, %v682_v21  ;;  %v685_v27 = vmul.f32 0.35355338, %v616_v24  ;;  %v939_v28 = vsel %vm751_vm2, %v3853_v25, 0.0  ;;  %v3882_v33 = vmul.f32 %v683_v23, %v683_v23 }
 0x270   : > { %940 = vadd.xlane.f32.xlu0 %v939_v28 }
 0x271   : > { %2854 = vmatmul.mubr.msk.bf16.vlgmr.msra.gmra.mxu0 %vm751_vm2, %v3855_v26  ;;  %3004 = vmatmul.mubr.msk.bf16.vlgmr.msra.gmra.mxu1 %vm751_vm2, %v3855_v26  ;;  %v3863_v29 = vmul.f32 %v685_v27, %v685_v27  ;;  %v932_v34 = vsel %vm751_vm2, %v3882_v33, 0.0  ;;  %v3892_v35 = vpack.c.bf16 %v685_v27, %v684_v15 }
 0x272   : > { %852 = vmatpush1.bf16.msra.mxu0 %v3746_v39  ;;  %3008 = vmatpush3.bf16.msra.mxu1 %v3751_v40 }
 0x273   : > { %v942_v30 = vsel %vm751_vm2, %v3863_v29, 0.0  ;;  %853 = vmatprep.subr.bf16.mxu0 %v3756_v42  ;;  %3009 = vmatprep.subr.bf16.mxu1 %v3525_v16 }
 0x274   : > { %943 = vadd.xlane.f32.xlu1 %v942_v30  ;;  %875 = vmatprep.mubr.bf16.mxu0 %v3526_v19 }
 0x275   : > { %3015 = vmatprep.mubr.msk.bf16.mxu1 %vm3527_vm1, %v3525_v16 }
 0x276   : > { %854 = vmatpush1.bf16.msra.mxu0 %v3765_v43  ;;  %3010 = vmatpush3.bf16.msra.mxu1 %v3770_v44 }
 0x277   : > { %855 = vmatprep.subr.bf16.mxu0 %v3783_v46  ;;  %3011 = vmatprep.subr.bf16.mxu1 %v3525_v16 }
 0x278   : > { %930 = vadd.xlane.f32.xlu1 %v929_v32 }
 0x27a   : > { %856 = vmatpush1.bf16.msra.mxu0 %v3788_v47  ;;  %3012 = vmatpush3.bf16.msra.mxu1 %v3793_v48 }
 0x27b   : > { %857 = vmatprep.subr.bf16.mxu0 %v3810_v50  ;;  %3013 = vmatprep.subr.bf16.mxu1 %v3525_v16 }
 0x27c   : > { %933 = vadd.xlane.f32.xlu1 %v932_v34 }
 0x27e   : > { %858 = vmatpush1.bf16.msra.mxu0 %v3816_v52  ;;  %3014 = vmatpush3.bf16.msra.mxu1 %v3821_v53 }
 0x281   : > { %2856 = vmatmul.mubr.msk.bf16.vlgmr.msra.gmra.mxu0 %vm751_vm2, %v3892_v35  ;;  %3016 = vmatmul.mubr.msk.bf16.vlgmr.msra.gmra.mxu1 %vm751_vm2, %v3892_v35 }
 0x282   : > { %1153 = vmatprep.mubr.bf16.mxu0 %v3526_v19 }
 0x29d   : > { %1092 = vxpose.xlu0.c.b16.start.end [1/1] (short) (narrow) %v3900_v41, 64 }
 0x2f9   : > { %v941_v51 = vpop.xlane.xlu0 %940 }
 0x2fa   : > { %v945_v27 = vmul.f32 0.5, %v941_v51 }
 0x2fd   : > { %v944_v61 = vpop.xlane.xlu1 %943 }
 0x2fe   : > { %v946_v38 = vmul.f32 0.5, %v944_v61 }
 0x2ff   : > { %v3903_v60 = vpop.trf.xlu0 }
 0x300   : > { %3021 = vmatprep.mubr.msk.bf16.mxu1 %vm1108_vm4, %v3903_v60 }
 0x301   : > { %v931_v63 = vpop.xlane.xlu1 %930 }
 0x302   : > { %v3911_v1 = vmul.f32 0.5, %v931_v63 }
 0x305   : > { %v934_v2 = vpop.xlane.xlu1 %933 }
 0x306   : > { %v3927_v11 = vmul.f32 0.5, %v934_v2 }
 0x331   : > { %v3913_v4 = vpop.f32.mrf.mxu0  ;;  %v3915_v5 = vpop.f32.mrf.mxu1 }
 0x332   : > { %v967_v6 = vsub.f32 %v3913_v4, %v3911_v1  ;;  %v955_v7 = vsel %vm681_vm5, %v3915_v5, -1e+30 }
 0x333   : > { %v959_v8 = vmax.f32 %v3913_v4, %v955_v7  ;;  %v3925_v9 = vpop.f32.mrf.mxu0  ;;  %v3005_v10 = vpop.f32.mrf.mxu1 }
 0x335   : > { %v3929_v12 = vpop.f32.mrf.mxu0  ;;  %v3931_v13 = vpop.f32.mrf.mxu1  ;;  %v960_v14 = vmax.f32 %v959_v8, %v3925_v9 }
 0x336   : > { %v958_v17 = vsel %vm681_vm5, %v3931_v13, -1e+30  ;;  %v4352_v4 = vsub.f32 %v3929_v12, %v3927_v11 }
 0x337   : > { %v963_v20 = vmax.f32 %v3929_v12, %v958_v17  ;;  %v3006_v21 = vpop.f32.mrf.mxu1  ;;  %961 = vmax.xlane.f32.xlu1 %v960_v14  ;;  %v3942_v23 = vpop.f32.mrf.mxu0 }
 0x339   : > { %v964_v24 = vmax.f32 %v963_v20, %v3942_v23 }
 0x33b   : > { %965 = vmax.xlane.f32.xlu1 %v964_v24 }
 0x341   : > { %v877_v28 = vpop.f32.mrf.mxu0  ;;  %v920_v30 = vpop.f32.mrf.mxu1 }
 0x342   : > { %v1015_v32 = vsub.f32 %v877_v28, %v945_v27  ;;  %v1017_v34 = vsub.f32 %v920_v30, %v945_v27 }
 0x343   : > { %v879_v36 = vpop.f32.mrf.mxu0  ;;  %v3017_v37 = vpop.f32.mrf.mxu1 }
 0x344   : > { %v1021_v62 = vadd.f32 0.0001, %v1015_v32  ;;  %v1023_v63 = vadd.f32 0.0001, %v1017_v34  ;;  %v1016_v2 = vsub.f32 %v879_v36, %v945_v27 }
 0x345   : > { %v881_v7 = vpop.f32.mrf.mxu0  ;;  %v923_v8 = vpop.f32.mrf.mxu1 }
 0x346   : > { %v1027_v10 = vmul.f32 1.442695, %v1021_v62  ;;  %v1031_v14 = vmul.f32 1.442695, %v1023_v63  ;;  %v1022_v17 = vadd.f32 0.0001, %v1016_v2  ;;  %v1018_v21 = vsub.f32 %v881_v7, %v946_v38 }
 0x347   : > { %v1020_v18 = vsub.f32 %v923_v8, %v946_v38  ;;  %v883_v20 = vpop.f32.mrf.mxu0  ;;  %v3018_v24 = vpop.f32.mrf.mxu1 }
 0x348   : > { %v1029_v51 = vmul.f32 1.442695, %v1022_v17  ;;  %v1024_v15 = vadd.f32 0.0001, %v1018_v21  ;;  %v1019_v45 = vsub.f32 %v883_v20, %v946_v38  ;;  %3256 = vpow2.f32 %v1031_v14 }
 0x349   : > { %v1026_v28 = vadd.f32 0.0001, %v1020_v18  ;;  %3258 = vpow2.f32 %v1027_v10 }
 0x34a   : > { %v1033_v30 = vmul.f32 1.442695, %v1024_v15  ;;  %v1025_v61 = vadd.f32 0.0001, %v1019_v45  ;;  %3260 = vpow2.f32 %v1029_v51 }
 0x34b   : > { %v1037_v32 = vmul.f32 1.442695, %v1026_v28 }
 0x34c   : > { %3262 = vpow2.f32 %v1033_v30  ;;  %v1035_v27 = vmul.f32 1.442695, %v1025_v61  ;;  %1363 = vrot.lane.b32.xlu1 %v3855_v26, %s3528_s25 }
 0x34d   : > { %3264 = vpow2.f32 %v1037_v32 }
 0x34e   : > { %3266 = vpow2.f32 %v1035_v27 }
 0x350   : > { %1453 = vrot.lane.b32.xlu1 %v3892_v35, %s3528_s25  ;;  %v1101_v35 = vpop.trf.xlu0 }
 0x354   : > { %1560 = vrot.lane.b32.xlu1 %v3853_v25, %s3528_s25  ;;  %v1102_v51 = vpop.trf.xlu0 }
 0x355   : > { %v3257_v18 = vpop.eup %3256 }
 0x356   : > { %v3259_v34 = vpop.eup %3258  ;;  %v1041_v36 = vmul.f32 0.061313935, %v3257_v18  ;;  %v4351_v18 = vsub.f32 %v3915_v5, %v3911_v1  ;;  %v4353_v5 = vsub.f32 %v3931_v13, %v3927_v11 }
 0x357   : > { %v3261_v15 = vpop.eup %3260  ;;  %v1039_v38 = vmul.f32 0.061313935, %v3259_v34 }
 0x358   : > { %1562 = vrot.lane.b32.xlu1 %v3863_v29, %s3528_s25  ;;  %v1040_v2 = vmul.f32 0.061313935, %v3261_v15  ;;  %v1047_v29 = vsel %vm681_vm5, %v1041_v36, 0.0  ;;  %v1103_v28 = vpop.trf.xlu0 }
 0x359   : > { %v3263_v45 = vpop.eup %3262 }
 0x35a   : > { %v3265_v37 = vpop.eup %3264  ;;  %v1042_v62 = vmul.f32 0.061313935, %v3263_v45  ;;  %v971_v45 = vsub.f32 %v3942_v23, %v3927_v11 }
 0x35b   : > { %v3267_v26 = vpop.eup %3266  ;;  %v1044_v63 = vmul.f32 0.061313935, %v3265_v37 }
 0x35c   : > { %v1051_v7 = vadd.f32 %v1042_v62, %v1039_v38  ;;  %v1043_v8 = vmul.f32 0.061313935, %v3267_v26  ;;  %v1089_v24 = vpack.c.bf16 %v1042_v62, %v1039_v38 }
 0x35d   : > { %v1050_v10 = vsel %vm681_vm5, %v1044_v63, 0.0  ;;  %v2863_v14 = vpack.c.bf16 %v1044_v63, %v1041_v36 }
 0x35e   : > { %v1065_v17 = vadd.f32 %v1050_v10, %v1047_v29  ;;  %v1058_v21 = vadd.f32 %v1043_v8, %v1040_v2  ;;  %v1090_v20 = vpack.c.bf16 %v1043_v8, %v1040_v2  ;;  %v1052_v30 = vrot.slane %v1051_v7, 4 }
 0x35f   : > { %3019 = vmatprep.subr.msk.bf16.mxu1 %vm3956_vm6, %v2863_v14 }
 0x360   : > { %3020 = vmatpush3.bf16.msk.msra.mxu1 %vm3956_vm6, %v2863_v14  ;;  %1135 = vmatprep.subr.bf16.mxu0 %v1090_v20  ;;  %v1059_v15 = vrot.slane %v1058_v21, 4  ;;  %v1053_v38 = vadd.f32 %v1052_v30, %v1051_v7  ;;  %v1066_v62 = vrot.slane %v1065_v17, 4 }
 0x361   : > { %1136 = vmatpush1.bf16.msra.mxu0 %v1089_v24  ;;  %3029 = vmatprep.subr.bf16.mxu1 %v3525_v16 }
 0x362   : > { %v1060_v23 = vadd.f32 %v1059_v15, %v1058_v21  ;;  %v1067_v14 = vadd.f32 %v1066_v62, %v1065_v17  ;;  %v1054_v12 = vrot.slane %v1053_v38, 2 }
 0x363   : > { %3022 = vmatmul.mubr.msk.bf16.vlgmr.msra.gmra.mxu1 %vm1108_vm4, %v1101_v35 }
 0x364   : > { %2858 = vmatmul.mubr.msk.bf16.vlgmr.msra.gmra.mxu0 %vm1108_vm4, %v3903_v60  ;;  %3025 = vmatprep.mubr.msk.bf16.mxu1 %vm1108_vm4, %v1102_v51  ;;  %v968_v60 = vsub.f32 %v3925_v9, %v3911_v1  ;;  %v1061_v20 = vrot.slane %v1060_v23, 2  ;;  %v1068_v11 = vrot.slane %v1067_v14, 2  ;;  %v1055_v13 = vadd.f32 %v1054_v12, %v1053_v38 }
 0x365   : > { %1163 = vmatprep.mubr.bf16.mxu0 %v3526_v19 }
 0x366   : > { %v1062_v21 = vadd.f32 %v1061_v20, %v1060_v23  ;;  %v1056_v30 = vrot.slane %v1055_v13, 1 }
 0x368   : > { %v1057_v38 = vadd.f32 %v1056_v30, %v1055_v13 }
 0x36b   : > { %3026 = vmatmul.mubr.msk.bf16.gmra.mxu1 %vm1108_vm4, %v1103_v28 }
 0x36c   : > { %2859 = vmatmul.mubr.msk.bf16.gmra.mxu0 %vm1108_vm4, %v1101_v35  ;;  %3037 = vmatprep.mubr.msk.bf16.mxu1 %vm3527_vm1, %v3525_v16 }
 0x36d   : > { %1173 = vmatprep.mubr.bf16.mxu0 %v3526_v19 }
 0x374   : > { %2860 = vmatmul.mubr.msk.bf16.gmra.mxu0 %vm1108_vm4, %v1102_v51 }
 0x375   : > { %1183 = vmatprep.mubr.bf16.mxu0 %v3526_v19 }
 0x37c   : > { %2861 = vmatmul.mubr.msk.bf16.gmra.mxu0 %vm1108_vm4, %v1103_v28  ;;  %v1069_v28 = vadd.f32 %v1068_v11, %v1067_v14 }
 0x3c0   : > { %v962_v61 = vpop.xlane.xlu1 %961 }
 0x3c1   : > { %v973_v32 = vsub.f32 %v967_v6, %v962_v61  ;;  %v974_v27 = vsub.f32 %v968_v60, %v962_v61  ;;  %v975_v34 = vsub.f32 %v4351_v18, %v962_v61 }
 0x3c3   : > { %v981_v36 = vsel %vm681_vm5, %v975_v34, -1e+30  ;;  %v985_v37 = vmul.f32 1.442695, %v973_v32  ;;  %v987_v9 = vmul.f32 1.442695, %v974_v27 }
 0x3c4   : > { %v989_v26 = vmul.f32 1.442695, %v981_v36  ;;  %v966_v63 = vpop.xlane.xlu1 %965  ;;  %v1063_v32 = vrot.slane %v1062_v21, 1 }
 0x3c5   : > { %3268 = vpow2.f32 %v985_v37  ;;  %v976_v6 = vsub.f32 %v4352_v4, %v966_v63  ;;  %v977_v1 = vsub.f32 %v971_v45, %v966_v63  ;;  %v978_v2 = vsub.f32 %v4353_v5, %v966_v63 }
 0x3c6   : > { %3270 = vpow2.f32 %v987_v9  ;;  %v1070_v45 = vrot.slane %v1069_v28, 1  ;;  %v1064_v63 = vadd.f32 %v1063_v32, %v1062_v21 }
 0x3c7   : > { %3272 = vpow2.f32 %v989_v26  ;;  %v984_v8 = vsel %vm681_vm5, %v978_v2, -1e+30  ;;  %v991_v7 = vmul.f32 1.442695, %v976_v6  ;;  %v993_v35 = vmul.f32 1.442695, %v977_v1 }
 0x3c8   : > { %v995_v29 = vmul.f32 1.442695, %v984_v8  ;;  %v4002_v10 = vpop.permute.xlu1 %1363  ;;  %v1071_v8 = vadd.f32 %v1070_v45, %v1069_v28 }
 0x3c9   : > { %3274 = vpow2.f32 %v991_v7 }
 0x3ca   : > { %3276 = vpow2.f32 %v993_v35 }
 0x3cb   : > { %3278 = vpow2.f32 %v995_v29 }
 0x3cc   : > { %v4004_v24 = vpop.permute.xlu1 %1453 }
 0x3d0   : > { %v1561_v51 = vpop.permute.xlu1 %1560 }
 0x3d1   : > { %v1566_v60 = vsel %vm751_vm2, %v1561_v51, 0.0 }
 0x3d2   : > { %v3269_v61 = vpop.eup %3268  ;;  %1567 = vadd.xlane.f32.xlu0 %v1566_v60 }
 0x3d3   : > { %v3271_v27 = vpop.eup %3270  ;;  %v997_v17 = vadd.f32 0.0001, %v3269_v61 }
 0x3d4   : > { %v3273_v18 = vpop.eup %3272  ;;  %v1563_v34 = vpop.permute.xlu1 %1562  ;;  %v998_v15 = vadd.f32 0.0001, %v3271_v27 }
 0x3d5   : > { %v999_v36 = vadd.f32 0.0001, %v3273_v18  ;;  %v4007_v37 = vmul.f32 0.061313935, %v997_v17  ;;  %v1569_v9 = vsel %vm751_vm2, %v1563_v34, 0.0 }
 0x3d6   : > { %v3275_v62 = vpop.eup %3274  ;;  %1570 = vadd.xlane.f32.xlu1 %v1569_v9  ;;  %v1004_v26 = vmul.f32 0.061313935, %v998_v15 }
 0x3d7   : > { %v3277_v4 = vpop.eup %3276  ;;  %v4010_v6 = vmul.f32 0.061313935, %v999_v36  ;;  %v1000_v1 = vadd.f32 0.0001, %v3275_v62  ;;  %v1072_v5 = vmul.f32 %v1057_v38, %v4007_v37 }
 0x3d8   : > { %v3279_v2 = vpop.eup %3278  ;;  %v1001_v23 = vadd.f32 0.0001, %v3277_v4  ;;  %v1073_v7 = vmul.f32 %v1064_v63, %v1004_v26 }
 0x3d9   : > { %v1002_v35 = vadd.f32 0.0001, %v3279_v2  ;;  %v4013_v29 = vmul.f32 0.061313935, %v1000_v1  ;;  %v1011_v14 = vsel %vm681_vm5, %v4010_v6, 0.0 }
 0x3da   : > { %v1007_v12 = vmul.f32 0.061313935, %v1001_v23  ;;  %v1074_v20 = vmul.f32 %v1071_v8, %v1011_v14  ;;  %v1078_v11 = vadd.f32 %v1073_v7, %v1072_v5 }
 0x3db   : > { %v1008_v13 = vmul.f32 0.061313935, %v1002_v35  ;;  %v1259_v21 = vpack.c.bf16 %v4013_v29, %v4007_v37  ;;  %v1075_v51 = vmul.f32 %v1057_v38, %v4013_v29 }
 0x3dc   : > { %v1260_v60 = vpack.c.bf16 %v1007_v12, %v1004_v26  ;;  %v4021_v30 = vadd.f32 %v1078_v11, %v1074_v20  ;;  %v1076_v28 = vmul.f32 %v1064_v63, %v1007_v12 }
 0x3dd   : > { %v2870_v61 = vpack.c.bf16 %v1008_v13, %v4010_v6  ;;  %v1014_v32 = vsel %vm681_vm5, %v1008_v13, 0.0 }
 0x3de   : > { %1306 = vmatprep.mubr.bf16.mxu0 %v1260_v60  ;;  %v1077_v27 = vmul.f32 %v1071_v8, %v1014_v32  ;;  %v1082_v17 = vadd.f32 %v1076_v28, %v1075_v51 }
 0x3e0   : > { %v4026_v18 = vadd.f32 %v1082_v17, %v1077_v27 }
 0x3e8   : > { %1713 = vrot.lane.b32.xlu0 %v3900_v41, %s3528_s25 }
 0x3ec   : > { %1544 = vrot.lane.b32.xlu0 %v3871_v31, %s3528_s25 }
 0x3f0   : > { %1546 = vrot.lane.b32.xlu0 %v3882_v33, %s3528_s25 }
 0x423   : > { %v3023_v34 = vpop.f32.mrf.mxu1 }
 0x424   : > { %v1155_v15 = vpop.f32.mrf.mxu0 }
 0x425   : > { %v1228_v45 = vpop.f32.mrf.mxu1 }
 0x426   : > { %v1157_v36 = vpop.f32.mrf.mxu0 }
 0x427   : > { %v3024_v9 = vpop.f32.mrf.mxu1 }
 0x428   : > { %v1159_v38 = vpop.f32.mrf.mxu0  ;;  %v1267_v11 = vpack.c.bf16 %v3024_v9, %v3023_v34 }
 0x429   : > { %v1231_v62 = vpop.f32.mrf.mxu1 }
 0x42a   : > { %v1161_v26 = vpop.f32.mrf.mxu0  ;;  %v1264_v27 = vpack.c.bf16 %v1231_v62, %v1228_v45  ;;  %v1262_v45 = vpack.c.bf16 %v1159_v38, %v1155_v15 }
 0x42b   : > { %v3027_v63 = vpop.f32.mrf.mxu1  ;;  %v1263_v9 = vpack.c.bf16 %v1161_v26, %v1157_v36 }
 0x42c   : > { %v1165_v4 = vpop.f32.mrf.mxu0 }
 0x42d   : > { %v1244_v6 = vpop.f32.mrf.mxu1 }
 0x42e   : > { %v1167_v1 = vpop.f32.mrf.mxu0 }
 0x42f   : > { %v3028_v5 = vpop.f32.mrf.mxu1 }
 0x430   : > { %v1273_v41 = vpack.c.bf16 %v3028_v5, %v3027_v63  ;;  %v1169_v2 = vpop.f32.mrf.mxu0 }
 0x431   : > { %v1247_v23 = vpop.f32.mrf.mxu1  ;;  %v1265_v34 = vpack.c.bf16 %v1169_v2, %v1165_v4 }
 0x432   : > { %3030 = vmatpush3.bf16.xpose.msra.mxu1 %v1273_v41  ;;  %v1171_v31 = vpop.f32.mrf.mxu0  ;;  %v1270_v7 = vpack.c.bf16 %v1247_v23, %v1244_v6 }
 0x433   : > { %3031 = vmatprep.subr.bf16.mxu1 %v3525_v16  ;;  %v1266_v63 = vpack.c.bf16 %v1171_v31, %v1167_v1 }
 0x434   : > { %v1175_v33 = vpop.f32.mrf.mxu0 }
 0x436   : > { %v1177_v8 = vpop.f32.mrf.mxu0 }
 0x438   : > { %v1179_v35 = vpop.f32.mrf.mxu0 }
 0x439   : > { %v1268_v17 = vpack.c.bf16 %v1179_v35, %v1175_v33 }
 0x43a   : > { %3032 = vmatpush3.bf16.xpose.msra.mxu1 %v1270_v7  ;;  %v1181_v14 = vpop.f32.mrf.mxu0 }
 0x43b   : > { %3033 = vmatprep.subr.bf16.mxu1 %v3525_v16  ;;  %v1269_v32 = vpack.c.bf16 %v1181_v14, %v1177_v8 }
 0x43c   : > { %v1185_v12 = vpop.f32.mrf.mxu0 }
 0x43e   : > { %v1187_v20 = vpop.f32.mrf.mxu0 }
 0x440   : > { %v1189_v13 = vpop.f32.mrf.mxu0 }
 0x441   : > { %v1271_v28 = vpack.c.bf16 %v1189_v13, %v1185_v12 }
 0x442   : > { %3034 = vmatpush3.bf16.xpose.msra.mxu1 %v1267_v11  ;;  %v1191_v51 = vpop.f32.mrf.mxu0 }
 0x443   : > { %v1272_v60 = vpack.c.bf16 %v1191_v51, %v1187_v20  ;;  %3035 = vmatprep.subr.bf16.mxu1 %v3525_v16 }
 0x445   : > { %1282 = vmatprep.subr.bf16.mxu0 %v1272_v60 }
 0x446   : > { %1283 = vmatpush1.bf16.xpose.msra.mxu0 %v1271_v28 }
 0x447   : > { %1284 = vmatprep.subr.bf16.mxu0 %v1269_v32 }
 0x44a   : > { %3036 = vmatpush3.bf16.xpose.msra.mxu1 %v1264_v27 }
 0x44b   : > { %3041 = vmatprep.subr.bf16.mxu1 %v3525_v16 }
 0x44e   : > { %1285 = vmatpush1.bf16.xpose.msra.mxu0 %v1268_v17 }
 0x44f   : > { %1286 = vmatprep.subr.bf16.mxu0 %v1266_v63 }
 0x451   : > { %3038 = vmatmul.mubr.msk.bf16.vlgmr.msra.gmra.mxu1 %vm3956_vm6, %v2870_v61 }
 0x452   : > { %3042 = vmatpush3.bf16.msra.mxu1 %v3751_v40  ;;  %3049 = vmatprep.mubr.msk.bf16.mxu1 %vm3527_vm1, %v3525_v16 }
 0x453   : > { %3043 = vmatprep.subr.bf16.mxu1 %v3525_v16 }
 0x456   : > { %3044 = vmatpush3.bf16.msra.mxu1 %v3770_v44  ;;  %1287 = vmatpush1.bf16.xpose.msra.mxu0 %v1265_v34 }
 0x457   : > { %1288 = vmatprep.subr.bf16.mxu0 %v1263_v9  ;;  %3045 = vmatprep.subr.bf16.mxu1 %v3525_v16 }
 0x45a   : > { %3046 = vmatpush3.bf16.msra.mxu1 %v3793_v48 }
 0x45b   : > { %3047 = vmatprep.subr.bf16.mxu1 %v3525_v16  ;;  %v1568_v61 = vpop.xlane.xlu0 %1567 }
 0x45c   : > { %v1572_v26 = vmul.f32 0.5, %v1568_v61 }
 0x45e   : > { %3048 = vmatpush3.bf16.msra.mxu1 %v3821_v53  ;;  %1289 = vmatpush1.bf16.xpose.msra.mxu0 %v1262_v45 }
 0x45f   : > { %3053 = vmatprep.subr.bf16.mxu1 %v3525_v16  ;;  %v1714_v62 = vpop.permute.xlu0 %1713  ;;  %1376 = vmatprep.subr.bf16.mxu0 %v3740_v22 }
 0x460   : > { %1716 = vxpose.xlu1.c.b16.start.end [1/1] (short) (narrow) %v1714_v62, 64 }
 0x461   : > { %3050 = vmatmul.mubr.msk.bf16.vlgmr.msra.gmra.mxu1 %vm751_vm2, %v4002_v10 }
 0x462   : > { %3054 = vmatpush3.bf16.msra.mxu1 %v3751_v40  ;;  %3061 = vmatprep.mubr.msk.bf16.mxu1 %vm3527_vm1, %v3525_v16 }
 0x463   : > { %3055 = vmatprep.subr.bf16.mxu1 %v3525_v16  ;;  %v1545_v15 = vpop.permute.xlu0 %1544 }
 0x464   : > { %v1550_v36 = vsel %vm751_vm2, %v1545_v15, 0.0 }
 0x465   : > { %1307 = vmatmul.mubr.bf16.vlgmr.msra.gmra.mxu0 %v1259_v21  ;;  %1551 = vadd.xlane.f32.xlu0 %v1550_v36 }
 0x466   : > { %3056 = vmatpush3.bf16.msra.mxu1 %v3770_v44  ;;  %1377 = vmatpush1.bf16.msra.mxu0 %v3746_v39 }
 0x467   : > { %3057 = vmatprep.subr.bf16.mxu1 %v3525_v16  ;;  %1378 = vmatprep.subr.bf16.mxu0 %v3756_v42  ;;  %v1547_v40 = vpop.permute.xlu0 %1546 }
 0x468   : > { %1400 = vmatprep.mubr.bf16.mxu0 %v3526_v19  ;;  %v1553_v44 = vsel %vm751_vm2, %v1547_v40, 0.0 }
 0x46a   : > { %3058 = vmatpush3.bf16.msra.mxu1 %v3793_v48  ;;  %1379 = vmatpush1.bf16.msra.mxu0 %v3765_v43 }
 0x46b   : > { %3059 = vmatprep.subr.bf16.mxu1 %v3525_v16  ;;  %1380 = vmatprep.subr.bf16.mxu0 %v3783_v46 }
 0x46e   : > { %3060 = vmatpush3.bf16.msra.mxu1 %v3821_v53  ;;  %1381 = vmatpush1.bf16.msra.mxu0 %v3788_v47 }
 0x46f   : > { %1382 = vmatprep.subr.bf16.mxu0 %v3810_v50 }
 0x471   : > { %3062 = vmatmul.mubr.msk.bf16.vlgmr.msra.gmra.mxu1 %vm751_vm2, %v4004_v24 }
 0x472   : > { %1383 = vmatpush1.bf16.msra.mxu0 %v3816_v52 }
 0x473   : > { %1466 = vmatprep.subr.bf16.mxu0 %v3740_v22  ;;  %v1571_v22 = vpop.xlane.xlu1 %1570 }
 0x474   : > { %v1573_v5 = vmul.f32 0.5, %v1571_v22 }
 0x475   : > { %2872 = vmatmul.mubr.msk.bf16.vlgmr.msra.gmra.mxu0 %vm751_vm2, %v4002_v10 }
 0x476   : > { %1467 = vmatpush1.bf16.msra.mxu0 %v3746_v39  ;;  %1490 = vmatprep.mubr.bf16.mxu0 %v3526_v19 }
 0x477   : > { %1468 = vmatprep.subr.bf16.mxu0 %v3756_v42 }
 0x479   : > { %1554 = vadd.xlane.f32.xlu1 %v1553_v44 }
 0x47a   : > { %1469 = vmatpush1.bf16.msra.mxu0 %v3765_v43 }
 0x47b   : > { %1470 = vmatprep.subr.bf16.mxu0 %v3783_v46 }
 0x47e   : > { %1471 = vmatpush1.bf16.msra.mxu0 %v3788_v47 }
 0x47f   : > { %1472 = vmatprep.subr.bf16.mxu0 %v3810_v50 }
 0x482   : > { %1473 = vmatpush1.bf16.msra.mxu0 %v3816_v52 }
 0x485   : > { %2874 = vmatmul.mubr.msk.bf16.vlgmr.msra.gmra.mxu0 %vm751_vm2, %v4004_v24 }
 0x486   : > { %1776 = vmatprep.mubr.bf16.mxu0 %v3526_v19 }
 0x4c2   : > { %v4091_v39 = vpop.trf.xlu1 }
 0x4c3   : > { %3067 = vmatprep.mubr.msk.bf16.mxu1 %vm1108_vm4, %v4091_v39 }
 0x511   : > { %v1349_v42 = vpop.f32.mrf.mxu1 }
 0x513   : > { %v3039_v43 = vpop.f32.mrf.mxu1 }
 0x515   : > { %v1352_v46 = vpop.f32.mrf.mxu1 }
 0x517   : > { %v3040_v48 = vpop.f32.mrf.mxu1 }
 0x521   : > { %v4095_v47 = vpop.f32.mrf.mxu1 }
 0x522   : > { %v1576_v2 = vsel %vm681_vm5, %v4095_v47, -1e+30 }
 0x523   : > { %v3051_v50 = vpop.f32.mrf.mxu1 }
 0x524   : > { %v1725_v50 = vpop.trf.xlu1 }
 0x525   : > { %v4097_v53 = vpop.f32.mrf.mxu1  ;;  %v1308_v52 = vpop.f32.mrf.mxu0 }
 0x526   : > { %v4099_v10 = vadd.f32 %v1349_v42, %v1308_v52  ;;  %v1579_v11 = vsel %vm681_vm5, %v4097_v53, -1e+30 }
 0x527   : > { %v3052_v24 = vpop.f32.mrf.mxu1  ;;  %v1310_v37 = vpop.f32.mrf.mxu0 }
 0x529   : > { %v1311_v29 = vpop.f32.mrf.mxu0 }
 0x52a   : > { %v4101_v21 = vadd.f32 %v1352_v46, %v1311_v29 }
 0x52b   : > { %v1313_v38 = vpop.f32.mrf.mxu0 }
 0x531   : > { %v1535_v4 = vpop.f32.mrf.mxu1 }
 0x532   : > { %v1638_v6 = vsub.f32 %v1535_v4, %v1572_v26 }
 0x533   : > { %v3063_v1 = vpop.f32.mrf.mxu1 }
 0x534   : > { %v1644_v41 = vadd.f32 0.0001, %v1638_v6  ;;  %v1726_v6 = vpop.trf.xlu1 }
 0x535   : > { %v1538_v31 = vpop.f32.mrf.mxu1  ;;  %v4106_v23 = vpop.f32.mrf.mxu0 }
 0x536   : > { %v1652_v33 = vmul.f32 1.442695, %v1644_v41  ;;  %v1641_v8 = vsub.f32 %v1538_v31, %v1573_v5  ;;  %v1580_v7 = vmax.f32 %v4106_v23, %v1576_v2 }
 0x537   : > { %v3064_v35 = vpop.f32.mrf.mxu1  ;;  %v4109_v14 = vpop.f32.mrf.mxu0 }
 0x538   : > { %3280 = vpow2.f32 %v1652_v33  ;;  %v1647_v12 = vadd.f32 0.0001, %v1641_v8  ;;  %v1581_v20 = vmax.f32 %v1580_v7, %v4109_v14  ;;  %v1727_v1 = vpop.trf.xlu1 }
 0x539   : > { %v4115_v13 = vpop.f32.mrf.mxu0 }
 0x53a   : > { %v1658_v51 = vmul.f32 1.442695, %v1647_v12  ;;  %v1584_v60 = vmax.f32 %v4115_v13, %v1579_v11  ;;  %1582 = vmax.xlane.f32.xlu0 %v1581_v20 }
 0x53b   : > { %v4118_v28 = vpop.f32.mrf.mxu0 }
 0x53c   : > { %3282 = vpow2.f32 %v1658_v51  ;;  %v1585_v32 = vmax.f32 %v1584_v60, %v4118_v28  ;;  %v1552_v60 = vpop.xlane.xlu0 %1551 }
 0x53e   : > { %1586 = vmax.xlane.f32.xlu0 %v1585_v32  ;;  %v1556_v32 = vmul.f32 0.5, %v1552_v60 }
 0x545   : > { %v3281_v27 = vpop.eup %3280  ;;  %v1492_v17 = vpop.f32.mrf.mxu0 }
 0x546   : > { %v1636_v63 = vsub.f32 %v1492_v17, %v1572_v26  ;;  %v1662_v9 = vmul.f32 0.061313935, %v3281_v27  ;;  %v1555_v27 = vpop.xlane.xlu1 %1554  ;;  %v1590_v17 = vsub.f32 %v4095_v47, %v1556_v32 }
 0x547   : > { %v1494_v34 = vpop.f32.mrf.mxu0 }
 0x548   : > { %v1642_v61 = vadd.f32 0.0001, %v1636_v63  ;;  %v1637_v45 = vsub.f32 %v1494_v34, %v1572_v26  ;;  %v1668_v43 = vsel %vm681_vm5, %v1662_v9, 0.0  ;;  %v1588_v63 = vsub.f32 %v4106_v23, %v1556_v32 }
 0x549   : > { %v3283_v62 = vpop.eup %3282  ;;  %v1496_v15 = vpop.f32.mrf.mxu0  ;;  %v1557_v34 = vmul.f32 0.5, %v1555_v27 }
 0x54a   : > { %v1665_v36 = vmul.f32 0.061313935, %v3283_v62  ;;  %v1648_v40 = vmul.f32 1.442695, %v1642_v61  ;;  %v1643_v44 = vadd.f32 0.0001, %v1637_v45  ;;  %v1639_v22 = vsub.f32 %v1496_v15, %v1573_v5 }
 0x54b   : > { %v1498_v42 = vpop.f32.mrf.mxu0 }
 0x54c   : > { %v1671_v46 = vsel %vm681_vm5, %v1665_v36, 0.0  ;;  %v1645_v48 = vadd.f32 0.0001, %v1639_v22  ;;  %v1650_v24 = vmul.f32 1.442695, %v1643_v44  ;;  %v1640_v37 = vsub.f32 %v1498_v42, %v1573_v5 }
 0x54d   : > { %v4125_v52 = vadd.f32 %v1671_v46, %v1668_v43  ;;  %v2881_v29 = vpack.c.bf16 %v1665_v36, %v1662_v9  ;;  %3284 = vpow2.f32 %v1648_v40  ;;  %v1593_v36 = vsub.f32 %v4097_v53, %v1557_v34 }
 0x54e   : > { %v1654_v38 = vmul.f32 1.442695, %v1645_v48  ;;  %v1646_v26 = vadd.f32 0.0001, %v1640_v37  ;;  %v1592_v44 = vsub.f32 %v4118_v28, %v1557_v34 }
 0x54f   : > { %3065 = vmatprep.subr.msk.bf16.mxu1 %vm3956_vm6, %v2881_v29 }
 0x550   : > { %3286 = vpow2.f32 %v1654_v38  ;;  %3066 = vmatpush3.bf16.msk.msra.mxu1 %vm3956_vm6, %v2881_v29  ;;  %v1656_v4 = vmul.f32 1.442695, %v1646_v26 }
 0x551   : > { %3288 = vpow2.f32 %v1650_v24  ;;  %3075 = vmatprep.subr.bf16.mxu1 %v3525_v16 }
 0x552   : > { %3290 = vpow2.f32 %v1656_v4 }
 0x553   : > { %3068 = vmatmul.mubr.msk.bf16.vlgmr.msra.gmra.mxu1 %vm1108_vm4, %v1725_v50 }
 0x554   : > { %3071 = vmatprep.mubr.msk.bf16.mxu1 %vm1108_vm4, %v1726_v6 }
 0x55a   : > { %v3285_v5 = vpop.eup %3284 }
 0x55b   : > { %3072 = vmatmul.mubr.msk.bf16.gmra.mxu1 %vm1108_vm4, %v1727_v1  ;;  %v1660_v31 = vmul.f32 0.061313935, %v3285_v5 }
 0x55c   : > { %3083 = vmatprep.mubr.msk.bf16.mxu1 %vm3527_vm1, %v3525_v16 }
 0x55d   : > { %v3287_v41 = vpop.eup %3286 }
 0x55e   : > { %v3289_v2 = vpop.eup %3288  ;;  %v1663_v33 = vmul.f32 0.061313935, %v3287_v41 }
 0x55f   : > { %v3291_v8 = vpop.eup %3290  ;;  %v1661_v35 = vmul.f32 0.061313935, %v3289_v2 }
 0x560   : > { %v1672_v7 = vadd.f32 %v1663_v33, %v1660_v31  ;;  %v1664_v12 = vmul.f32 0.061313935, %v3291_v8  ;;  %v1709_v51 = vpack.c.bf16 %v1663_v33, %v1660_v31 }
 0x562   : > { %v1679_v20 = vadd.f32 %v1664_v12, %v1661_v35  ;;  %v1710_v11 = vpack.c.bf16 %v1664_v12, %v1661_v35  ;;  %v1673_v9 = vrot.slane %v1672_v7, 4 }
 0x564   : > { %1758 = vmatprep.subr.bf16.mxu0 %v1710_v11  ;;  %v1680_v40 = vrot.slane %v1679_v20, 4  ;;  %v1674_v42 = vadd.f32 %v1673_v9, %v1672_v7 }
 0x565   : > { %1759 = vmatpush1.bf16.msra.mxu0 %v1709_v51 }
 0x566   : > { %v1681_v53 = vadd.f32 %v1680_v40, %v1679_v20  ;;  %v1675_v26 = vrot.slane %v1674_v42, 2 }
 0x568   : > { %2876 = vmatmul.mubr.msk.bf16.vlgmr.msra.gmra.mxu0 %vm1108_vm4, %v4091_v39  ;;  %v1589_v39 = vsub.f32 %v4109_v14, %v1556_v32  ;;  %v1687_v14 = vrot.slane %v4125_v52, 4  ;;  %v1682_v4 = vrot.slane %v1681_v53, 2 }
 0x569   : > { %1786 = vmatprep.mubr.bf16.mxu0 %v3526_v19 }
 0x56a   : > { %v1688_v38 = vadd.f32 %v1687_v14, %v4125_v52  ;;  %v1683_v5 = vadd.f32 %v1682_v4, %v1681_v53 }
 0x56c   : > { %v1684_v33 = vrot.slane %v1683_v5, 1 }
 0x56e   : > { %v1685_v27 = vadd.f32 %v1684_v33, %v1683_v5 }
 0x570   : > { %2877 = vmatmul.mubr.msk.bf16.gmra.mxu0 %vm1108_vm4, %v1725_v50 }
 0x571   : > { %1796 = vmatprep.mubr.bf16.mxu0 %v3526_v19 }
 0x578   : > { %2878 = vmatmul.mubr.msk.bf16.gmra.mxu0 %vm1108_vm4, %v1726_v6  ;;  %v1689_v6 = vrot.slane %v1688_v38, 2 }
 0x579   : > { %1806 = vmatprep.mubr.bf16.mxu0 %v3526_v19  ;;  %v1591_v19 = vsub.f32 %v4115_v13, %v1557_v34 }
 0x57a   : > { %v1690_v41 = vadd.f32 %v1689_v6, %v1688_v38 }
 0x57c   : > { %v1691_v20 = vrot.slane %v1690_v41, 1 }
 0x580   : > { %2879 = vmatmul.mubr.msk.bf16.gmra.mxu0 %vm1108_vm4, %v1727_v1  ;;  %v1676_v1 = vadd.f32 %v1675_v26, %v1674_v42 }
 0x582   : > { %v1677_v2 = vrot.slane %v1676_v1, 1 }
 0x584   : > { %v1678_v52 = vadd.f32 %v1677_v2, %v1676_v1 }
 0x5c3   : > { %v1583_v61 = vpop.xlane.xlu0 %1582 }
 0x5c4   : > { %v1594_v45 = vsub.f32 %v1588_v63, %v1583_v61  ;;  %v1595_v62 = vsub.f32 %v1589_v39, %v1583_v61  ;;  %v1596_v15 = vsub.f32 %v1590_v17, %v1583_v61 }
 0x5c6   : > { %v1602_v47 = vsel %vm681_vm5, %v1596_v15, -1e+30  ;;  %v1606_v22 = vmul.f32 1.442695, %v1594_v45  ;;  %v1608_v23 = vmul.f32 1.442695, %v1595_v62  ;;  %v1692_v45 = vadd.f32 %v1691_v20, %v1690_v41 }
 0x5c7   : > { %v1610_v43 = vmul.f32 1.442695, %v1602_v47  ;;  %v1587_v46 = vpop.xlane.xlu0 %1586 }
 0x5c8   : > { %3292 = vpow2.f32 %v1606_v22  ;;  %v1597_v48 = vsub.f32 %v1591_v19, %v1587_v46  ;;  %v1598_v50 = vsub.f32 %v1592_v44, %v1587_v46  ;;  %v1599_v24 = vsub.f32 %v1593_v36, %v1587_v46 }
 0x5c9   : > { %3294 = vpow2.f32 %v1608_v23 }
 0x5ca   : > { %3296 = vpow2.f32 %v1610_v43  ;;  %v1605_v13 = vsel %vm681_vm5, %v1599_v24, -1e+30  ;;  %v1612_v28 = vmul.f32 1.442695, %v1597_v48  ;;  %v1614_v37 = vmul.f32 1.442695, %v1598_v50 }
 0x5cb   : > { %v1616_v29 = vmul.f32 1.442695, %v1605_v13 }
 0x5cc   : > { %3298 = vpow2.f32 %v1612_v28 }
 0x5cd   : > { %3300 = vpow2.f32 %v1614_v37 }
 0x5ce   : > { %3302 = vpow2.f32 %v1616_v29 }
 0x5d5   : > { %v3293_v31 = vpop.eup %3292 }
 0x5d6   : > { %v3295_v8 = vpop.eup %3294  ;;  %v1618_v7 = vadd.f32 0.0001, %v3293_v31 }
 0x5d7   : > { %v3297_v35 = vpop.eup %3296  ;;  %v1619_v12 = vadd.f32 0.0001, %v3295_v8 }
 0x5d8   : > { %v1620_v11 = vadd.f32 0.0001, %v3297_v35  ;;  %v4157_v51 = vmul.f32 0.061313935, %v1618_v7 }
 0x5d9   : > { %v3299_v60 = vpop.eup %3298  ;;  %v1625_v32 = vmul.f32 0.061313935, %v1619_v12 }
 0x5da   : > { %v3301_v17 = vpop.eup %3300  ;;  %v1626_v63 = vmul.f32 0.061313935, %v1620_v11  ;;  %v1693_v39 = vmul.f32 %v1678_v52, %v4157_v51  ;;  %v1621_v34 = vadd.f32 0.0001, %v3299_v60 }
 0x5db   : > { %v3303_v9 = vpop.eup %3302  ;;  %v1622_v61 = vadd.f32 0.0001, %v3301_v17  ;;  %v1694_v62 = vmul.f32 %v1685_v27, %v1625_v32 }
 0x5dc   : > { %v1632_v15 = vsel %vm681_vm5, %v1626_v63, 0.0  ;;  %v1623_v36 = vadd.f32 0.0001, %v3303_v9  ;;  %v4162_v19 = vmul.f32 0.061313935, %v1621_v34 }
 0x5dd   : > { %v1628_v40 = vmul.f32 0.061313935, %v1622_v61  ;;  %v1695_v44 = vmul.f32 %v1692_v45, %v1632_v15  ;;  %v1699_v47 = vadd.f32 %v1694_v62, %v1693_v39 }
 0x5de   : > { %v1629_v22 = vmul.f32 0.061313935, %v1623_v36  ;;  %v1696_v23 = vmul.f32 %v1678_v52, %v4162_v19  ;;  %v1882_v14 = vpack.c.bf16 %v4162_v19, %v4157_v51  ;;  %v3236_v19 = vld [vmem:[%s4328_s5 + $0x38] sm:$0xff]  }
 0x5df   : > { %v1883_v42 = vpack.c.bf16 %v1628_v40, %v1625_v32  ;;  %v1700_v43 = vadd.f32 %v1699_v47, %v1695_v44  ;;  %v1697_v46 = vmul.f32 %v1685_v27, %v1628_v40 }
 0x5e0   : > { %v1635_v48 = vsel %vm681_vm5, %v1629_v22, 0.0  ;;  %v2888_v50 = vpack.c.bf16 %v1629_v22, %v1626_v63 }
 0x5e1   : > { %1929 = vmatprep.mubr.bf16.mxu0 %v1883_v42  ;;  %1701 = vadd.xlane.f32.xlu0 %v1700_v43  ;;  %v1698_v24 = vmul.f32 %v1692_v45, %v1635_v48  ;;  %v1703_v53 = vadd.f32 %v1697_v46, %v1696_v23  ;;  %v3240_v48 = vld [vmem:[%s4328_s5 + $0x18] sm:$0xff]  }
 0x5e3   : > { %v1704_v13 = vadd.f32 %v1703_v53, %v1698_v24 }
 0x5e5   : > { %1705 = vadd.xlane.f32.xlu0 %v1704_v13 }
 0x5e9   : > { %1080 = vadd.xlane.f32.xlu0 %v4021_v30 }
 0x5ed   : > { %1084 = vadd.xlane.f32.xlu0 %v4026_v18 }
 0x613   : > { %v3069_v28 = vpop.f32.mrf.mxu1 }
 0x615   : > { %v1851_v37 = vpop.f32.mrf.mxu1 }
 0x617   : > { %v3070_v29 = vpop.f32.mrf.mxu1 }
 0x618   : > { %v1890_v18 = vpack.c.bf16 %v3070_v29, %v3069_v28  ;;  %v3241_v29 = vld [vmem:[%s4328_s5 + $0x10] sm:$0xff]  }
 0x619   : > { %v1854_v38 = vpop.f32.mrf.mxu1 }
 0x61a   : > { %v1887_v12 = vpack.c.bf16 %v1854_v38, %v1851_v37  ;;  %v3242_v38 = vld [vmem:[%s4328_s5 + $0x8] sm:$0xff]  }
 0x61b   : > { %v3073_v26 = vpop.f32.mrf.mxu1 }
 0x61d   : > { %v1867_v4 = vpop.f32.mrf.mxu1 }
 0x61f   : > { %v3074_v6 = vpop.f32.mrf.mxu1 }
 0x620   : > { %v1896_v0 = vpack.c.bf16 %v3074_v6, %v3073_v26  ;;  %v3243_v26 = vld [vmem:[%s4328_s5] sm:$0xff]  }
 0x621   : > { %v1870_v1 = vpop.f32.mrf.mxu1 }
 0x622   : > { %3076 = vmatpush3.bf16.xpose.msra.mxu1 %v1896_v0  ;;  %v1893_v5 = vpack.c.bf16 %v1870_v1, %v1867_v4 }
 0x623   : > { %3077 = vmatprep.subr.bf16.mxu1 %v3525_v16 }
 0x628   : > { %v1778_v41 = vpop.f32.mrf.mxu0 }
 0x62a   : > { %3078 = vmatpush3.bf16.xpose.msra.mxu1 %v1893_v5  ;;  %v1780_v2 = vpop.f32.mrf.mxu0 }
 0x62b   : > { %3079 = vmatprep.subr.bf16.mxu1 %v3525_v16 }
 0x62c   : > { %v1782_v30 = vpop.f32.mrf.mxu0 }
 0x62d   : > { %v1885_v15 = vpack.c.bf16 %v1782_v30, %v1778_v41 }
 0x62e   : > { %v1784_v31 = vpop.f32.mrf.mxu0 }
 0x62f   : > { %v1886_v25 = vpack.c.bf16 %v1784_v31, %v1780_v2 }
 0x630   : > { %v1788_v33 = vpop.f32.mrf.mxu0 }
 0x632   : > { %3080 = vmatpush3.bf16.xpose.msra.mxu1 %v1890_v18  ;;  %v1790_v8 = vpop.f32.mrf.mxu0 }
 0x633   : > { %3081 = vmatprep.subr.bf16.mxu1 %v3525_v16 }
 0x634   : > { %v1792_v7 = vpop.f32.mrf.mxu0 }
 0x635   : > { %v1888_v62 = vpack.c.bf16 %v1792_v7, %v1788_v33 }
 0x636   : > { %v1794_v35 = vpop.f32.mrf.mxu0 }
 0x637   : > { %v1889_v45 = vpack.c.bf16 %v1794_v35, %v1790_v8 }
 0x638   : > { %v1798_v20 = vpop.f32.mrf.mxu0 }
 0x63a   : > { %3082 = vmatpush3.bf16.xpose.msra.mxu1 %v1887_v12  ;;  %v1800_v11 = vpop.f32.mrf.mxu0 }
 0x63b   : > { %3107 = vmatprep.subr.bf16.mxu1 %v3525_v16 }
 0x63c   : > { %v1802_v52 = vpop.f32.mrf.mxu0 }
 0x63d   : > { %v1891_v61 = vpack.c.bf16 %v1802_v52, %v1798_v20  ;;  %v2890_v20 = vld [vmem:[#allocation4 + $0x2] ss:$0 sm:$0xff] }
 0x63e   : > { %v1804_v60 = vpop.f32.mrf.mxu0 }
 0x63f   : > { %v1892_v9 = vpack.c.bf16 %v1804_v60, %v1800_v11 }
 0x640   : > { %v1808_v32 = vpop.f32.mrf.mxu0 }
 0x641   : > { %3084 = vmatmul.mubr.msk.bf16.vlgmr.msra.gmra.mxu1 %vm3956_vm6, %v2888_v50 }
 0x642   : > { %3111 = vmatprep.mubr.msk.bf16.mxu1 %vm3527_vm1, %v3525_v16  ;;  %v1810_v27 = vpop.f32.mrf.mxu0 }
 0x644   : > { %v1812_v17 = vpop.f32.mrf.mxu0 }
 0x645   : > { %v1894_v34 = vpack.c.bf16 %v1812_v17, %v1808_v32  ;;  %v3332_v32 = vld [vmem:[%s3705_s12] sm:$0xff] }
 0x646   : > { %v1814_v63 = vpop.f32.mrf.mxu0 }
 0x647   : > { %v1895_v39 = vpack.c.bf16 %v1814_v63, %v1810_v27 }
 0x649   : > { %1905 = vmatprep.subr.bf16.mxu0 %v1895_v39 }
 0x64a   : > { %1906 = vmatpush1.bf16.xpose.msra.mxu0 %v1894_v34 }
 0x64b   : > { %1907 = vmatprep.subr.bf16.mxu0 %v1892_v9  ;;  %v3333_v9 = vld [vmem:[%s3705_s12 + $0x8] sm:$0xff] }
 0x652   : > { %1908 = vmatpush1.bf16.xpose.msra.mxu0 %v1891_v61 }
 0x653   : > { %1909 = vmatprep.subr.bf16.mxu0 %v1889_v45 }
 0x65a   : > { %1910 = vmatpush1.bf16.xpose.msra.mxu0 %v1888_v62 }
 0x65b   : > { %1911 = vmatprep.subr.bf16.mxu0 %v1886_v25 }
 0x662   : > { %1912 = vmatpush1.bf16.xpose.msra.mxu0 %v1885_v15 }
 0x663   : > { %3087 = vmatprep.subr.bf16.mxu0 %v3525_v16 }
 0x669   : > { %1930 = vmatmul.mubr.bf16.vlgmr.msra.gmra.mxu0 %v1882_v14  ;;  %v3237_v14 = vld [vmem:[%s4328_s5 + $0x30] sm:$0xff]  }
 0x66a   : > { %v1702_v36 = vpop.xlane.xlu0 %1701  ;;  %3103 = vmatprep.mubr.msk.bf16.mxu0 %vm3527_vm1, %v3525_v16  ;;  %3088 = vmatpush3.bf16.msra.mxu0 %v3236_v19 }
 0x66b   : > { %3089 = vmatprep.subr.bf16.mxu0 %v3525_v16  ;;  %v1707_v28 = vadd.f32 1e-08, %v1702_v36 }
 0x66e   : > { %v1706_v40 = vpop.xlane.xlu0 %1705  ;;  %3090 = vmatpush3.bf16.msra.mxu0 %v3237_v14 }
 0x66f   : > { %3091 = vmatprep.subr.bf16.mxu0 %v3525_v16  ;;  %v1708_v37 = vadd.f32 1e-08, %v1706_v40 }
 0x672   : > { %v1081_v44 = vpop.xlane.xlu0 %1080 }
 0x673   : > { %v1086_v47 = vadd.f32 1e-08, %v1081_v44 }
 0x675   : > { %3304 = vrcp.f32 %v1086_v47 }
 0x676   : > { %v1085_v22 = vpop.xlane.xlu0 %1084 }
 0x677   : > { %v1087_v23 = vadd.f32 1e-08, %v1085_v22 }
 0x679   : > { %3306 = vrcp.f32 %v1087_v23 }
 0x67a   : > { %3308 = vrcp.f32 %v1707_v28 }
 0x67b   : > { %3310 = vrcp.f32 %v1708_v37 }
 0x682   : > { %v3305_v42 = vpop.eup %3304 }
 0x683   : > { %v1357_v43 = vmul.f32 %v3305_v42, %v4099_v10  ;;  %v3238_v10 = vld [vmem:[%s4328_s5 + $0x28] sm:$0xff]  }
 0x684   : > { %3092 = vmatpush3.bf16.msra.mxu0 %v3238_v10 }
 0x685   : > { %1360 = vst.msk [vmem:[#allocation2] sm:$0xff] %vm751_vm2, %v1357_v43  ;;  %3093 = vmatprep.subr.bf16.mxu0 %v3525_v16  ;;  %v3244_v43 = vld [vmem:[#allocation8 + $0x8] sm:$0xff]  }
 0x686   : > { %v3307_v46 = vpop.eup %3306  ;;  %3108 = vmatpush3.bf16.msra.mxu1 %v3244_v43  ;;  %v4275_v43 = vsub.s32 6, %v3796_v49 }
 0x687   : > { %v1359_v51 = vmul.f32 %v3307_v46, %v4101_v21  ;;  %v3239_v21 = vld [vmem:[%s4328_s5 + $0x20] sm:$0xff]   ;;  %v3309_v0 = vpop.eup %3308  ;;  %v3245_v46 = vld [vmem:[#allocation8] sm:$0xff]   ;;  %3109 = vmatprep.subr.bf16.mxu1 %v3525_v16 }
 0x688   : > { %3094 = vmatpush3.bf16.msra.mxu0 %v3239_v21  ;;  %v3311_v30 = vpop.eup %3310 }
 0x689   : > { %1361 = vst.msk [vmem:[#allocation2 + $0x8] sm:$0xff] %vm751_vm2, %v1359_v51  ;;  %3095 = vmatprep.subr.bf16.mxu0 %v3525_v16 }
 0x68a   : > { %3110 = vmatpush3.bf16.msra.mxu1 %v3245_v46  ;;  %v2352_v46 = vld [vmem:[#allocation3 + $0x5] sm:$0xff] }
 0x68b   : > { %3115 = vmatprep.subr.bf16.mxu1 %v3525_v16 }
 0x68c   : > { %3096 = vmatpush3.bf16.msra.mxu0 %v3240_v48 }
 0x68d   : > { %3097 = vmatprep.subr.bf16.mxu0 %v3525_v16 }
 0x690   : > { %3098 = vmatpush3.bf16.msra.mxu0 %v3241_v29  ;;  %v2900_v29 = vld [vmem:[#allocation4 + $0x4] ss:$0 sm:$0xff] }
 0x691   : > { %3099 = vmatprep.subr.bf16.mxu0 %v3525_v16 }
 0x694   : > { %3100 = vmatpush3.bf16.msra.mxu0 %v3242_v38 }
 0x695   : > { %3101 = vmatprep.subr.bf16.mxu0 %v3525_v16 }
 0x698   : > { %3102 = vmatpush3.bf16.msra.mxu0 %v3243_v26 }
 0x701   : > { %v1972_v50 = vpop.f32.mrf.mxu1 }
 0x703   : > { %v3085_v24 = vpop.f32.mrf.mxu1 }
 0x705   : > { %v1975_v53 = vpop.f32.mrf.mxu1 }
 0x707   : > { %v3086_v13 = vpop.f32.mrf.mxu1 }
 0x729   : > { %v1931_v4 = vpop.f32.mrf.mxu0 }
 0x72a   : > { %v1973_v6 = vadd.f32 %v1972_v50, %v1931_v4 }
 0x72b   : > { %v1933_v1 = vpop.f32.mrf.mxu0 }
 0x72c   : > { %v1980_v5 = vmul.f32 %v3309_v0, %v1973_v6  ;;  %v3246_v6 = vld [vmem:[#allocation9 + $0x8] sm:$0xff]   ;;  %v3247_v1 = vld [vmem:[#allocation9] sm:$0xff]  }
 0x72d   : > { %v1934_v41 = vpop.f32.mrf.mxu0 }
 0x72e   : > { %v1976_v2 = vadd.f32 %v1975_v53, %v1934_v41  ;;  %1985 = vrot.lane.b32.xlu1 %v1980_v5, %s3528_s25  ;;  %v2899_v53 = vld [vmem:[#allocation4 + $0x3] ss:$0 sm:$0xff]  ;;  %v3248_v5 = vld [vmem:[%s4333_s10 + $0x18] sm:$0xff]   ;;  %v3249_v41 = vld [vmem:[%s4333_s10 + $0x10] sm:$0xff]  }
 0x72f   : > { %v1936_v18 = vpop.f32.mrf.mxu0 }
 0x730   : > { %v1982_v31 = vmul.f32 %v3311_v30, %v1976_v2  ;;  %v3250_v2 = vld [vmem:[%s4333_s10 + $0x8] sm:$0xff]   ;;  %v3251_v30 = vld [vmem:[%s4333_s10] sm:$0xff]  }
 0x732   : > { %1987 = vrot.lane.b32.xlu0 %v1982_v31, %s3528_s25 }
 0x7a0   : > { %v1986_v33 = vpop.permute.xlu1 %1985 }
 0x7a1   : > { %1992 = vst.msk [vmem:[#allocation2] sm:$0xff] %vm1991_vm7, %v1986_v33 }
 0x7a4   : > { %v1988_v8 = vpop.permute.xlu0 %1987 }
 0x7a5   : > { %1993 = vst.msk [vmem:[#allocation2 + $0x8] sm:$0xff] %vm1991_vm7, %v1988_v8 }
 0x7a8   : > { %v1994_v7 = vld [vmem:[#allocation2] sm:$0xff] }
 0x7ac   : > { %v1995_v35 = vld [vmem:[#allocation2 + $0x8] sm:$0xff] }
 0x7ad   : > { %v1996_v12 = vpack.c.bf16 %v1995_v35, %v1994_v7  ;;  %v2905_v7 = vld [vmem:[#allocation11 + $0x1] ss:$0 sm:$0xff] }
 0x7af   : > { %3104 = vmatmul.mubr.bf16.vlgmr.msra.gmra.mxu0 %v1996_v12 }
 0x86f   : > { %v2100_v11 = vpop.f32.mrf.mxu0 }
 0x870   : > { %v2101_v52 = vadd.f32 %v2890_v20, %v2100_v11 }
 0x871   : > { %v3105_v60 = vpop.f32.mrf.mxu0 }
 0x872   : > { %v4223_v27 = vadd.f32 %v3332_v32, %v2101_v52 }
 0x873   : > { %v2103_v17 = vpop.f32.mrf.mxu0 }
 0x874   : > { %v2104_v63 = vadd.f32 %v2890_v20, %v2103_v17  ;;  %v2111_v39 = vsel %vm474_vm0, %v4223_v27, 0.0 }
 0x875   : > { %2112 = vadd.xlane.f32.xlu1 %v2111_v39  ;;  %v3106_v34 = vpop.f32.mrf.mxu0  ;;  %v3334_v39 = vld [vmem:[#allocation12] sm:$0xff] }
 0x876   : > { %v4228_v61 = vadd.f32 %v3333_v9, %v2104_v63  ;;  %v4262_v63 = vsub.s32 3, %v3796_v49 }
 0x878   : > { %v2114_v45 = vsel %vm474_vm0, %v4228_v61, 0.0  ;;  %v2337_v34 = vrot.slane %v3334_v39, %v4262_v63 }
 0x879   : > { %2115 = vadd.xlane.f32.xlu0 %v2114_v45  ;;  %v4266_v45 = vsub.s32 4, %v3796_v49 }
 0x8fe   : > { %v2113_v62 = vpop.xlane.xlu1 %2112 }
 0x8ff   : > { %v2117_v25 = vmul.f32 0.03125, %v2113_v62  ;;  %v2332_v62 = vld [vmem:[#allocation3 + $0x3] sm:$0xff] }
 0x901   : > { %v2119_v15 = vsub.f32 %v4223_v27, %v2117_v25 }
 0x902   : > { %v2116_v36 = vpop.xlane.xlu0 %2115 }
 0x903   : > { %v2118_v40 = vmul.f32 0.03125, %v2116_v36  ;;  %v2121_v44 = vmul.f32 %v2119_v15, %v2119_v15 }
 0x905   : > { %v2120_v47 = vsub.f32 %v4228_v61, %v2118_v40  ;;  %v2123_v22 = vsel %vm474_vm0, %v2121_v44, 0.0  ;;  %v2347_v40 = vrot.slane %v3334_v39, %v4266_v45  ;;  %v4270_v44 = vsub.s32 5, %v3796_v49 }
 0x906   : > { %2124 = vadd.xlane.f32.xlu1 %v2123_v22 }
 0x907   : > { %v2122_v23 = vmul.f32 %v2120_v47, %v2120_v47 }
 0x909   : > { %v2126_v42 = vsel %vm474_vm0, %v2122_v23, 0.0 }
 0x90a   : > { %2127 = vadd.xlane.f32.xlu0 %v2126_v42  ;;  %v2357_v42 = vrot.slane %v3334_v39, %v4270_v44 }
 0x98f   : > { %v2125_v51 = vpop.xlane.xlu1 %2124 }
 0x990   : > { %v2129_v19 = vmul.f32 0.03125, %v2125_v51  ;;  %v2901_v51 = vld [vmem:[#allocation11] ss:$0 sm:$0xff] }
 0x992   : > { %v2131_v14 = vadd.f32 1e-05, %v2129_v19 }
 0x993   : > { %v2128_v10 = vpop.xlane.xlu0 %2127 }
 0x994   : > { %3312 = vrsqrt.f32 %v2131_v14  ;;  %v2130_v21 = vmul.f32 0.03125, %v2128_v10  ;;  %v2358_v14 = vmul.f32 %v2357_v42, %v2352_v46  ;;  %v2367_v10 = vrot.slane %v3334_v39, %v4275_v43 }
 0x996   : > { %v2132_v48 = vadd.f32 1e-05, %v2130_v21  ;;  %v4279_v21 = vsub.s32 7, %v3796_v49 }
 0x998   : > { %3314 = vrsqrt.f32 %v2132_v48  ;;  %v2362_v48 = vld [vmem:[#allocation3 + $0x6] sm:$0xff] }
 0x9a1   : > { %v3313_v50 = vpop.eup %3312 }
 0x9a2   : > { %v2135_v24 = vmul.f32 %v3313_v50, %v2119_v15  ;;  %v2338_v15 = vmul.f32 %v2337_v34, %v2332_v62 }
 0x9a4   : > { %v2141_v37 = vmul.f32 %v2899_v53, %v2135_v24  ;;  %v2340_v22 = vadd.f32 %v2338_v15, %v3849_v3 }
 0x9a5   : > { %v3315_v13 = vpop.eup %3314 }
 0x9a6   : > { %v2136_v28 = vmul.f32 %v3315_v13, %v2120_v47  ;;  %v2147_v26 = vadd.f32 %v2900_v29, %v2141_v37  ;;  %v2342_v47 = vld [vmem:[#allocation3 + $0x4] sm:$0xff]  ;;  %v2368_v13 = vmul.f32 %v2367_v10, %v2362_v48 }
 0x9a7   : > { %v2348_v23 = vmul.f32 %v2347_v40, %v2342_v47  ;;  %v2372_v37 = vld [vmem:[#allocation3 + $0x7] sm:$0xff] }
 0x9a8   : > { %v2142_v38 = vmul.f32 %v2899_v53, %v2136_v28  ;;  %v2377_v28 = vrot.slane %v3334_v39, %v4279_v21 }
 0x9a9   : > { %v2350_v19 = vadd.f32 %v2348_v23, %v2340_v22 }
 0x9aa   : > { %v2148_v4 = vadd.f32 %v2900_v29, %v2142_v38 }
 0x9ab   : > { %v2360_v3 = vadd.f32 %v2358_v14, %v2350_v19 }
 0x9ac   : > { %v2149_v0 = vpack.c.bf16 %v2148_v4, %v2147_v26  ;;  %v2299_v26 = vld [vmem:[#allocation12 + $0x8] sm:$0xff] }
 0x9ad   : > { %v2386_v49 = vrot.slane %v2299_v26, %v3824_v54  ;;  %v2440_v22 = vrot.slane %v2299_v26, %v4275_v43 }
 0x9ae   : > { %3112 = vmatmul.mubr.msk.bf16.vlgmr.msra.gmra.mxu1 %vm474_vm0, %v2149_v0 }
 0x9af   : > { %3116 = vmatpush3.bf16.msra.mxu1 %v3246_v6  ;;  %3119 = vmatprep.mubr.msk.bf16.mxu1 %vm3527_vm1, %v3525_v16  ;;  %v2370_v6 = vadd.f32 %v2368_v13, %v2360_v3 }
 0x9b0   : > { %3117 = vmatprep.subr.bf16.mxu1 %v3525_v16 }
 0x9b3   : > { %3118 = vmatpush3.bf16.msra.mxu1 %v3247_v1  ;;  %v2395_v1 = vrot.slane %v2299_v26, %v3831_v56 }
 0x9b4   : > { %3123 = vmatprep.subr.bf16.mxu1 %v3525_v16 }
 0x9b6   : > { %3120 = vmatmul.mubr.msk.bf16.vlgmr.msra.gmra.mxu1 %vm474_vm0, %v2149_v0  ;;  %v2378_v0 = vmul.f32 %v2377_v28, %v2372_v37 }
 0x9b7   : > { %3131 = vmatprep.mubr.msk.bf16.mxu1 %vm3527_vm1, %v3525_v16  ;;  %3124 = vmatpush3.bf16.msra.mxu1 %v3248_v5 }
 0x9b8   : > { %3125 = vmatprep.subr.bf16.mxu1 %v3525_v16  ;;  %v2380_v5 = vadd.f32 %v2378_v0, %v2370_v6 }
 0x9bb   : > { %3126 = vmatpush3.bf16.msra.mxu1 %v3249_v41 }
 0x9bc   : > { %3127 = vmatprep.subr.bf16.mxu1 %v3525_v16 }
 0x9bf   : > { %3128 = vmatpush3.bf16.msra.mxu1 %v3250_v2 }
 0x9c0   : > { %3129 = vmatprep.subr.bf16.mxu1 %v3525_v16 }
 0x9c3   : > { %3130 = vmatpush3.bf16.msra.mxu1 %v3251_v30 }
 0xa6e   : > { %v2208_v18 = vpop.f32.mrf.mxu1 }
 0xa6f   : > { %v2209_v50 = vadd.f32 %v2901_v51, %v2208_v18  ;;  %v2404_v18 = vrot.slane %v2299_v26, %v3828_v55 }
 0xa70   : > { %v3113_v31 = vpop.f32.mrf.mxu1 }
 0xa72   : > { %v2211_v33 = vpop.f32.mrf.mxu1 }
 0xa73   : > { %v2212_v29 = vadd.f32 %v2901_v51, %v2211_v33 }
 0xa74   : > { %v3114_v8 = vpop.f32.mrf.mxu1 }
 0xa76   : > { %v2270_v35 = vpop.f32.mrf.mxu1 }
 0xa77   : > { %v2271_v12 = vadd.f32 %v2905_v7, %v2270_v35  ;;  %v2413_v35 = vrot.slane %v2299_v26, %v4262_v63 }
 0xa78   : > { %v3121_v20 = vpop.f32.mrf.mxu1 }
 0xa79   : > { %v2909_v11 = vmul.f32 -1.442695, %v2271_v12 }
 0xa7a   : > { %v2273_v52 = vpop.f32.mrf.mxu1 }
 0xa7b   : > { %3316 = vpow2.f32 %v2909_v11  ;;  %v2274_v60 = vadd.f32 %v2905_v7, %v2273_v52 }
 0xa7c   : > { %v3122_v32 = vpop.f32.mrf.mxu1 }
 0xa7d   : > { %v2910_v17 = vmul.f32 -1.442695, %v2274_v60  ;;  %v2422_v32 = vrot.slane %v2299_v26, %v4266_v45 }
 0xa7f   : > { %3318 = vpow2.f32 %v2910_v17 }
 0xa88   : > { %v3317_v16 = vpop.eup %3316 }
 0xa89   : > { %v2283_v9 = vadd.f32 1.0, %v3317_v16 }
 0xa8b   : > { %3320 = vrcp.f32 %v2283_v9 }
 0xa8c   : > { %v3319_v25 = vpop.eup %3318 }
 0xa8d   : > { %v2284_v36 = vadd.f32 1.0, %v3319_v25 }
 0xa8f   : > { %3322 = vrcp.f32 %v2284_v36 }
 0xa98   : > { %v3321_v24 = vpop.eup %3320 }
 0xa99   : > { %v2289_v53 = vmul.f32 %v3321_v24, %v2209_v50 }
 0xa9b   : > { %2296 = vst.msk [vmem:[#allocation3 + $0xf] sm:$0xff] %vm751_vm2, %v2289_v53 }
 0xa9c   : > { %v3323_v38 = vpop.eup %3322 }
 0xa9d   : > { %v2290_v4 = vmul.f32 %v3323_v38, %v2212_v29 }
 0xa9f   : > { %2297 = vst.msk [vmem:[#allocation3 + $0x17] sm:$0xff] %vm751_vm2, %v2290_v4 }
 0xaa2   : > { %v2303_v41 = vld [vmem:[#allocation3 + $0x8] sm:$0xff] }
 0xaa3   : > { %v2313_v2 = vld [vmem:[#allocation3 + $0x9] sm:$0xff]  ;;  %v2309_v31 = vmul.f32 %v3836_v57, %v2303_v41  ;;  %v2387_v8 = vmul.f32 %v2386_v49, %v2303_v41  ;;  %v2431_v57 = vrot.slane %v2299_v26, %v4270_v44 }
 0xaa4   : > { %v2323_v30 = vld [vmem:[#allocation3 + $0xa] sm:$0xff]  ;;  %v2319_v33 = vmul.f32 %v3844_v59, %v2313_v2  ;;  %v2396_v52 = vmul.f32 %v2395_v1, %v2313_v2 }
 0xaa5   : > { %v2333_v7 = vld [vmem:[#allocation3 + $0xb] sm:$0xff]  ;;  %v2329_v20 = vmul.f32 %v3841_v58, %v2323_v30  ;;  %v2389_v11 = vadd.f32 %v2387_v8, %v2380_v5  ;;  %v2405_v9 = vmul.f32 %v2404_v18, %v2323_v30 }
 0xaa6   : > { %v2321_v12 = vadd.f32 %v2319_v33, %v2309_v31  ;;  %v2343_v60 = vld [vmem:[#allocation3 + $0xc] sm:$0xff]  ;;  %v2339_v16 = vmul.f32 %v2337_v34, %v2333_v7  ;;  %v2414_v36 = vmul.f32 %v2413_v35, %v2333_v7  ;;  %v2449_v34 = vrot.slane %v2299_v26, %v4279_v21 }
 0xaa7   : > { %v2398_v39 = vadd.f32 %v2396_v52, %v2389_v11  ;;  %v2353_v62 = vld [vmem:[#allocation3 + $0xd] sm:$0xff]  ;;  %v2349_v25 = vmul.f32 %v2347_v40, %v2343_v60  ;;  %v2423_v19 = vmul.f32 %v2422_v32, %v2343_v60 }
 0xaa8   : > { %v2331_v17 = vadd.f32 %v2329_v20, %v2321_v12  ;;  %v2363_v47 = vld [vmem:[#allocation3 + $0xe] sm:$0xff]  ;;  %v2359_v46 = vmul.f32 %v2357_v42, %v2353_v62  ;;  %v2432_v53 = vmul.f32 %v2431_v57, %v2353_v62 }
 0xaa9   : > { %v2407_v15 = vadd.f32 %v2405_v9, %v2398_v39  ;;  %v2300_v58 = vld [vmem:[#allocation12 + $0x10] sm:$0xff]  ;;  %v2369_v50 = vmul.f32 %v2367_v10, %v2363_v47  ;;  %v2441_v38 = vmul.f32 %v2440_v22, %v2363_v47 }
 0xaaa   : > { %v2341_v59 = vadd.f32 %v2339_v16, %v2331_v17  ;;  %v2373_v14 = vld [vmem:[#allocation3 + $0xf] sm:$0xff]  ;;  %v2458_v3 = vrot.slane %v2300_v58, %v3824_v54  ;;  %v2467_v4 = vrot.slane %v2300_v58, %v3831_v56  ;;  %v2476_v26 = vrot.slane %v2300_v58, %v3828_v55 }
 0xaab   : > { %v2416_v51 = vadd.f32 %v2414_v36, %v2407_v15  ;;  %v2382_v40 = vld [vmem:[#allocation3 + $0x10] sm:$0xff]  ;;  %v2379_v37 = vmul.f32 %v2377_v28, %v2373_v14  ;;  %v2450_v41 = vmul.f32 %v2449_v34, %v2373_v14  ;;  %v2485_v7 = vrot.slane %v2300_v58, %v4262_v63 }
 0xaac   : > { %v2351_v23 = vadd.f32 %v2349_v25, %v2341_v59  ;;  %v2391_v6 = vld [vmem:[#allocation3 + $0x11] sm:$0xff]  ;;  %v2388_v0 = vmul.f32 %v2386_v49, %v2382_v40  ;;  %v2459_v33 = vmul.f32 %v2458_v3, %v2382_v40  ;;  %v2494_v60 = vrot.slane %v2300_v58, %v4266_v45 }
 0xaad   : > { %v2425_v24 = vadd.f32 %v2423_v19, %v2416_v51  ;;  %v2400_v2 = vld [vmem:[#allocation3 + $0x12] sm:$0xff]  ;;  %v2397_v30 = vmul.f32 %v2395_v1, %v2391_v6  ;;  %v2468_v11 = vmul.f32 %v2467_v4, %v2391_v6  ;;  %v2503_v62 = vrot.slane %v2300_v58, %v4270_v44 }
 0xaae   : > { %v2361_v48 = vadd.f32 %v2359_v46, %v2351_v23  ;;  %v2409_v8 = vld [vmem:[#allocation3 + $0x13] sm:$0xff]  ;;  %v2406_v12 = vmul.f32 %v2404_v18, %v2400_v2  ;;  %v2477_v39 = vmul.f32 %v2476_v26, %v2400_v2  ;;  %v2512_v47 = vrot.slane %v2300_v58, %v4275_v43 }
 0xaaf   : > { %v2434_v29 = vadd.f32 %v2432_v53, %v2425_v24  ;;  %v2418_v52 = vld [vmem:[#allocation3 + $0x14] sm:$0xff]  ;;  %v2415_v17 = vmul.f32 %v2413_v35, %v2409_v8  ;;  %v2486_v15 = vmul.f32 %v2485_v7, %v2409_v8  ;;  %v2521_v35 = vrot.slane %v2300_v58, %v4279_v21 }
 0xab0   : > { %v2371_v13 = vadd.f32 %v2369_v50, %v2361_v48  ;;  %v2427_v9 = vld [vmem:[#allocation3 + $0x15] sm:$0xff]  ;;  %v2424_v59 = vmul.f32 %v2422_v32, %v2418_v52  ;;  %v2495_v19 = vmul.f32 %v2494_v60, %v2418_v52 }
 0xab1   : > { %v2443_v5 = vadd.f32 %v2441_v38, %v2434_v29  ;;  %v2436_v36 = vld [vmem:[#allocation3 + $0x16] sm:$0xff]  ;;  %v2433_v46 = vmul.f32 %v2431_v57, %v2427_v9  ;;  %v2504_v53 = vmul.f32 %v2503_v62, %v2427_v9 }
 0xab2   : > { %v2381_v42 = vadd.f32 %v2379_v37, %v2371_v13  ;;  %v2301_v18 = vld [vmem:[#allocation12 + $0x18] sm:$0x7f]  ;;  %v2442_v50 = vmul.f32 %v2440_v22, %v2436_v36  ;;  %v2513_v38 = vmul.f32 %v2512_v47, %v2436_v36 }
 0xab3   : > { %v2452_v31 = vadd.f32 %v2450_v41, %v2443_v5  ;;  %v2445_v14 = vld [vmem:[#allocation3 + $0x17] sm:$0xff]  ;;  %v2530_v40 = vrot.slane %v2301_v18, %v3824_v54  ;;  %v2539_v6 = vrot.slane %v2301_v18, %v3831_v56  ;;  %v2548_v21 = vrot.slane %v2301_v18, %v3828_v55 }
 0xab4   : > { %v2390_v10 = vadd.f32 %v2388_v0, %v2381_v42  ;;  %v2454_v32 = vld [vmem:[#allocation3 + $0x18] sm:$0xff]  ;;  %v2451_v37 = vmul.f32 %v2449_v34, %v2445_v14  ;;  %v2522_v41 = vmul.f32 %v2521_v35, %v2445_v14 }
 0xab5   : > { %v2461_v20 = vadd.f32 %v2459_v33, %v2452_v31  ;;  %v2463_v42 = vld [vmem:[#allocation3 + $0x19] sm:$0xff]  ;;  %v2460_v0 = vmul.f32 %v2458_v3, %v2454_v32  ;;  %v2557_v31 = vrot.slane %v2301_v18, %v4262_v63 }
 0xab6   : > { %v2399_v28 = vadd.f32 %v2397_v30, %v2390_v10  ;;  %v2472_v58 = vld [vmem:[#allocation3 + $0x1a] sm:$0xff]  ;;  %v2469_v2 = vmul.f32 %v2467_v4, %v2463_v42  ;;  %v2531_v30 = vmul.f32 %v2530_v40, %v2454_v32  ;;  %v2553_v32 = vld [vmem:[#allocation3 + $0x23] sm:$0xff] }
 0xab7   : > { %v2470_v16 = vadd.f32 %v2468_v11, %v2461_v20  ;;  %v2481_v54 = vld [vmem:[#allocation3 + $0x1b] sm:$0xff]  ;;  %v2478_v33 = vmul.f32 %v2476_v26, %v2472_v58  ;;  %v2549_v52 = vmul.f32 %v2548_v21, %v2472_v58 }
 0xab8   : > { %v2408_v49 = vadd.f32 %v2406_v12, %v2399_v28  ;;  %v2540_v28 = vmul.f32 %v2539_v6, %v2463_v42  ;;  %v2490_v56 = vld [vmem:[#allocation3 + $0x1c] sm:$0xff]  ;;  %v2566_v12 = vrot.slane %v2301_v18, %v4266_v45  ;;  %v2487_v20 = vmul.f32 %v2485_v7, %v2481_v54 }
 0xab9   : > { %v2479_v25 = vadd.f32 %v2477_v39, %v2470_v16  ;;  %v2499_v55 = vld [vmem:[#allocation3 + $0x1d] sm:$0xff]  ;;  %v2558_v9 = vmul.f32 %v2557_v31, %v2481_v54  ;;  %v2584_v45 = vrot.slane %v2301_v18, %v4275_v43  ;;  %v2559_v43 = vmul.f32 %v2557_v31, %v2553_v32 }
 0xaba   : > { %v2417_v1 = vadd.f32 %v2415_v17, %v2408_v49  ;;  %v2575_v49 = vrot.slane %v2301_v18, %v4270_v44  ;;  %v2496_v17 = vmul.f32 %v2494_v60, %v2490_v56  ;;  %v2517_v16 = vld [vmem:[#allocation3 + $0x1f] sm:$0xff]  ;;  %v2505_v26 = vmul.f32 %v2503_v62, %v2499_v55 }
 0xabb   : > { %v2488_v51 = vadd.f32 %v2486_v15, %v2479_v25  ;;  %v2508_v63 = vld [vmem:[#allocation3 + $0x1e] sm:$0xff]  ;;  %v2567_v25 = vmul.f32 %v2566_v12, %v2490_v56  ;;  %v2523_v36 = vmul.f32 %v2521_v35, %v2517_v16 }
 0xabc   : > { %v2426_v23 = vadd.f32 %v2424_v59, %v2417_v1  ;;  %v2526_v15 = vld [vmem:[#allocation3 + $0x20] sm:$0xff]  ;;  %v2911_v35 = vld [vmem:[#allocation11 + $0x2] ss:$0 sm:$0xff] }
 0xabd   : > { %v2497_v24 = vadd.f32 %v2495_v19, %v2488_v51  ;;  %v2576_v51 = vmul.f32 %v2575_v49, %v2499_v55  ;;  %v2535_v19 = vld [vmem:[#allocation3 + $0x21] sm:$0xff]  ;;  %v2532_v44 = vmul.f32 %v2530_v40, %v2526_v15 }
 0xabe   : > { %v2435_v48 = vadd.f32 %v2433_v46, %v2426_v23  ;;  %v2514_v23 = vmul.f32 %v2512_v47, %v2508_v63  ;;  %v2571_v18 = vld [vmem:[#allocation3 + $0x25] sm:$0xff] }
 0xabf   : > { %v2506_v29 = vadd.f32 %v2504_v53, %v2497_v24  ;;  %v2585_v53 = vmul.f32 %v2584_v45, %v2508_v63 }
 0xac0   : > { %v2444_v13 = vadd.f32 %v2442_v50, %v2435_v48  ;;  %v2544_v48 = vld [vmem:[#allocation3 + $0x22] sm:$0xff]  ;;  %v2541_v50 = vmul.f32 %v2539_v6, %v2535_v19 }
 0xac1   : > { %v2515_v5 = vadd.f32 %v2513_v38, %v2506_v29  ;;  %v2562_v29 = vld [vmem:[#allocation3 + $0x24] sm:$0xff] }
 0xac2   : > { %v2453_v57 = vadd.f32 %v2451_v37, %v2444_v13  ;;  %v2550_v13 = vmul.f32 %v2548_v21, %v2544_v48  ;;  %v2568_v42 = vmul.f32 %v2566_v12, %v2562_v29 }
 0xac3   : > { %v2524_v10 = vadd.f32 %v2522_v41, %v2515_v5  ;;  %v2577_v5 = vmul.f32 %v2575_v49, %v2571_v18 }
 0xac4   : > { %v2462_v22 = vadd.f32 %v2460_v0, %v2453_v57  ;;  %v2580_v0 = vld [vmem:[#allocation3 + $0x26] sm:$0xff] }
 0xac5   : > { %v2533_v8 = vadd.f32 %v2531_v30, %v2524_v10  ;;  %v2586_v58 = vmul.f32 %v2584_v45, %v2580_v0 }
 0xac6   : > { %v2471_v34 = vadd.f32 %v2469_v2, %v2462_v22 }
 0xac7   : > { %v2542_v11 = vadd.f32 %v2540_v28, %v2533_v8 }
 0xac8   : > { %v2480_v3 = vadd.f32 %v2478_v33, %v2471_v34 }
 0xac9   : > { %v2551_v39 = vadd.f32 %v2549_v52, %v2542_v11 }
 0xaca   : > { %v2489_v4 = vadd.f32 %v2487_v20, %v2480_v3  ;;  %v2914_v3 = vld [vmem:[#allocation4 + $0x5] ss:$0 sm:$0xff] }
 0xacb   : > { %v2560_v59 = vadd.f32 %v2558_v9, %v2551_v39 }
 0xacc   : > { %v2498_v1 = vadd.f32 %v2496_v17, %v2489_v4 }
 0xacd   : > { %v2569_v46 = vadd.f32 %v2567_v25, %v2560_v59 }
 0xace   : > { %v2507_v7 = vadd.f32 %v2505_v26, %v2498_v1 }
 0xacf   : > { %v2578_v60 = vadd.f32 %v2576_v51, %v2569_v46 }
 0xad0   : > { %v2516_v14 = vadd.f32 %v2514_v23, %v2507_v7 }
 0xad1   : > { %v2587_v37 = vadd.f32 %v2585_v53, %v2578_v60 }
 0xad2   : > { %v2525_v24 = vadd.f32 %v2523_v36, %v2516_v14 }
 0xad3   : > { %v2594_v57 = vadd.f32 %v2911_v35, %v2587_v37 }
 0xad4   : > { %v2534_v62 = vadd.f32 %v2532_v44, %v2525_v24 }
 0xad5   : > { %v2912_v6 = vmul.f32 -1.442695, %v2594_v57 }
 0xad6   : > { %v2543_v38 = vadd.f32 %v2541_v50, %v2534_v62 }
 0xad7   : > { %3324 = vpow2.f32 %v2912_v6 }
 0xad8   : > { %v2552_v47 = vadd.f32 %v2550_v13, %v2543_v38 }
 0xada   : > { %v2561_v40 = vadd.f32 %v2559_v43, %v2552_v47 }
 0xadc   : > { %v2570_v41 = vadd.f32 %v2568_v42, %v2561_v40 }
 0xade   : > { %v2579_v22 = vadd.f32 %v2577_v5, %v2570_v41 }
 0xae0   : > { %v2588_v2 = vadd.f32 %v2586_v58, %v2579_v22 }
 0xae2   : > { %v2595_v10 = vadd.f32 %v2911_v35, %v2588_v2 }
 0xae4   : > { %v2913_v21 = vmul.f32 -1.442695, %v2595_v10  ;;  %v3325_v30 = vpop.eup %3324 }
 0xae5   : > { %v2602_v54 = vadd.f32 1.0, %v3325_v30 }
 0xae6   : > { %3326 = vpow2.f32 %v2913_v21 }
 0xae7   : > { %3328 = vrcp.f32 %v2602_v54 }
 0xaf3   : > { %v3327_v31 = vpop.eup %3326 }
 0xaf4   : > { %v2603_v34 = vadd.f32 1.0, %v3327_v31  ;;  %v3329_v33 = vpop.eup %3328 }
 0xaf5   : > { %v2608_v28 = vmul.f32 %v3329_v33, %v2594_v57 }
 0xaf6   : > { %3330 = vrcp.f32 %v2603_v34 }
 0xb03   : > { %v3331_v8 = vpop.eup %3330 }
 0xb04   : > { %v2609_v56 = vmul.f32 %v3331_v8, %v2595_v10 }
 0xb06   : > { %v2610_v12 = vpack.c.bf16 %v2609_v56, %v2608_v28 }
 0xb08   : > { %3132 = vmatmul.mubr.msk.bf16.vlgmr.msra.gmra.mxu1 %vm751_vm2, %v2610_v12 }
 0xbc8   : > { %v2685_v20 = vpop.f32.mrf.mxu1 }
 0xbc9   : > { %v2686_v11 = vadd.f32 %v2914_v3, %v2685_v20 }
 0xbca   : > { %v3133_v52 = vpop.f32.mrf.mxu1 }
 0xbcb   : > { %v2692_v55 = vadd.f32 %v2686_v11, %v4223_v27 }
 0xbcc   : > { %v2688_v49 = vpop.f32.mrf.mxu1 }
 0xbcd   : > { %2694 = vst.msk [vmem:[%s468_s26] sm:$0xff] %vm474_vm0, %v2692_v55  ;;  %v2689_v4 = vadd.f32 %v2914_v3, %v2688_v49 }
 0xbce   : > { %v3134_v17 = vpop.f32.mrf.mxu1 }
 0xbcf   : > { %v2693_v16 = vadd.f32 %v2689_v4, %v4228_v61 }
 0xbd1   : > { %2695 = vst.msk [vmem:[%s468_s26 + $0x8] sm:$0xff] %vm474_vm0, %v2693_v16 }
 0xbd2 PF: > { %s25_s17 = sadd.s32 1, %s3513_s17  }
 0xbd3   : > { %p22_p0 = scmp.ge.s32.totalorder %s25_s17, 4  }
 0xbd5   :  { %24 = sbr.rel (!%p22_p0) target bundleno = 4 (0x4), region = 119 }
 0xbda   :  { %2717 = vsyncpa [#allocation5], 1 }
 0xbdb   :  { %2719 = vsyncpa [#allocation5 + $0x1], 1 }
 0xbdc   :  { %2720 = vsyncpa [#allocation7], 1 }
 0xbdd   :  { %2721 = vsyncpa [#allocation10], 1 }
 0xbde   :  { %2722 = vsyncpa [#allocation13], 1 }

</bundles_post_ra>
